<compile_context>
chip_gen: v6e
topology: v6e:2x2x1
jax: 0.10.0
libtpu: 0.0.40
codegen_flags: <defaults>
</compile_context>

<pallas_src>
import math

import jax
import jax.numpy as jnp
from jax.experimental import pallas as pl
from jax.experimental.pallas import tpu as pltpu

# ----------------------------- model config ---------------------------------
HIDDEN = 32
HEADS = 2
HEAD_DIM = HIDDEN // HEADS
FF = 64
VOCAB = 16
MAX_LEN = 64
EPS = 1e-6

# Packed-weight ordering seen by the kernel (leading axis = heads where split).
_WNAMES = (
    # encoder layer
    "enc_ln1_g", "enc_ln1_b",
    "enc_qkv_w", "enc_qkv_b",      # (3*HEADS, H, Dh), (3*HEADS, 1, Dh)
    "enc_wo", "enc_bo",            # (HEADS, Dh, H),   (1, H)
    "enc_ln2_g", "enc_ln2_b",
    "enc_w1", "enc_b1", "enc_w2", "enc_b2",
    "enc_lnf_g", "enc_lnf_b",
    # decoder self-attention
    "dec_ln1_g", "dec_ln1_b",
    "dec_sa_qkv_w", "dec_sa_qkv_b",
    "dec_sa_wo", "dec_sa_bo",
    "dec_ln2_g", "dec_ln2_b",
    # decoder cross-attention
    "dec_ca_q_w", "dec_ca_q_b",    # (HEADS, H, Dh), (HEADS, 1, Dh)
    "dec_ca_kv_w", "dec_ca_kv_b",  # (2*HEADS, H, Dh), (2*HEADS, 1, Dh)
    "dec_ca_wo", "dec_ca_bo",
    "dec_ln3_g", "dec_ln3_b",
    "dec_w1", "dec_b1", "dec_w2", "dec_b2",
    "dec_lnf_g", "dec_lnf_b",
)


# ------------------------- in-kernel building blocks -------------------------
def _ln(x, g_ref, b_ref):
    x = x.astype(jnp.float32)
    mu = jnp.mean(x, axis=-1, keepdims=True)
    var = jnp.mean((x - mu) * (x - mu), axis=-1, keepdims=True)
    return (x - mu) * jax.lax.rsqrt(var + EPS) * g_ref[...] + b_ref[...]


def _ffn(x, w1_ref, b1_ref, w2_ref, b2_ref):
    h = jnp.dot(x, w1_ref[...], preferred_element_type=jnp.float32) + b1_ref[...]
    h = jnp.maximum(h, 0.0)  # ReLU (OpenNMT PositionwiseFeedForward)
    return jnp.dot(h, w2_ref[...], preferred_element_type=jnp.float32) + b2_ref[...]


def _proj_heads(x, w_ref, b_ref, base):
    """Per-head projections: list of (T, HEAD_DIM) = x @ w_ref[base+h] + b_ref[base+h]."""
    return [
        jnp.dot(x, w_ref[base + h], preferred_element_type=jnp.float32) + b_ref[base + h]
        for h in range(HEADS)
    ]


def _attend(q_heads, k_heads, v_heads, mask, wo_ref, bo_ref):
    """Multi-head attention on per-head 2-D tiles; returns (out, head-0 probs)."""
    tq = q_heads[0].shape[0]
    scale = 1.0 / math.sqrt(HEAD_DIM)
    out = jnp.zeros((tq, HIDDEN), jnp.float32)
    p0 = None
    for h in range(HEADS):
        s = jax.lax.dot_general(
            q_heads[h], k_heads[h], (((1,), (1,)), ((), ())),
            preferred_element_type=jnp.float32) * scale
        s = jnp.where(mask, s, -1e9)
        m = jnp.max(s, axis=-1, keepdims=True)
        e = jnp.exp(s - m)
        p = e * pl.reciprocal(jnp.sum(e, axis=-1, keepdims=True), approx=True)
        if h == 0:
            p0 = p
        ctx = jnp.dot(p, v_heads[h], preferred_element_type=jnp.float32)
        out = out + jnp.dot(ctx, wo_ref[h], preferred_element_type=jnp.float32)
    return out + bo_ref[...], p0


# ------------------------------ fused kernel ---------------------------------
def _nmt_kernel(src_len_ref, xs_ref, xd_ref, *refs):
    nw = len(_WNAMES)
    w = dict(zip(_WNAMES, refs[:nw]))
    dec_out_ref, attn_ref = refs[nw], refs[nw + 1]

    b = pl.program_id(0)
    slen = src_len_ref[b]                         # scalar from SMEM (prefetched)
    xs = xs_ref[0].astype(jnp.float32)            # (S, H) src embedding
    xd = xd_ref[0].astype(jnp.float32)            # (T, H) dec-input embedding
    S = xs.shape[0]
    T = xd.shape[0]

    # ------------------ encoder layer (pre-norm transformer) -----------------
    key_mask_ss = jax.lax.broadcasted_iota(jnp.int32, (S, S), 1) < slen
    h = _ln(xs, w["enc_ln1_g"], w["enc_ln1_b"])
    qh = _proj_heads(h, w["enc_qkv_w"], w["enc_qkv_b"], 0)
    kh = _proj_heads(h, w["enc_qkv_w"], w["enc_qkv_b"], HEADS)
    vh = _proj_heads(h, w["enc_qkv_w"], w["enc_qkv_b"], 2 * HEADS)
    sa, _ = _attend(qh, kh, vh, key_mask_ss, w["enc_wo"], w["enc_bo"])
    x = xs + sa
    h = _ln(x, w["enc_ln2_g"], w["enc_ln2_b"])
    x = x + _ffn(h, w["enc_w1"], w["enc_b1"], w["enc_w2"], w["enc_b2"])
    enc = _ln(x, w["enc_lnf_g"], w["enc_lnf_b"])   # enc_out stays in VMEM

    # ---------------------------- decoder layer ------------------------------
    rows = jax.lax.broadcasted_iota(jnp.int32, (T, T), 0)
    cols = jax.lax.broadcasted_iota(jnp.int32, (T, T), 1)
    causal = cols <= rows
    cross_mask = jax.lax.broadcasted_iota(jnp.int32, (T, S), 1) < slen

    # masked self-attention
    h = _ln(xd, w["dec_ln1_g"], w["dec_ln1_b"])
    qh = _proj_heads(h, w["dec_sa_qkv_w"], w["dec_sa_qkv_b"], 0)
    kh = _proj_heads(h, w["dec_sa_qkv_w"], w["dec_sa_qkv_b"], HEADS)
    vh = _proj_heads(h, w["dec_sa_qkv_w"], w["dec_sa_qkv_b"], 2 * HEADS)
    sa, _ = _attend(qh, kh, vh, causal, w["dec_sa_wo"], w["dec_sa_bo"])
    x = xd + sa

    # cross-attention over encoder output
    h = _ln(x, w["dec_ln2_g"], w["dec_ln2_b"])
    qh = _proj_heads(h, w["dec_ca_q_w"], w["dec_ca_q_b"], 0)
    kh = _proj_heads(enc, w["dec_ca_kv_w"], w["dec_ca_kv_b"], 0)
    vh = _proj_heads(enc, w["dec_ca_kv_w"], w["dec_ca_kv_b"], HEADS)
    ca, p0 = _attend(qh, kh, vh, cross_mask, w["dec_ca_wo"], w["dec_ca_bo"])
    x = x + ca

    # feed-forward + final norm
    h = _ln(x, w["dec_ln3_g"], w["dec_ln3_b"])
    x = x + _ffn(h, w["dec_w1"], w["dec_b1"], w["dec_w2"], w["dec_b2"])
    out = _ln(x, w["dec_lnf_g"], w["dec_lnf_b"])

    dec_out_ref[0] = out.astype(dec_out_ref.dtype)
    # OpenNMT convention: attns["std"] = head-0 cross-attention weights.
    attn_ref[0] = p0.astype(attn_ref.dtype)


# --------------------------- host-side weight packing ------------------------
def _split_heads_w(wm):   # (H, H) -> (HEADS, H, HEAD_DIM): column blocks per head
    return wm.reshape(HIDDEN, HEADS, HEAD_DIM).transpose(1, 0, 2)


def _split_heads_b(bv):   # (H,) -> (HEADS, 1, HEAD_DIM)
    return bv.reshape(HEADS, 1, HEAD_DIM)


def _pack_params(p):
    def qkv(prefix):
        wm = jnp.concatenate([_split_heads_w(p[f"{prefix}_wq"]),
                              _split_heads_w(p[f"{prefix}_wk"]),
                              _split_heads_w(p[f"{prefix}_wv"])], axis=0)
        bv = jnp.concatenate([_split_heads_b(p[f"{prefix}_bq"]),
                              _split_heads_b(p[f"{prefix}_bk"]),
                              _split_heads_b(p[f"{prefix}_bv"])], axis=0)
        return wm, bv

    def wo(prefix):
        return (p[f"{prefix}_wo"].reshape(HEADS, HEAD_DIM, HIDDEN),
                p[f"{prefix}_bo"].reshape(1, HIDDEN))

    def ln(name):
        return p[name + "_g"].reshape(1, HIDDEN), p[name + "_b"].reshape(1, HIDDEN)

    d = {}
    d["enc_ln1_g"], d["enc_ln1_b"] = ln("enc_ln1")
    d["enc_qkv_w"], d["enc_qkv_b"] = qkv("enc_sa")
    d["enc_wo"], d["enc_bo"] = wo("enc_sa")
    d["enc_ln2_g"], d["enc_ln2_b"] = ln("enc_ln2")
    d["enc_w1"], d["enc_b1"] = p["enc_w1"], p["enc_b1"].reshape(1, FF)
    d["enc_w2"], d["enc_b2"] = p["enc_w2"], p["enc_b2"].reshape(1, HIDDEN)
    d["enc_lnf_g"], d["enc_lnf_b"] = ln("enc_lnf")

    d["dec_ln1_g"], d["dec_ln1_b"] = ln("dec_ln1")
    d["dec_sa_qkv_w"], d["dec_sa_qkv_b"] = qkv("dec_sa")
    d["dec_sa_wo"], d["dec_sa_bo"] = wo("dec_sa")
    d["dec_ln2_g"], d["dec_ln2_b"] = ln("dec_ln2")
    d["dec_ca_q_w"] = _split_heads_w(p["dec_ca_wq"])
    d["dec_ca_q_b"] = _split_heads_b(p["dec_ca_bq"])
    d["dec_ca_kv_w"] = jnp.concatenate([_split_heads_w(p["dec_ca_wk"]),
                                        _split_heads_w(p["dec_ca_wv"])], axis=0)
    d["dec_ca_kv_b"] = jnp.concatenate([_split_heads_b(p["dec_ca_bk"]),
                                        _split_heads_b(p["dec_ca_bv"])], axis=0)
    d["dec_ca_wo"], d["dec_ca_bo"] = wo("dec_ca")
    d["dec_ln3_g"], d["dec_ln3_b"] = ln("dec_ln3")
    d["dec_w1"], d["dec_b1"] = p["dec_w1"], p["dec_b1"].reshape(1, FF)
    d["dec_w2"], d["dec_b2"] = p["dec_w2"], p["dec_b2"].reshape(1, HIDDEN)
    d["dec_lnf_g"], d["dec_lnf_b"] = ln("dec_lnf")

    return [d[n] for n in _WNAMES]


# ----------------------------- positional encoding ---------------------------
def _sinusoidal_pos_enc(length, dim):
    # NOTE: [sin | cos] concatenated halves (valid PE, not OpenNMT-interleaved,
    # so it is not checkpoint-compatible bit-for-bit).
    pos = jnp.arange(length, dtype=jnp.float32)[:, None]
    i = jnp.arange(dim // 2, dtype=jnp.float32)[None, :]
    angle = pos / jnp.power(10000.0, 2.0 * i / dim)
    return jnp.concatenate([jnp.sin(angle), jnp.cos(angle)], axis=-1)


POS_ENC = _sinusoidal_pos_enc(MAX_LEN, HIDDEN)


# ------------------------------- model forward -------------------------------
def nmt_forward(params, src, tgt, src_len):
    """NMTModel.forward: dec_in = tgt[:, :-1, :]; encode; init_state; decode.

    The encoder block, decoder block (self-attn + cross-attn + FFN) and all
    intermediates run in a single fused Pallas kernel, gridded over batch.
    decoder.init_state(src, enc_out) only records src for masking; here that is
    the scalar-prefetched src_len used to build the key mask in-kernel.
    """
    dec_in = tgt[:, :-1, :]
    src_ids = src[..., 0]
    dec_ids = dec_in[..., 0]
    B, S = src_ids.shape
    T = dec_ids.shape[1]

    # Embedding lookup + positional encoding (plain-JAX glue).
    xs = jnp.take(params["enc_emb"], src_ids, axis=0) + POS_ENC[:S][None]
    xd = jnp.take(params["dec_emb"], dec_ids, axis=0) + POS_ENC[:T][None]

    packed = _pack_params(params)
    src_len = src_len.astype(jnp.int32)

    in_specs = [
        pl.BlockSpec((1, S, HIDDEN), lambda b, sl: (b, 0, 0)),
        pl.BlockSpec((1, T, HIDDEN), lambda b, sl: (b, 0, 0)),
    ]
    for arr in packed:  # whole (tiny) weight slabs resident in VMEM
        nd = arr.ndim
        in_specs.append(pl.BlockSpec(arr.shape, lambda b, sl, _nd=nd: (0,) * _nd))

    out_specs = [
        pl.BlockSpec((1, T, HIDDEN), lambda b, sl: (b, 0, 0)),
        pl.BlockSpec((1, T, S), lambda b, sl: (b, 0, 0)),
    ]
    out_shape = (
        jax.ShapeDtypeStruct((B, T, HIDDEN), jnp.float32),
        jax.ShapeDtypeStruct((B, T, S), jnp.float32),
    )

    dec_out, attn_std = pl.pallas_call(
        _nmt_kernel,
        out_shape=out_shape,
        grid_spec=pltpu.PrefetchScalarGridSpec(
            num_scalar_prefetch=1,      # src_len -> SMEM
            grid=(B,),
            in_specs=in_specs,
            out_specs=out_specs,
        ),
        compiler_params=pltpu.CompilerParams(
            dimension_semantics=("parallel",)),   # batch axis: both TCs on v7x
    )(src_len, xs, xd, *packed)

    return dec_out, {"std": attn_std}


# ------------------------------ parameter init -------------------------------
def init_params(key):
    keys = iter(jax.random.split(key, 64))

    def dense(shape, scale=0.02):
        return (scale * jax.random.normal(next(keys), shape)).astype(jnp.float32)

    p = {
        "enc_emb": dense((VOCAB, HIDDEN), 0.1),
        "dec_emb": dense((VOCAB, HIDDEN), 0.1),
    }

    def add_ln(name):
        p[name + "_g"] = jnp.ones((HIDDEN,), jnp.float32)
        p[name + "_b"] = jnp.zeros((HIDDEN,), jnp.float32)

    def add_attn(name):
        for w in ("wq", "wk", "wv", "wo"):
            p[f"{name}_{w}"] = dense((HIDDEN, HIDDEN))
        for b in ("bq", "bk", "bv", "bo"):
            p[f"{name}_{b}"] = jnp.zeros((HIDDEN,), jnp.float32)

    def add_ffn(name):
        p[name + "_w1"] = dense((HIDDEN, FF))
        p[name + "_b1"] = jnp.zeros((FF,), jnp.float32)
        p[name + "_w2"] = dense((FF, HIDDEN))
        p[name + "_b2"] = jnp.zeros((HIDDEN,), jnp.float32)

    add_ln("enc_ln1"); add_attn("enc_sa"); add_ln("enc_ln2"); add_ffn("enc"); add_ln("enc_lnf")
    add_ln("dec_ln1"); add_attn("dec_sa"); add_ln("dec_ln2"); add_attn("dec_ca")
    add_ln("dec_ln3"); add_ffn("dec"); add_ln("dec_lnf")
    return p


# TODO(synk): checkpoint loading (load_state_dict/_load_param), update_dropout and
# count_parameters are host-side training utilities with no kernel equivalent;
# dropout is omitted (inference-mode forward).

if __name__ == "__main__":
    key = jax.random.PRNGKey(0)
    kp, ks, kt = jax.random.split(key, 3)

    B, S, T = 2, 8, 8
    params = init_params(kp)
    src = jax.random.randint(ks, (B, S, 1), 1, VOCAB, dtype=jnp.int32)
    tgt = jax.random.randint(kt, (B, T, 1), 1, VOCAB, dtype=jnp.int32)
    src_len = jnp.array([S, S - 2], dtype=jnp.int32)

    dec_out, attns = jax.jit(nmt_forward)(params, src, tgt, src_len)
    jax.block_until_ready(dec_out)
    jax.block_until_ready(attns["std"])

    assert dec_out.shape == (B, T - 1, HIDDEN), dec_out.shape
    assert attns["std"].shape == (B, T - 1, S), attns["std"].shape
    assert bool(jnp.all(jnp.isfinite(dec_out)))
    # Attention rows sum to ~1 over src positions (approx-reciprocal softmax).
    assert bool(jnp.allclose(jnp.sum(attns["std"], axis=-1), 1.0, atol=5e-2))

    print("KERNEL_OK")
</pallas_src>

<mosaic_0001>
module attributes {stable_mosaic.version = 11 : i64} {
  func.func @_nmt_kernel(%arg0: i32, %arg1: memref<2xi32, #tpu.memory_space<smem>>, %arg2: memref<1x8x32xf32, #tpu.memory_space<vmem>>, %arg3: memref<1x7x32xf32, #tpu.memory_space<vmem>>, %arg4: memref<1x32xf32, #tpu.memory_space<vmem>>, %arg5: memref<1x32xf32, #tpu.memory_space<vmem>>, %arg6: memref<6x32x16xf32, #tpu.memory_space<vmem>>, %arg7: memref<6x1x16xf32, #tpu.memory_space<vmem>>, %arg8: memref<2x16x32xf32, #tpu.memory_space<vmem>>, %arg9: memref<1x32xf32, #tpu.memory_space<vmem>>, %arg10: memref<1x32xf32, #tpu.memory_space<vmem>>, %arg11: memref<1x32xf32, #tpu.memory_space<vmem>>, %arg12: memref<32x64xf32, #tpu.memory_space<vmem>>, %arg13: memref<1x64xf32, #tpu.memory_space<vmem>>, %arg14: memref<64x32xf32, #tpu.memory_space<vmem>>, %arg15: memref<1x32xf32, #tpu.memory_space<vmem>>, %arg16: memref<1x32xf32, #tpu.memory_space<vmem>>, %arg17: memref<1x32xf32, #tpu.memory_space<vmem>>, %arg18: memref<1x32xf32, #tpu.memory_space<vmem>>, %arg19: memref<1x32xf32, #tpu.memory_space<vmem>>, %arg20: memref<6x32x16xf32, #tpu.memory_space<vmem>>, %arg21: memref<6x1x16xf32, #tpu.memory_space<vmem>>, %arg22: memref<2x16x32xf32, #tpu.memory_space<vmem>>, %arg23: memref<1x32xf32, #tpu.memory_space<vmem>>, %arg24: memref<1x32xf32, #tpu.memory_space<vmem>>, %arg25: memref<1x32xf32, #tpu.memory_space<vmem>>, %arg26: memref<2x32x16xf32, #tpu.memory_space<vmem>>, %arg27: memref<2x1x16xf32, #tpu.memory_space<vmem>>, %arg28: memref<4x32x16xf32, #tpu.memory_space<vmem>>, %arg29: memref<4x1x16xf32, #tpu.memory_space<vmem>>, %arg30: memref<2x16x32xf32, #tpu.memory_space<vmem>>, %arg31: memref<1x32xf32, #tpu.memory_space<vmem>>, %arg32: memref<1x32xf32, #tpu.memory_space<vmem>>, %arg33: memref<1x32xf32, #tpu.memory_space<vmem>>, %arg34: memref<32x64xf32, #tpu.memory_space<vmem>>, %arg35: memref<1x64xf32, #tpu.memory_space<vmem>>, %arg36: memref<64x32xf32, #tpu.memory_space<vmem>>, %arg37: memref<1x32xf32, #tpu.memory_space<vmem>>, %arg38: memref<1x32xf32, #tpu.memory_space<vmem>>, %arg39: memref<1x32xf32, #tpu.memory_space<vmem>>, %arg40: memref<1x7x32xf32, #tpu.memory_space<vmem>>, %arg41: memref<1x7x8xf32, #tpu.memory_space<vmem>>) attributes {dimension_semantics = [#tpu.dimension_semantics<parallel>], iteration_bounds = array<i64: 2>, scalar_prefetch = 1 : i64, scratch_operands = 0 : i64, tpu.core_type = #tpu.core_type<tc>, window_params = [{transform_indices = @transform_0, window_bounds = array<i64: 1, 8, 32>}, {transform_indices = @transform_1, window_bounds = array<i64: 1, 7, 32>}, {pipeline_mode = #tpu.pipeline_mode<synchronous>, transform_indices = @transform_2, window_bounds = array<i64: 1, 32>}, {pipeline_mode = #tpu.pipeline_mode<synchronous>, transform_indices = @transform_3, window_bounds = array<i64: 1, 32>}, {pipeline_mode = #tpu.pipeline_mode<synchronous>, transform_indices = @transform_4, window_bounds = array<i64: 6, 32, 16>}, {pipeline_mode = #tpu.pipeline_mode<synchronous>, transform_indices = @transform_5, window_bounds = array<i64: 6, 1, 16>}, {pipeline_mode = #tpu.pipeline_mode<synchronous>, transform_indices = @transform_6, window_bounds = array<i64: 2, 16, 32>}, {pipeline_mode = #tpu.pipeline_mode<synchronous>, transform_indices = @transform_7, window_bounds = array<i64: 1, 32>}, {pipeline_mode = #tpu.pipeline_mode<synchronous>, transform_indices = @transform_8, window_bounds = array<i64: 1, 32>}, {pipeline_mode = #tpu.pipeline_mode<synchronous>, transform_indices = @transform_9, window_bounds = array<i64: 1, 32>}, {pipeline_mode = #tpu.pipeline_mode<synchronous>, transform_indices = @transform_10, window_bounds = array<i64: 32, 64>}, {pipeline_mode = #tpu.pipeline_mode<synchronous>, transform_indices = @transform_11, window_bounds = array<i64: 1, 64>}, {pipeline_mode = #tpu.pipeline_mode<synchronous>, transform_indices = @transform_12, window_bounds = array<i64: 64, 32>}, {pipeline_mode = #tpu.pipeline_mode<synchronous>, transform_indices = @transform_13, window_bounds = array<i64: 1, 32>}, {pipeline_mode = #tpu.pipeline_mode<synchronous>, transform_indices = @transform_14, window_bounds = array<i64: 1, 32>}, {pipeline_mode = #tpu.pipeline_mode<synchronous>, transform_indices = @transform_15, window_bounds = array<i64: 1, 32>}, {pipeline_mode = #tpu.pipeline_mode<synchronous>, transform_indices = @transform_16, window_bounds = array<i64: 1, 32>}, {pipeline_mode = #tpu.pipeline_mode<synchronous>, transform_indices = @transform_17, window_bounds = array<i64: 1, 32>}, {pipeline_mode = #tpu.pipeline_mode<synchronous>, transform_indices = @transform_18, window_bounds = array<i64: 6, 32, 16>}, {pipeline_mode = #tpu.pipeline_mode<synchronous>, transform_indices = @transform_19, window_bounds = array<i64: 6, 1, 16>}, {pipeline_mode = #tpu.pipeline_mode<synchronous>, transform_indices = @transform_20, window_bounds = array<i64: 2, 16, 32>}, {pipeline_mode = #tpu.pipeline_mode<synchronous>, transform_indices = @transform_21, window_bounds = array<i64: 1, 32>}, {pipeline_mode = #tpu.pipeline_mode<synchronous>, transform_indices = @transform_22, window_bounds = array<i64: 1, 32>}, {pipeline_mode = #tpu.pipeline_mode<synchronous>, transform_indices = @transform_23, window_bounds = array<i64: 1, 32>}, {pipeline_mode = #tpu.pipeline_mode<synchronous>, transform_indices = @transform_24, window_bounds = array<i64: 2, 32, 16>}, {pipeline_mode = #tpu.pipeline_mode<synchronous>, transform_indices = @transform_25, window_bounds = array<i64: 2, 1, 16>}, {pipeline_mode = #tpu.pipeline_mode<synchronous>, transform_indices = @transform_26, window_bounds = array<i64: 4, 32, 16>}, {pipeline_mode = #tpu.pipeline_mode<synchronous>, transform_indices = @transform_27, window_bounds = array<i64: 4, 1, 16>}, {pipeline_mode = #tpu.pipeline_mode<synchronous>, transform_indices = @transform_28, window_bounds = array<i64: 2, 16, 32>}, {pipeline_mode = #tpu.pipeline_mode<synchronous>, transform_indices = @transform_29, window_bounds = array<i64: 1, 32>}, {pipeline_mode = #tpu.pipeline_mode<synchronous>, transform_indices = @transform_30, window_bounds = array<i64: 1, 32>}, {pipeline_mode = #tpu.pipeline_mode<synchronous>, transform_indices = @transform_31, window_bounds = array<i64: 1, 32>}, {pipeline_mode = #tpu.pipeline_mode<synchronous>, transform_indices = @transform_32, window_bounds = array<i64: 32, 64>}, {pipeline_mode = #tpu.pipeline_mode<synchronous>, transform_indices = @transform_33, window_bounds = array<i64: 1, 64>}, {pipeline_mode = #tpu.pipeline_mode<synchronous>, transform_indices = @transform_34, window_bounds = array<i64: 64, 32>}, {pipeline_mode = #tpu.pipeline_mode<synchronous>, transform_indices = @transform_35, window_bounds = array<i64: 1, 32>}, {pipeline_mode = #tpu.pipeline_mode<synchronous>, transform_indices = @transform_36, window_bounds = array<i64: 1, 32>}, {pipeline_mode = #tpu.pipeline_mode<synchronous>, transform_indices = @transform_37, window_bounds = array<i64: 1, 32>}, {transform_indices = @transform_38, window_bounds = array<i64: 1, 7, 32>}, {transform_indices = @transform_39, window_bounds = array<i64: 1, 7, 8>}]} {
    %0 = arith.index_cast %arg0 : i32 to index
    %1 = memref.load %arg1[%0] : memref<2xi32, #tpu.memory_space<smem>>
    %c0 = arith.constant 0 : index
    %c0_0 = arith.constant 0 : index
    %c0_1 = arith.constant 0 : index
    %2 = vector.load %arg2[%c0, %c0_0, %c0_1] : memref<1x8x32xf32, #tpu.memory_space<vmem>>, vector<1x8x32xf32>
    %3 = vector.shape_cast %2 : vector<1x8x32xf32> to vector<8x32xf32>
    %c0_2 = arith.constant 0 : index
    %c0_3 = arith.constant 0 : index
    %c0_4 = arith.constant 0 : index
    %4 = vector.load %arg3[%c0_2, %c0_3, %c0_4] : memref<1x7x32xf32, #tpu.memory_space<vmem>>, vector<1x7x32xf32>
    %5 = vector.shape_cast %4 : vector<1x7x32xf32> to vector<7x32xf32>
    %6 = tpu.iota {dimensions = array<i32: 1>} : vector<8x8xi32>
    %7 = vector.broadcast %1 : i32 to vector<8x8xi32>
    %8 = arith.cmpi slt, %6, %7 : vector<8x8xi32>
    %cst = arith.constant dense<0.000000e+00> : vector<8xf32>
    %9 = vector.multi_reduction <add>, %3, %cst [1] : vector<8x32xf32> to vector<8xf32>
    %10 = vector.shape_cast %9 : vector<8xf32> to vector<8x1xf32>
    %cst_5 = arith.constant 3.200000e+01 : f32
    %11 = vector.broadcast %cst_5 : f32 to vector<8x1xf32>
    %12 = arith.divf %10, %11 : vector<8x1xf32>
    %13 = vector.broadcast %12 : vector<8x1xf32> to vector<8x32xf32>
    %14 = arith.subf %3, %13 : vector<8x32xf32>
    %15 = vector.broadcast %12 : vector<8x1xf32> to vector<8x32xf32>
    %16 = arith.subf %3, %15 : vector<8x32xf32>
    %17 = arith.mulf %14, %16 : vector<8x32xf32>
    %cst_6 = arith.constant dense<0.000000e+00> : vector<8xf32>
    %18 = vector.multi_reduction <add>, %17, %cst_6 [1] : vector<8x32xf32> to vector<8xf32>
    %19 = vector.shape_cast %18 : vector<8xf32> to vector<8x1xf32>
    %cst_7 = arith.constant 3.200000e+01 : f32
    %20 = vector.broadcast %cst_7 : f32 to vector<8x1xf32>
    %21 = arith.divf %19, %20 : vector<8x1xf32>
    %22 = vector.broadcast %12 : vector<8x1xf32> to vector<8x32xf32>
    %23 = arith.subf %3, %22 : vector<8x32xf32>
    %cst_8 = arith.constant 9.99999997E-7 : f32
    %24 = vector.broadcast %cst_8 : f32 to vector<8x1xf32>
    %25 = arith.addf %21, %24 : vector<8x1xf32>
    %26 = math.rsqrt %25 : vector<8x1xf32>
    %27 = vector.broadcast %26 : vector<8x1xf32> to vector<8x32xf32>
    %28 = arith.mulf %23, %27 : vector<8x32xf32>
    %c0_9 = arith.constant 0 : index
    %c0_10 = arith.constant 0 : index
    %29 = vector.load %arg4[%c0_9, %c0_10] : memref<1x32xf32, #tpu.memory_space<vmem>>, vector<1x32xf32>
    %30 = vector.broadcast %29 : vector<1x32xf32> to vector<8x32xf32>
    %31 = arith.mulf %28, %30 : vector<8x32xf32>
    %c0_11 = arith.constant 0 : index
    %c0_12 = arith.constant 0 : index
    %32 = vector.load %arg5[%c0_11, %c0_12] : memref<1x32xf32, #tpu.memory_space<vmem>>, vector<1x32xf32>
    %33 = vector.broadcast %32 : vector<1x32xf32> to vector<8x32xf32>
    %34 = arith.addf %31, %33 : vector<8x32xf32>
    %c0_13 = arith.constant 0 : index
    %c0_14 = arith.constant 0 : index
    %c0_15 = arith.constant 0 : index
    %35 = vector.load %arg6[%c0_13, %c0_14, %c0_15] : memref<6x32x16xf32, #tpu.memory_space<vmem>>, vector<1x32x16xf32>
    %36 = vector.shape_cast %35 : vector<1x32x16xf32> to vector<32x16xf32>
    %cst_16 = arith.constant dense<0.000000e+00> : vector<8x16xf32>
    %37 = tpu.matmul %34, %36, %cst_16 {dimension_numbers = #tpu.dot_dimension_numbers<[1], [0], [0], [1], [0, 0, 1, 1], [], []>} : vector<8x32xf32>, vector<32x16xf32>, vector<8x16xf32> -> vector<8x16xf32>
    %c0_17 = arith.constant 0 : index
    %c0_18 = arith.constant 0 : index
    %c0_19 = arith.constant 0 : index
    %38 = vector.load %arg7[%c0_17, %c0_18, %c0_19] : memref<6x1x16xf32, #tpu.memory_space<vmem>>, vector<1x1x16xf32>
    %39 = vector.shape_cast %38 : vector<1x1x16xf32> to vector<1x16xf32>
    %40 = vector.broadcast %39 : vector<1x16xf32> to vector<8x16xf32>
    %41 = arith.addf %37, %40 : vector<8x16xf32>
    %c1 = arith.constant 1 : index
    %c0_20 = arith.constant 0 : index
    %c0_21 = arith.constant 0 : index
    %42 = vector.load %arg6[%c1, %c0_20, %c0_21] : memref<6x32x16xf32, #tpu.memory_space<vmem>>, vector<1x32x16xf32>
    %43 = vector.shape_cast %42 : vector<1x32x16xf32> to vector<32x16xf32>
    %cst_22 = arith.constant dense<0.000000e+00> : vector<8x16xf32>
    %44 = tpu.matmul %34, %43, %cst_22 {dimension_numbers = #tpu.dot_dimension_numbers<[1], [0], [0], [1], [0, 0, 1, 1], [], []>} : vector<8x32xf32>, vector<32x16xf32>, vector<8x16xf32> -> vector<8x16xf32>
    %c1_23 = arith.constant 1 : index
    %c0_24 = arith.constant 0 : index
    %c0_25 = arith.constant 0 : index
    %45 = vector.load %arg7[%c1_23, %c0_24, %c0_25] : memref<6x1x16xf32, #tpu.memory_space<vmem>>, vector<1x1x16xf32>
    %46 = vector.shape_cast %45 : vector<1x1x16xf32> to vector<1x16xf32>
    %47 = vector.broadcast %46 : vector<1x16xf32> to vector<8x16xf32>
    %48 = arith.addf %44, %47 : vector<8x16xf32>
    %c2 = arith.constant 2 : index
    %c0_26 = arith.constant 0 : index
    %c0_27 = arith.constant 0 : index
    %49 = vector.load %arg6[%c2, %c0_26, %c0_27] : memref<6x32x16xf32, #tpu.memory_space<vmem>>, vector<1x32x16xf32>
    %50 = vector.shape_cast %49 : vector<1x32x16xf32> to vector<32x16xf32>
    %cst_28 = arith.constant dense<0.000000e+00> : vector<8x16xf32>
    %51 = tpu.matmul %34, %50, %cst_28 {dimension_numbers = #tpu.dot_dimension_numbers<[1], [0], [0], [1], [0, 0, 1, 1], [], []>} : vector<8x32xf32>, vector<32x16xf32>, vector<8x16xf32> -> vector<8x16xf32>
    %c2_29 = arith.constant 2 : index
    %c0_30 = arith.constant 0 : index
    %c0_31 = arith.constant 0 : index
    %52 = vector.load %arg7[%c2_29, %c0_30, %c0_31] : memref<6x1x16xf32, #tpu.memory_space<vmem>>, vector<1x1x16xf32>
    %53 = vector.shape_cast %52 : vector<1x1x16xf32> to vector<1x16xf32>
    %54 = vector.broadcast %53 : vector<1x16xf32> to vector<8x16xf32>
    %55 = arith.addf %51, %54 : vector<8x16xf32>
    %c3 = arith.constant 3 : index
    %c0_32 = arith.constant 0 : index
    %c0_33 = arith.constant 0 : index
    %56 = vector.load %arg6[%c3, %c0_32, %c0_33] : memref<6x32x16xf32, #tpu.memory_space<vmem>>, vector<1x32x16xf32>
    %57 = vector.shape_cast %56 : vector<1x32x16xf32> to vector<32x16xf32>
    %cst_34 = arith.constant dense<0.000000e+00> : vector<8x16xf32>
    %58 = tpu.matmul %34, %57, %cst_34 {dimension_numbers = #tpu.dot_dimension_numbers<[1], [0], [0], [1], [0, 0, 1, 1], [], []>} : vector<8x32xf32>, vector<32x16xf32>, vector<8x16xf32> -> vector<8x16xf32>
    %c3_35 = arith.constant 3 : index
    %c0_36 = arith.constant 0 : index
    %c0_37 = arith.constant 0 : index
    %59 = vector.load %arg7[%c3_35, %c0_36, %c0_37] : memref<6x1x16xf32, #tpu.memory_space<vmem>>, vector<1x1x16xf32>
    %60 = vector.shape_cast %59 : vector<1x1x16xf32> to vector<1x16xf32>
    %61 = vector.broadcast %60 : vector<1x16xf32> to vector<8x16xf32>
    %62 = arith.addf %58, %61 : vector<8x16xf32>
    %c4 = arith.constant 4 : index
    %c0_38 = arith.constant 0 : index
    %c0_39 = arith.constant 0 : index
    %63 = vector.load %arg6[%c4, %c0_38, %c0_39] : memref<6x32x16xf32, #tpu.memory_space<vmem>>, vector<1x32x16xf32>
    %64 = vector.shape_cast %63 : vector<1x32x16xf32> to vector<32x16xf32>
    %cst_40 = arith.constant dense<0.000000e+00> : vector<8x16xf32>
    %65 = tpu.matmul %34, %64, %cst_40 {dimension_numbers = #tpu.dot_dimension_numbers<[1], [0], [0], [1], [0, 0, 1, 1], [], []>} : vector<8x32xf32>, vector<32x16xf32>, vector<8x16xf32> -> vector<8x16xf32>
    %c4_41 = arith.constant 4 : index
    %c0_42 = arith.constant 0 : index
    %c0_43 = arith.constant 0 : index
    %66 = vector.load %arg7[%c4_41, %c0_42, %c0_43] : memref<6x1x16xf32, #tpu.memory_space<vmem>>, vector<1x1x16xf32>
    %67 = vector.shape_cast %66 : vector<1x1x16xf32> to vector<1x16xf32>
    %68 = vector.broadcast %67 : vector<1x16xf32> to vector<8x16xf32>
    %69 = arith.addf %65, %68 : vector<8x16xf32>
    %c5 = arith.constant 5 : index
    %c0_44 = arith.constant 0 : index
    %c0_45 = arith.constant 0 : index
    %70 = vector.load %arg6[%c5, %c0_44, %c0_45] : memref<6x32x16xf32, #tpu.memory_space<vmem>>, vector<1x32x16xf32>
    %71 = vector.shape_cast %70 : vector<1x32x16xf32> to vector<32x16xf32>
    %cst_46 = arith.constant dense<0.000000e+00> : vector<8x16xf32>
    %72 = tpu.matmul %34, %71, %cst_46 {dimension_numbers = #tpu.dot_dimension_numbers<[1], [0], [0], [1], [0, 0, 1, 1], [], []>} : vector<8x32xf32>, vector<32x16xf32>, vector<8x16xf32> -> vector<8x16xf32>
    %c5_47 = arith.constant 5 : index
    %c0_48 = arith.constant 0 : index
    %c0_49 = arith.constant 0 : index
    %73 = vector.load %arg7[%c5_47, %c0_48, %c0_49] : memref<6x1x16xf32, #tpu.memory_space<vmem>>, vector<1x1x16xf32>
    %74 = vector.shape_cast %73 : vector<1x1x16xf32> to vector<1x16xf32>
    %75 = vector.broadcast %74 : vector<1x16xf32> to vector<8x16xf32>
    %76 = arith.addf %72, %75 : vector<8x16xf32>
    %cst_50 = arith.constant 0.000000e+00 : f32
    %77 = vector.broadcast %cst_50 : f32 to vector<8x32xf32>
    %cst_51 = arith.constant dense<0.000000e+00> : vector<8x8xf32>
    %78 = tpu.matmul %41, %55, %cst_51 {dimension_numbers = #tpu.dot_dimension_numbers<[1], [1], [0], [0], [0, 0, 1, 0], [], []>} : vector<8x16xf32>, vector<8x16xf32>, vector<8x8xf32> -> vector<8x8xf32>
    %cst_52 = arith.constant 2.500000e-01 : f32
    %79 = vector.broadcast %cst_52 : f32 to vector<8x8xf32>
    %80 = arith.mulf %78, %79 : vector<8x8xf32>
    %cst_53 = arith.constant -1.000000e+09 : f32
    %81 = vector.broadcast %cst_53 : f32 to vector<8x8xf32>
    %82 = arith.select %8, %80, %81 : vector<8x8xi1>, vector<8x8xf32>
    %cst_54 = arith.constant dense<0xFF800000> : vector<8xf32>
    %83 = vector.multi_reduction <maximumf>, %82, %cst_54 [1] : vector<8x8xf32> to vector<8xf32>
    %84 = vector.shape_cast %83 : vector<8xf32> to vector<8x1xf32>
    %85 = vector.broadcast %84 : vector<8x1xf32> to vector<8x8xf32>
    %86 = arith.subf %82, %85 : vector<8x8xf32>
    %87 = math.exp %86 : vector<8x8xf32>
    %cst_55 = arith.constant dense<0.000000e+00> : vector<8xf32>
    %88 = vector.multi_reduction <add>, %87, %cst_55 [1] : vector<8x8xf32> to vector<8xf32>
    %89 = vector.shape_cast %88 : vector<8xf32> to vector<8x1xf32>
    %90 = tpu.reciprocal %89 {approx = true} : vector<8x1xf32> -> vector<8x1xf32>
    %91 = vector.broadcast %90 : vector<8x1xf32> to vector<8x8xf32>
    %92 = arith.mulf %87, %91 : vector<8x8xf32>
    %cst_56 = arith.constant dense<0.000000e+00> : vector<8x16xf32>
    %93 = tpu.matmul %92, %69, %cst_56 {dimension_numbers = #tpu.dot_dimension_numbers<[1], [0], [0], [1], [0, 0, 1, 1], [], []>} : vector<8x8xf32>, vector<8x16xf32>, vector<8x16xf32> -> vector<8x16xf32>
    %c0_57 = arith.constant 0 : index
    %c0_58 = arith.constant 0 : index
    %c0_59 = arith.constant 0 : index
    %94 = vector.load %arg8[%c0_57, %c0_58, %c0_59] : memref<2x16x32xf32, #tpu.memory_space<vmem>>, vector<1x16x32xf32>
    %95 = vector.shape_cast %94 : vector<1x16x32xf32> to vector<16x32xf32>
    %cst_60 = arith.constant dense<0.000000e+00> : vector<8x32xf32>
    %96 = tpu.matmul %93, %95, %cst_60 {dimension_numbers = #tpu.dot_dimension_numbers<[1], [0], [0], [1], [0, 0, 1, 1], [], []>} : vector<8x16xf32>, vector<16x32xf32>, vector<8x32xf32> -> vector<8x32xf32>
    %97 = arith.addf %77, %96 : vector<8x32xf32>
    %cst_61 = arith.constant dense<0.000000e+00> : vector<8x8xf32>
    %98 = tpu.matmul %48, %62, %cst_61 {dimension_numbers = #tpu.dot_dimension_numbers<[1], [1], [0], [0], [0, 0, 1, 0], [], []>} : vector<8x16xf32>, vector<8x16xf32>, vector<8x8xf32> -> vector<8x8xf32>
    %cst_62 = arith.constant 2.500000e-01 : f32
    %99 = vector.broadcast %cst_62 : f32 to vector<8x8xf32>
    %100 = arith.mulf %98, %99 : vector<8x8xf32>
    %cst_63 = arith.constant -1.000000e+09 : f32
    %101 = vector.broadcast %cst_63 : f32 to vector<8x8xf32>
    %102 = arith.select %8, %100, %101 : vector<8x8xi1>, vector<8x8xf32>
    %cst_64 = arith.constant dense<0xFF800000> : vector<8xf32>
    %103 = vector.multi_reduction <maximumf>, %102, %cst_64 [1] : vector<8x8xf32> to vector<8xf32>
    %104 = vector.shape_cast %103 : vector<8xf32> to vector<8x1xf32>
    %105 = vector.broadcast %104 : vector<8x1xf32> to vector<8x8xf32>
    %106 = arith.subf %102, %105 : vector<8x8xf32>
    %107 = math.exp %106 : vector<8x8xf32>
    %cst_65 = arith.constant dense<0.000000e+00> : vector<8xf32>
    %108 = vector.multi_reduction <add>, %107, %cst_65 [1] : vector<8x8xf32> to vector<8xf32>
    %109 = vector.shape_cast %108 : vector<8xf32> to vector<8x1xf32>
    %110 = tpu.reciprocal %109 {approx = true} : vector<8x1xf32> -> vector<8x1xf32>
    %111 = vector.broadcast %110 : vector<8x1xf32> to vector<8x8xf32>
    %112 = arith.mulf %107, %111 : vector<8x8xf32>
    %cst_66 = arith.constant dense<0.000000e+00> : vector<8x16xf32>
    %113 = tpu.matmul %112, %76, %cst_66 {dimension_numbers = #tpu.dot_dimension_numbers<[1], [0], [0], [1], [0, 0, 1, 1], [], []>} : vector<8x8xf32>, vector<8x16xf32>, vector<8x16xf32> -> vector<8x16xf32>
    %c1_67 = arith.constant 1 : index
    %c0_68 = arith.constant 0 : index
    %c0_69 = arith.constant 0 : index
    %114 = vector.load %arg8[%c1_67, %c0_68, %c0_69] : memref<2x16x32xf32, #tpu.memory_space<vmem>>, vector<1x16x32xf32>
    %115 = vector.shape_cast %114 : vector<1x16x32xf32> to vector<16x32xf32>
    %cst_70 = arith.constant dense<0.000000e+00> : vector<8x32xf32>
    %116 = tpu.matmul %113, %115, %cst_70 {dimension_numbers = #tpu.dot_dimension_numbers<[1], [0], [0], [1], [0, 0, 1, 1], [], []>} : vector<8x16xf32>, vector<16x32xf32>, vector<8x32xf32> -> vector<8x32xf32>
    %117 = arith.addf %97, %116 : vector<8x32xf32>
    %c0_71 = arith.constant 0 : index
    %c0_72 = arith.constant 0 : index
    %118 = vector.load %arg9[%c0_71, %c0_72] : memref<1x32xf32, #tpu.memory_space<vmem>>, vector<1x32xf32>
    %119 = vector.broadcast %118 : vector<1x32xf32> to vector<8x32xf32>
    %120 = arith.addf %117, %119 : vector<8x32xf32>
    %121 = arith.addf %3, %120 : vector<8x32xf32>
    %cst_73 = arith.constant dense<0.000000e+00> : vector<8xf32>
    %122 = vector.multi_reduction <add>, %121, %cst_73 [1] : vector<8x32xf32> to vector<8xf32>
    %123 = vector.shape_cast %122 : vector<8xf32> to vector<8x1xf32>
    %cst_74 = arith.constant 3.200000e+01 : f32
    %124 = vector.broadcast %cst_74 : f32 to vector<8x1xf32>
    %125 = arith.divf %123, %124 : vector<8x1xf32>
    %126 = vector.broadcast %125 : vector<8x1xf32> to vector<8x32xf32>
    %127 = arith.subf %121, %126 : vector<8x32xf32>
    %128 = vector.broadcast %125 : vector<8x1xf32> to vector<8x32xf32>
    %129 = arith.subf %121, %128 : vector<8x32xf32>
    %130 = arith.mulf %127, %129 : vector<8x32xf32>
    %cst_75 = arith.constant dense<0.000000e+00> : vector<8xf32>
    %131 = vector.multi_reduction <add>, %130, %cst_75 [1] : vector<8x32xf32> to vector<8xf32>
    %132 = vector.shape_cast %131 : vector<8xf32> to vector<8x1xf32>
    %cst_76 = arith.constant 3.200000e+01 : f32
    %133 = vector.broadcast %cst_76 : f32 to vector<8x1xf32>
    %134 = arith.divf %132, %133 : vector<8x1xf32>
    %135 = vector.broadcast %125 : vector<8x1xf32> to vector<8x32xf32>
    %136 = arith.subf %121, %135 : vector<8x32xf32>
    %cst_77 = arith.constant 9.99999997E-7 : f32
    %137 = vector.broadcast %cst_77 : f32 to vector<8x1xf32>
    %138 = arith.addf %134, %137 : vector<8x1xf32>
    %139 = math.rsqrt %138 : vector<8x1xf32>
    %140 = vector.broadcast %139 : vector<8x1xf32> to vector<8x32xf32>
    %141 = arith.mulf %136, %140 : vector<8x32xf32>
    %c0_78 = arith.constant 0 : index
    %c0_79 = arith.constant 0 : index
    %142 = vector.load %arg10[%c0_78, %c0_79] : memref<1x32xf32, #tpu.memory_space<vmem>>, vector<1x32xf32>
    %143 = vector.broadcast %142 : vector<1x32xf32> to vector<8x32xf32>
    %144 = arith.mulf %141, %143 : vector<8x32xf32>
    %c0_80 = arith.constant 0 : index
    %c0_81 = arith.constant 0 : index
    %145 = vector.load %arg11[%c0_80, %c0_81] : memref<1x32xf32, #tpu.memory_space<vmem>>, vector<1x32xf32>
    %146 = vector.broadcast %145 : vector<1x32xf32> to vector<8x32xf32>
    %147 = arith.addf %144, %146 : vector<8x32xf32>
    %c0_82 = arith.constant 0 : index
    %c0_83 = arith.constant 0 : index
    %148 = vector.load %arg12[%c0_82, %c0_83] : memref<32x64xf32, #tpu.memory_space<vmem>>, vector<32x64xf32>
    %cst_84 = arith.constant dense<0.000000e+00> : vector<8x64xf32>
    %149 = tpu.matmul %147, %148, %cst_84 {dimension_numbers = #tpu.dot_dimension_numbers<[1], [0], [0], [1], [0, 0, 1, 1], [], []>} : vector<8x32xf32>, vector<32x64xf32>, vector<8x64xf32> -> vector<8x64xf32>
    %c0_85 = arith.constant 0 : index
    %c0_86 = arith.constant 0 : index
    %150 = vector.load %arg13[%c0_85, %c0_86] : memref<1x64xf32, #tpu.memory_space<vmem>>, vector<1x64xf32>
    %151 = vector.broadcast %150 : vector<1x64xf32> to vector<8x64xf32>
    %152 = arith.addf %149, %151 : vector<8x64xf32>
    %cst_87 = arith.constant 0.000000e+00 : f32
    %153 = vector.broadcast %cst_87 : f32 to vector<8x64xf32>
    %154 = arith.maximumf %152, %153 : vector<8x64xf32>
    %c0_88 = arith.constant 0 : index
    %c0_89 = arith.constant 0 : index
    %155 = vector.load %arg14[%c0_88, %c0_89] : memref<64x32xf32, #tpu.memory_space<vmem>>, vector<64x32xf32>
    %cst_90 = arith.constant dense<0.000000e+00> : vector<8x32xf32>
    %156 = tpu.matmul %154, %155, %cst_90 {dimension_numbers = #tpu.dot_dimension_numbers<[1], [0], [0], [1], [0, 0, 1, 1], [], []>} : vector<8x64xf32>, vector<64x32xf32>, vector<8x32xf32> -> vector<8x32xf32>
    %c0_91 = arith.constant 0 : index
    %c0_92 = arith.constant 0 : index
    %157 = vector.load %arg15[%c0_91, %c0_92] : memref<1x32xf32, #tpu.memory_space<vmem>>, vector<1x32xf32>
    %158 = vector.broadcast %157 : vector<1x32xf32> to vector<8x32xf32>
    %159 = arith.addf %156, %158 : vector<8x32xf32>
    %160 = arith.addf %121, %159 : vector<8x32xf32>
    %cst_93 = arith.constant dense<0.000000e+00> : vector<8xf32>
    %161 = vector.multi_reduction <add>, %160, %cst_93 [1] : vector<8x32xf32> to vector<8xf32>
    %162 = vector.shape_cast %161 : vector<8xf32> to vector<8x1xf32>
    %cst_94 = arith.constant 3.200000e+01 : f32
    %163 = vector.broadcast %cst_94 : f32 to vector<8x1xf32>
    %164 = arith.divf %162, %163 : vector<8x1xf32>
    %165 = vector.broadcast %164 : vector<8x1xf32> to vector<8x32xf32>
    %166 = arith.subf %160, %165 : vector<8x32xf32>
    %167 = vector.broadcast %164 : vector<8x1xf32> to vector<8x32xf32>
    %168 = arith.subf %160, %167 : vector<8x32xf32>
    %169 = arith.mulf %166, %168 : vector<8x32xf32>
    %cst_95 = arith.constant dense<0.000000e+00> : vector<8xf32>
    %170 = vector.multi_reduction <add>, %169, %cst_95 [1] : vector<8x32xf32> to vector<8xf32>
    %171 = vector.shape_cast %170 : vector<8xf32> to vector<8x1xf32>
    %cst_96 = arith.constant 3.200000e+01 : f32
    %172 = vector.broadcast %cst_96 : f32 to vector<8x1xf32>
    %173 = arith.divf %171, %172 : vector<8x1xf32>
    %174 = vector.broadcast %164 : vector<8x1xf32> to vector<8x32xf32>
    %175 = arith.subf %160, %174 : vector<8x32xf32>
    %cst_97 = arith.constant 9.99999997E-7 : f32
    %176 = vector.broadcast %cst_97 : f32 to vector<8x1xf32>
    %177 = arith.addf %173, %176 : vector<8x1xf32>
    %178 = math.rsqrt %177 : vector<8x1xf32>
    %179 = vector.broadcast %178 : vector<8x1xf32> to vector<8x32xf32>
    %180 = arith.mulf %175, %179 : vector<8x32xf32>
    %c0_98 = arith.constant 0 : index
    %c0_99 = arith.constant 0 : index
    %181 = vector.load %arg16[%c0_98, %c0_99] : memref<1x32xf32, #tpu.memory_space<vmem>>, vector<1x32xf32>
    %182 = vector.broadcast %181 : vector<1x32xf32> to vector<8x32xf32>
    %183 = arith.mulf %180, %182 : vector<8x32xf32>
    %c0_100 = arith.constant 0 : index
    %c0_101 = arith.constant 0 : index
    %184 = vector.load %arg17[%c0_100, %c0_101] : memref<1x32xf32, #tpu.memory_space<vmem>>, vector<1x32xf32>
    %185 = vector.broadcast %184 : vector<1x32xf32> to vector<8x32xf32>
    %186 = arith.addf %183, %185 : vector<8x32xf32>
    %187 = tpu.iota {dimensions = array<i32: 0>} : vector<7x7xi32>
    %188 = tpu.iota {dimensions = array<i32: 1>} : vector<7x7xi32>
    %189 = arith.cmpi sle, %188, %187 : vector<7x7xi32>
    %190 = tpu.iota {dimensions = array<i32: 1>} : vector<7x8xi32>
    %191 = vector.broadcast %1 : i32 to vector<7x8xi32>
    %192 = arith.cmpi slt, %190, %191 : vector<7x8xi32>
    %cst_102 = arith.constant dense<0.000000e+00> : vector<7xf32>
    %193 = vector.multi_reduction <add>, %5, %cst_102 [1] : vector<7x32xf32> to vector<7xf32>
    %194 = vector.shape_cast %193 : vector<7xf32> to vector<7x1xf32>
    %cst_103 = arith.constant 3.200000e+01 : f32
    %195 = vector.broadcast %cst_103 : f32 to vector<7x1xf32>
    %196 = arith.divf %194, %195 : vector<7x1xf32>
    %197 = vector.broadcast %196 : vector<7x1xf32> to vector<7x32xf32>
    %198 = arith.subf %5, %197 : vector<7x32xf32>
    %199 = vector.broadcast %196 : vector<7x1xf32> to vector<7x32xf32>
    %200 = arith.subf %5, %199 : vector<7x32xf32>
    %201 = arith.mulf %198, %200 : vector<7x32xf32>
    %cst_104 = arith.constant dense<0.000000e+00> : vector<7xf32>
    %202 = vector.multi_reduction <add>, %201, %cst_104 [1] : vector<7x32xf32> to vector<7xf32>
    %203 = vector.shape_cast %202 : vector<7xf32> to vector<7x1xf32>
    %cst_105 = arith.constant 3.200000e+01 : f32
    %204 = vector.broadcast %cst_105 : f32 to vector<7x1xf32>
    %205 = arith.divf %203, %204 : vector<7x1xf32>
    %206 = vector.broadcast %196 : vector<7x1xf32> to vector<7x32xf32>
    %207 = arith.subf %5, %206 : vector<7x32xf32>
    %cst_106 = arith.constant 9.99999997E-7 : f32
    %208 = vector.broadcast %cst_106 : f32 to vector<7x1xf32>
    %209 = arith.addf %205, %208 : vector<7x1xf32>
    %210 = math.rsqrt %209 : vector<7x1xf32>
    %211 = vector.broadcast %210 : vector<7x1xf32> to vector<7x32xf32>
    %212 = arith.mulf %207, %211 : vector<7x32xf32>
    %c0_107 = arith.constant 0 : index
    %c0_108 = arith.constant 0 : index
    %213 = vector.load %arg18[%c0_107, %c0_108] : memref<1x32xf32, #tpu.memory_space<vmem>>, vector<1x32xf32>
    %214 = vector.broadcast %213 : vector<1x32xf32> to vector<7x32xf32>
    %215 = arith.mulf %212, %214 : vector<7x32xf32>
    %c0_109 = arith.constant 0 : index
    %c0_110 = arith.constant 0 : index
    %216 = vector.load %arg19[%c0_109, %c0_110] : memref<1x32xf32, #tpu.memory_space<vmem>>, vector<1x32xf32>
    %217 = vector.broadcast %216 : vector<1x32xf32> to vector<7x32xf32>
    %218 = arith.addf %215, %217 : vector<7x32xf32>
    %c0_111 = arith.constant 0 : index
    %c0_112 = arith.constant 0 : index
    %c0_113 = arith.constant 0 : index
    %219 = vector.load %arg20[%c0_111, %c0_112, %c0_113] : memref<6x32x16xf32, #tpu.memory_space<vmem>>, vector<1x32x16xf32>
    %220 = vector.shape_cast %219 : vector<1x32x16xf32> to vector<32x16xf32>
    %cst_114 = arith.constant dense<0.000000e+00> : vector<7x16xf32>
    %221 = tpu.matmul %218, %220, %cst_114 {dimension_numbers = #tpu.dot_dimension_numbers<[1], [0], [0], [1], [0, 0, 1, 1], [], []>} : vector<7x32xf32>, vector<32x16xf32>, vector<7x16xf32> -> vector<7x16xf32>
    %c0_115 = arith.constant 0 : index
    %c0_116 = arith.constant 0 : index
    %c0_117 = arith.constant 0 : index
    %222 = vector.load %arg21[%c0_115, %c0_116, %c0_117] : memref<6x1x16xf32, #tpu.memory_space<vmem>>, vector<1x1x16xf32>
    %223 = vector.shape_cast %222 : vector<1x1x16xf32> to vector<1x16xf32>
    %224 = vector.broadcast %223 : vector<1x16xf32> to vector<7x16xf32>
    %225 = arith.addf %221, %224 : vector<7x16xf32>
    %c1_118 = arith.constant 1 : index
    %c0_119 = arith.constant 0 : index
    %c0_120 = arith.constant 0 : index
    %226 = vector.load %arg20[%c1_118, %c0_119, %c0_120] : memref<6x32x16xf32, #tpu.memory_space<vmem>>, vector<1x32x16xf32>
    %227 = vector.shape_cast %226 : vector<1x32x16xf32> to vector<32x16xf32>
    %cst_121 = arith.constant dense<0.000000e+00> : vector<7x16xf32>
    %228 = tpu.matmul %218, %227, %cst_121 {dimension_numbers = #tpu.dot_dimension_numbers<[1], [0], [0], [1], [0, 0, 1, 1], [], []>} : vector<7x32xf32>, vector<32x16xf32>, vector<7x16xf32> -> vector<7x16xf32>
    %c1_122 = arith.constant 1 : index
    %c0_123 = arith.constant 0 : index
    %c0_124 = arith.constant 0 : index
    %229 = vector.load %arg21[%c1_122, %c0_123, %c0_124] : memref<6x1x16xf32, #tpu.memory_space<vmem>>, vector<1x1x16xf32>
    %230 = vector.shape_cast %229 : vector<1x1x16xf32> to vector<1x16xf32>
    %231 = vector.broadcast %230 : vector<1x16xf32> to vector<7x16xf32>
    %232 = arith.addf %228, %231 : vector<7x16xf32>
    %c2_125 = arith.constant 2 : index
    %c0_126 = arith.constant 0 : index
    %c0_127 = arith.constant 0 : index
    %233 = vector.load %arg20[%c2_125, %c0_126, %c0_127] : memref<6x32x16xf32, #tpu.memory_space<vmem>>, vector<1x32x16xf32>
    %234 = vector.shape_cast %233 : vector<1x32x16xf32> to vector<32x16xf32>
    %cst_128 = arith.constant dense<0.000000e+00> : vector<7x16xf32>
    %235 = tpu.matmul %218, %234, %cst_128 {dimension_numbers = #tpu.dot_dimension_numbers<[1], [0], [0], [1], [0, 0, 1, 1], [], []>} : vector<7x32xf32>, vector<32x16xf32>, vector<7x16xf32> -> vector<7x16xf32>
    %c2_129 = arith.constant 2 : index
    %c0_130 = arith.constant 0 : index
    %c0_131 = arith.constant 0 : index
    %236 = vector.load %arg21[%c2_129, %c0_130, %c0_131] : memref<6x1x16xf32, #tpu.memory_space<vmem>>, vector<1x1x16xf32>
    %237 = vector.shape_cast %236 : vector<1x1x16xf32> to vector<1x16xf32>
    %238 = vector.broadcast %237 : vector<1x16xf32> to vector<7x16xf32>
    %239 = arith.addf %235, %238 : vector<7x16xf32>
    %c3_132 = arith.constant 3 : index
    %c0_133 = arith.constant 0 : index
    %c0_134 = arith.constant 0 : index
    %240 = vector.load %arg20[%c3_132, %c0_133, %c0_134] : memref<6x32x16xf32, #tpu.memory_space<vmem>>, vector<1x32x16xf32>
    %241 = vector.shape_cast %240 : vector<1x32x16xf32> to vector<32x16xf32>
    %cst_135 = arith.constant dense<0.000000e+00> : vector<7x16xf32>
    %242 = tpu.matmul %218, %241, %cst_135 {dimension_numbers = #tpu.dot_dimension_numbers<[1], [0], [0], [1], [0, 0, 1, 1], [], []>} : vector<7x32xf32>, vector<32x16xf32>, vector<7x16xf32> -> vector<7x16xf32>
    %c3_136 = arith.constant 3 : index
    %c0_137 = arith.constant 0 : index
    %c0_138 = arith.constant 0 : index
    %243 = vector.load %arg21[%c3_136, %c0_137, %c0_138] : memref<6x1x16xf32, #tpu.memory_space<vmem>>, vector<1x1x16xf32>
    %244 = vector.shape_cast %243 : vector<1x1x16xf32> to vector<1x16xf32>
    %245 = vector.broadcast %244 : vector<1x16xf32> to vector<7x16xf32>
    %246 = arith.addf %242, %245 : vector<7x16xf32>
    %c4_139 = arith.constant 4 : index
    %c0_140 = arith.constant 0 : index
    %c0_141 = arith.constant 0 : index
    %247 = vector.load %arg20[%c4_139, %c0_140, %c0_141] : memref<6x32x16xf32, #tpu.memory_space<vmem>>, vector<1x32x16xf32>
    %248 = vector.shape_cast %247 : vector<1x32x16xf32> to vector<32x16xf32>
    %cst_142 = arith.constant dense<0.000000e+00> : vector<7x16xf32>
    %249 = tpu.matmul %218, %248, %cst_142 {dimension_numbers = #tpu.dot_dimension_numbers<[1], [0], [0], [1], [0, 0, 1, 1], [], []>} : vector<7x32xf32>, vector<32x16xf32>, vector<7x16xf32> -> vector<7x16xf32>
    %c4_143 = arith.constant 4 : index
    %c0_144 = arith.constant 0 : index
    %c0_145 = arith.constant 0 : index
    %250 = vector.load %arg21[%c4_143, %c0_144, %c0_145] : memref<6x1x16xf32, #tpu.memory_space<vmem>>, vector<1x1x16xf32>
    %251 = vector.shape_cast %250 : vector<1x1x16xf32> to vector<1x16xf32>
    %252 = vector.broadcast %251 : vector<1x16xf32> to vector<7x16xf32>
    %253 = arith.addf %249, %252 : vector<7x16xf32>
    %c5_146 = arith.constant 5 : index
    %c0_147 = arith.constant 0 : index
    %c0_148 = arith.constant 0 : index
    %254 = vector.load %arg20[%c5_146, %c0_147, %c0_148] : memref<6x32x16xf32, #tpu.memory_space<vmem>>, vector<1x32x16xf32>
    %255 = vector.shape_cast %254 : vector<1x32x16xf32> to vector<32x16xf32>
    %cst_149 = arith.constant dense<0.000000e+00> : vector<7x16xf32>
    %256 = tpu.matmul %218, %255, %cst_149 {dimension_numbers = #tpu.dot_dimension_numbers<[1], [0], [0], [1], [0, 0, 1, 1], [], []>} : vector<7x32xf32>, vector<32x16xf32>, vector<7x16xf32> -> vector<7x16xf32>
    %c5_150 = arith.constant 5 : index
    %c0_151 = arith.constant 0 : index
    %c0_152 = arith.constant 0 : index
    %257 = vector.load %arg21[%c5_150, %c0_151, %c0_152] : memref<6x1x16xf32, #tpu.memory_space<vmem>>, vector<1x1x16xf32>
    %258 = vector.shape_cast %257 : vector<1x1x16xf32> to vector<1x16xf32>
    %259 = vector.broadcast %258 : vector<1x16xf32> to vector<7x16xf32>
    %260 = arith.addf %256, %259 : vector<7x16xf32>
    %cst_153 = arith.constant 0.000000e+00 : f32
    %261 = vector.broadcast %cst_153 : f32 to vector<7x32xf32>
    %cst_154 = arith.constant dense<0.000000e+00> : vector<7x7xf32>
    %262 = tpu.matmul %225, %239, %cst_154 {dimension_numbers = #tpu.dot_dimension_numbers<[1], [1], [0], [0], [0, 0, 1, 0], [], []>} : vector<7x16xf32>, vector<7x16xf32>, vector<7x7xf32> -> vector<7x7xf32>
    %cst_155 = arith.constant 2.500000e-01 : f32
    %263 = vector.broadcast %cst_155 : f32 to vector<7x7xf32>
    %264 = arith.mulf %262, %263 : vector<7x7xf32>
    %cst_156 = arith.constant -1.000000e+09 : f32
    %265 = vector.broadcast %cst_156 : f32 to vector<7x7xf32>
    %266 = arith.select %189, %264, %265 : vector<7x7xi1>, vector<7x7xf32>
    %cst_157 = arith.constant dense<0xFF800000> : vector<7xf32>
    %267 = vector.multi_reduction <maximumf>, %266, %cst_157 [1] : vector<7x7xf32> to vector<7xf32>
    %268 = vector.shape_cast %267 : vector<7xf32> to vector<7x1xf32>
    %269 = vector.broadcast %268 : vector<7x1xf32> to vector<7x7xf32>
    %270 = arith.subf %266, %269 : vector<7x7xf32>
    %271 = math.exp %270 : vector<7x7xf32>
    %cst_158 = arith.constant dense<0.000000e+00> : vector<7xf32>
    %272 = vector.multi_reduction <add>, %271, %cst_158 [1] : vector<7x7xf32> to vector<7xf32>
    %273 = vector.shape_cast %272 : vector<7xf32> to vector<7x1xf32>
    %274 = tpu.reciprocal %273 {approx = true} : vector<7x1xf32> -> vector<7x1xf32>
    %275 = vector.broadcast %274 : vector<7x1xf32> to vector<7x7xf32>
    %276 = arith.mulf %271, %275 : vector<7x7xf32>
    %cst_159 = arith.constant dense<0.000000e+00> : vector<7x16xf32>
    %277 = tpu.matmul %276, %253, %cst_159 {dimension_numbers = #tpu.dot_dimension_numbers<[1], [0], [0], [1], [0, 0, 1, 1], [], []>} : vector<7x7xf32>, vector<7x16xf32>, vector<7x16xf32> -> vector<7x16xf32>
    %c0_160 = arith.constant 0 : index
    %c0_161 = arith.constant 0 : index
    %c0_162 = arith.constant 0 : index
    %278 = vector.load %arg22[%c0_160, %c0_161, %c0_162] : memref<2x16x32xf32, #tpu.memory_space<vmem>>, vector<1x16x32xf32>
    %279 = vector.shape_cast %278 : vector<1x16x32xf32> to vector<16x32xf32>
    %cst_163 = arith.constant dense<0.000000e+00> : vector<7x32xf32>
    %280 = tpu.matmul %277, %279, %cst_163 {dimension_numbers = #tpu.dot_dimension_numbers<[1], [0], [0], [1], [0, 0, 1, 1], [], []>} : vector<7x16xf32>, vector<16x32xf32>, vector<7x32xf32> -> vector<7x32xf32>
    %281 = arith.addf %261, %280 : vector<7x32xf32>
    %cst_164 = arith.constant dense<0.000000e+00> : vector<7x7xf32>
    %282 = tpu.matmul %232, %246, %cst_164 {dimension_numbers = #tpu.dot_dimension_numbers<[1], [1], [0], [0], [0, 0, 1, 0], [], []>} : vector<7x16xf32>, vector<7x16xf32>, vector<7x7xf32> -> vector<7x7xf32>
    %cst_165 = arith.constant 2.500000e-01 : f32
    %283 = vector.broadcast %cst_165 : f32 to vector<7x7xf32>
    %284 = arith.mulf %282, %283 : vector<7x7xf32>
    %cst_166 = arith.constant -1.000000e+09 : f32
    %285 = vector.broadcast %cst_166 : f32 to vector<7x7xf32>
    %286 = arith.select %189, %284, %285 : vector<7x7xi1>, vector<7x7xf32>
    %cst_167 = arith.constant dense<0xFF800000> : vector<7xf32>
    %287 = vector.multi_reduction <maximumf>, %286, %cst_167 [1] : vector<7x7xf32> to vector<7xf32>
    %288 = vector.shape_cast %287 : vector<7xf32> to vector<7x1xf32>
    %289 = vector.broadcast %288 : vector<7x1xf32> to vector<7x7xf32>
    %290 = arith.subf %286, %289 : vector<7x7xf32>
    %291 = math.exp %290 : vector<7x7xf32>
    %cst_168 = arith.constant dense<0.000000e+00> : vector<7xf32>
    %292 = vector.multi_reduction <add>, %291, %cst_168 [1] : vector<7x7xf32> to vector<7xf32>
    %293 = vector.shape_cast %292 : vector<7xf32> to vector<7x1xf32>
    %294 = tpu.reciprocal %293 {approx = true} : vector<7x1xf32> -> vector<7x1xf32>
    %295 = vector.broadcast %294 : vector<7x1xf32> to vector<7x7xf32>
    %296 = arith.mulf %291, %295 : vector<7x7xf32>
    %cst_169 = arith.constant dense<0.000000e+00> : vector<7x16xf32>
    %297 = tpu.matmul %296, %260, %cst_169 {dimension_numbers = #tpu.dot_dimension_numbers<[1], [0], [0], [1], [0, 0, 1, 1], [], []>} : vector<7x7xf32>, vector<7x16xf32>, vector<7x16xf32> -> vector<7x16xf32>
    %c1_170 = arith.constant 1 : index
    %c0_171 = arith.constant 0 : index
    %c0_172 = arith.constant 0 : index
    %298 = vector.load %arg22[%c1_170, %c0_171, %c0_172] : memref<2x16x32xf32, #tpu.memory_space<vmem>>, vector<1x16x32xf32>
    %299 = vector.shape_cast %298 : vector<1x16x32xf32> to vector<16x32xf32>
    %cst_173 = arith.constant dense<0.000000e+00> : vector<7x32xf32>
    %300 = tpu.matmul %297, %299, %cst_173 {dimension_numbers = #tpu.dot_dimension_numbers<[1], [0], [0], [1], [0, 0, 1, 1], [], []>} : vector<7x16xf32>, vector<16x32xf32>, vector<7x32xf32> -> vector<7x32xf32>
    %301 = arith.addf %281, %300 : vector<7x32xf32>
    %c0_174 = arith.constant 0 : index
    %c0_175 = arith.constant 0 : index
    %302 = vector.load %arg23[%c0_174, %c0_175] : memref<1x32xf32, #tpu.memory_space<vmem>>, vector<1x32xf32>
    %303 = vector.broadcast %302 : vector<1x32xf32> to vector<7x32xf32>
    %304 = arith.addf %301, %303 : vector<7x32xf32>
    %305 = arith.addf %5, %304 : vector<7x32xf32>
    %cst_176 = arith.constant dense<0.000000e+00> : vector<7xf32>
    %306 = vector.multi_reduction <add>, %305, %cst_176 [1] : vector<7x32xf32> to vector<7xf32>
    %307 = vector.shape_cast %306 : vector<7xf32> to vector<7x1xf32>
    %cst_177 = arith.constant 3.200000e+01 : f32
    %308 = vector.broadcast %cst_177 : f32 to vector<7x1xf32>
    %309 = arith.divf %307, %308 : vector<7x1xf32>
    %310 = vector.broadcast %309 : vector<7x1xf32> to vector<7x32xf32>
    %311 = arith.subf %305, %310 : vector<7x32xf32>
    %312 = vector.broadcast %309 : vector<7x1xf32> to vector<7x32xf32>
    %313 = arith.subf %305, %312 : vector<7x32xf32>
    %314 = arith.mulf %311, %313 : vector<7x32xf32>
    %cst_178 = arith.constant dense<0.000000e+00> : vector<7xf32>
    %315 = vector.multi_reduction <add>, %314, %cst_178 [1] : vector<7x32xf32> to vector<7xf32>
    %316 = vector.shape_cast %315 : vector<7xf32> to vector<7x1xf32>
    %cst_179 = arith.constant 3.200000e+01 : f32
    %317 = vector.broadcast %cst_179 : f32 to vector<7x1xf32>
    %318 = arith.divf %316, %317 : vector<7x1xf32>
    %319 = vector.broadcast %309 : vector<7x1xf32> to vector<7x32xf32>
    %320 = arith.subf %305, %319 : vector<7x32xf32>
    %cst_180 = arith.constant 9.99999997E-7 : f32
    %321 = vector.broadcast %cst_180 : f32 to vector<7x1xf32>
    %322 = arith.addf %318, %321 : vector<7x1xf32>
    %323 = math.rsqrt %322 : vector<7x1xf32>
    %324 = vector.broadcast %323 : vector<7x1xf32> to vector<7x32xf32>
    %325 = arith.mulf %320, %324 : vector<7x32xf32>
    %c0_181 = arith.constant 0 : index
    %c0_182 = arith.constant 0 : index
    %326 = vector.load %arg24[%c0_181, %c0_182] : memref<1x32xf32, #tpu.memory_space<vmem>>, vector<1x32xf32>
    %327 = vector.broadcast %326 : vector<1x32xf32> to vector<7x32xf32>
    %328 = arith.mulf %325, %327 : vector<7x32xf32>
    %c0_183 = arith.constant 0 : index
    %c0_184 = arith.constant 0 : index
    %329 = vector.load %arg25[%c0_183, %c0_184] : memref<1x32xf32, #tpu.memory_space<vmem>>, vector<1x32xf32>
    %330 = vector.broadcast %329 : vector<1x32xf32> to vector<7x32xf32>
    %331 = arith.addf %328, %330 : vector<7x32xf32>
    %c0_185 = arith.constant 0 : index
    %c0_186 = arith.constant 0 : index
    %c0_187 = arith.constant 0 : index
    %332 = vector.load %arg26[%c0_185, %c0_186, %c0_187] : memref<2x32x16xf32, #tpu.memory_space<vmem>>, vector<1x32x16xf32>
    %333 = vector.shape_cast %332 : vector<1x32x16xf32> to vector<32x16xf32>
    %cst_188 = arith.constant dense<0.000000e+00> : vector<7x16xf32>
    %334 = tpu.matmul %331, %333, %cst_188 {dimension_numbers = #tpu.dot_dimension_numbers<[1], [0], [0], [1], [0, 0, 1, 1], [], []>} : vector<7x32xf32>, vector<32x16xf32>, vector<7x16xf32> -> vector<7x16xf32>
    %c0_189 = arith.constant 0 : index
    %c0_190 = arith.constant 0 : index
    %c0_191 = arith.constant 0 : index
    %335 = vector.load %arg27[%c0_189, %c0_190, %c0_191] : memref<2x1x16xf32, #tpu.memory_space<vmem>>, vector<1x1x16xf32>
    %336 = vector.shape_cast %335 : vector<1x1x16xf32> to vector<1x16xf32>
    %337 = vector.broadcast %336 : vector<1x16xf32> to vector<7x16xf32>
    %338 = arith.addf %334, %337 : vector<7x16xf32>
    %c1_192 = arith.constant 1 : index
    %c0_193 = arith.constant 0 : index
    %c0_194 = arith.constant 0 : index
    %339 = vector.load %arg26[%c1_192, %c0_193, %c0_194] : memref<2x32x16xf32, #tpu.memory_space<vmem>>, vector<1x32x16xf32>
    %340 = vector.shape_cast %339 : vector<1x32x16xf32> to vector<32x16xf32>
    %cst_195 = arith.constant dense<0.000000e+00> : vector<7x16xf32>
    %341 = tpu.matmul %331, %340, %cst_195 {dimension_numbers = #tpu.dot_dimension_numbers<[1], [0], [0], [1], [0, 0, 1, 1], [], []>} : vector<7x32xf32>, vector<32x16xf32>, vector<7x16xf32> -> vector<7x16xf32>
    %c1_196 = arith.constant 1 : index
    %c0_197 = arith.constant 0 : index
    %c0_198 = arith.constant 0 : index
    %342 = vector.load %arg27[%c1_196, %c0_197, %c0_198] : memref<2x1x16xf32, #tpu.memory_space<vmem>>, vector<1x1x16xf32>
    %343 = vector.shape_cast %342 : vector<1x1x16xf32> to vector<1x16xf32>
    %344 = vector.broadcast %343 : vector<1x16xf32> to vector<7x16xf32>
    %345 = arith.addf %341, %344 : vector<7x16xf32>
    %c0_199 = arith.constant 0 : index
    %c0_200 = arith.constant 0 : index
    %c0_201 = arith.constant 0 : index
    %346 = vector.load %arg28[%c0_199, %c0_200, %c0_201] : memref<4x32x16xf32, #tpu.memory_space<vmem>>, vector<1x32x16xf32>
    %347 = vector.shape_cast %346 : vector<1x32x16xf32> to vector<32x16xf32>
    %cst_202 = arith.constant dense<0.000000e+00> : vector<8x16xf32>
    %348 = tpu.matmul %186, %347, %cst_202 {dimension_numbers = #tpu.dot_dimension_numbers<[1], [0], [0], [1], [0, 0, 1, 1], [], []>} : vector<8x32xf32>, vector<32x16xf32>, vector<8x16xf32> -> vector<8x16xf32>
    %c0_203 = arith.constant 0 : index
    %c0_204 = arith.constant 0 : index
    %c0_205 = arith.constant 0 : index
    %349 = vector.load %arg29[%c0_203, %c0_204, %c0_205] : memref<4x1x16xf32, #tpu.memory_space<vmem>>, vector<1x1x16xf32>
    %350 = vector.shape_cast %349 : vector<1x1x16xf32> to vector<1x16xf32>
    %351 = vector.broadcast %350 : vector<1x16xf32> to vector<8x16xf32>
    %352 = arith.addf %348, %351 : vector<8x16xf32>
    %c1_206 = arith.constant 1 : index
    %c0_207 = arith.constant 0 : index
    %c0_208 = arith.constant 0 : index
    %353 = vector.load %arg28[%c1_206, %c0_207, %c0_208] : memref<4x32x16xf32, #tpu.memory_space<vmem>>, vector<1x32x16xf32>
    %354 = vector.shape_cast %353 : vector<1x32x16xf32> to vector<32x16xf32>
    %cst_209 = arith.constant dense<0.000000e+00> : vector<8x16xf32>
    %355 = tpu.matmul %186, %354, %cst_209 {dimension_numbers = #tpu.dot_dimension_numbers<[1], [0], [0], [1], [0, 0, 1, 1], [], []>} : vector<8x32xf32>, vector<32x16xf32>, vector<8x16xf32> -> vector<8x16xf32>
    %c1_210 = arith.constant 1 : index
    %c0_211 = arith.constant 0 : index
    %c0_212 = arith.constant 0 : index
    %356 = vector.load %arg29[%c1_210, %c0_211, %c0_212] : memref<4x1x16xf32, #tpu.memory_space<vmem>>, vector<1x1x16xf32>
    %357 = vector.shape_cast %356 : vector<1x1x16xf32> to vector<1x16xf32>
    %358 = vector.broadcast %357 : vector<1x16xf32> to vector<8x16xf32>
    %359 = arith.addf %355, %358 : vector<8x16xf32>
    %c2_213 = arith.constant 2 : index
    %c0_214 = arith.constant 0 : index
    %c0_215 = arith.constant 0 : index
    %360 = vector.load %arg28[%c2_213, %c0_214, %c0_215] : memref<4x32x16xf32, #tpu.memory_space<vmem>>, vector<1x32x16xf32>
    %361 = vector.shape_cast %360 : vector<1x32x16xf32> to vector<32x16xf32>
    %cst_216 = arith.constant dense<0.000000e+00> : vector<8x16xf32>
    %362 = tpu.matmul %186, %361, %cst_216 {dimension_numbers = #tpu.dot_dimension_numbers<[1], [0], [0], [1], [0, 0, 1, 1], [], []>} : vector<8x32xf32>, vector<32x16xf32>, vector<8x16xf32> -> vector<8x16xf32>
    %c2_217 = arith.constant 2 : index
    %c0_218 = arith.constant 0 : index
    %c0_219 = arith.constant 0 : index
    %363 = vector.load %arg29[%c2_217, %c0_218, %c0_219] : memref<4x1x16xf32, #tpu.memory_space<vmem>>, vector<1x1x16xf32>
    %364 = vector.shape_cast %363 : vector<1x1x16xf32> to vector<1x16xf32>
    %365 = vector.broadcast %364 : vector<1x16xf32> to vector<8x16xf32>
    %366 = arith.addf %362, %365 : vector<8x16xf32>
    %c3_220 = arith.constant 3 : index
    %c0_221 = arith.constant 0 : index
    %c0_222 = arith.constant 0 : index
    %367 = vector.load %arg28[%c3_220, %c0_221, %c0_222] : memref<4x32x16xf32, #tpu.memory_space<vmem>>, vector<1x32x16xf32>
    %368 = vector.shape_cast %367 : vector<1x32x16xf32> to vector<32x16xf32>
    %cst_223 = arith.constant dense<0.000000e+00> : vector<8x16xf32>
    %369 = tpu.matmul %186, %368, %cst_223 {dimension_numbers = #tpu.dot_dimension_numbers<[1], [0], [0], [1], [0, 0, 1, 1], [], []>} : vector<8x32xf32>, vector<32x16xf32>, vector<8x16xf32> -> vector<8x16xf32>
    %c3_224 = arith.constant 3 : index
    %c0_225 = arith.constant 0 : index
    %c0_226 = arith.constant 0 : index
    %370 = vector.load %arg29[%c3_224, %c0_225, %c0_226] : memref<4x1x16xf32, #tpu.memory_space<vmem>>, vector<1x1x16xf32>
    %371 = vector.shape_cast %370 : vector<1x1x16xf32> to vector<1x16xf32>
    %372 = vector.broadcast %371 : vector<1x16xf32> to vector<8x16xf32>
    %373 = arith.addf %369, %372 : vector<8x16xf32>
    %cst_227 = arith.constant 0.000000e+00 : f32
    %374 = vector.broadcast %cst_227 : f32 to vector<7x32xf32>
    %cst_228 = arith.constant dense<0.000000e+00> : vector<7x8xf32>
    %375 = tpu.matmul %338, %352, %cst_228 {dimension_numbers = #tpu.dot_dimension_numbers<[1], [1], [0], [0], [0, 0, 1, 0], [], []>} : vector<7x16xf32>, vector<8x16xf32>, vector<7x8xf32> -> vector<7x8xf32>
    %cst_229 = arith.constant 2.500000e-01 : f32
    %376 = vector.broadcast %cst_229 : f32 to vector<7x8xf32>
    %377 = arith.mulf %375, %376 : vector<7x8xf32>
    %cst_230 = arith.constant -1.000000e+09 : f32
    %378 = vector.broadcast %cst_230 : f32 to vector<7x8xf32>
    %379 = arith.select %192, %377, %378 : vector<7x8xi1>, vector<7x8xf32>
    %cst_231 = arith.constant dense<0xFF800000> : vector<7xf32>
    %380 = vector.multi_reduction <maximumf>, %379, %cst_231 [1] : vector<7x8xf32> to vector<7xf32>
    %381 = vector.shape_cast %380 : vector<7xf32> to vector<7x1xf32>
    %382 = vector.broadcast %381 : vector<7x1xf32> to vector<7x8xf32>
    %383 = arith.subf %379, %382 : vector<7x8xf32>
    %384 = math.exp %383 : vector<7x8xf32>
    %cst_232 = arith.constant dense<0.000000e+00> : vector<7xf32>
    %385 = vector.multi_reduction <add>, %384, %cst_232 [1] : vector<7x8xf32> to vector<7xf32>
    %386 = vector.shape_cast %385 : vector<7xf32> to vector<7x1xf32>
    %387 = tpu.reciprocal %386 {approx = true} : vector<7x1xf32> -> vector<7x1xf32>
    %388 = vector.broadcast %387 : vector<7x1xf32> to vector<7x8xf32>
    %389 = arith.mulf %384, %388 : vector<7x8xf32>
    %cst_233 = arith.constant dense<0.000000e+00> : vector<7x16xf32>
    %390 = tpu.matmul %389, %366, %cst_233 {dimension_numbers = #tpu.dot_dimension_numbers<[1], [0], [0], [1], [0, 0, 1, 1], [], []>} : vector<7x8xf32>, vector<8x16xf32>, vector<7x16xf32> -> vector<7x16xf32>
    %c0_234 = arith.constant 0 : index
    %c0_235 = arith.constant 0 : index
    %c0_236 = arith.constant 0 : index
    %391 = vector.load %arg30[%c0_234, %c0_235, %c0_236] : memref<2x16x32xf32, #tpu.memory_space<vmem>>, vector<1x16x32xf32>
    %392 = vector.shape_cast %391 : vector<1x16x32xf32> to vector<16x32xf32>
    %cst_237 = arith.constant dense<0.000000e+00> : vector<7x32xf32>
    %393 = tpu.matmul %390, %392, %cst_237 {dimension_numbers = #tpu.dot_dimension_numbers<[1], [0], [0], [1], [0, 0, 1, 1], [], []>} : vector<7x16xf32>, vector<16x32xf32>, vector<7x32xf32> -> vector<7x32xf32>
    %394 = arith.addf %374, %393 : vector<7x32xf32>
    %cst_238 = arith.constant dense<0.000000e+00> : vector<7x8xf32>
    %395 = tpu.matmul %345, %359, %cst_238 {dimension_numbers = #tpu.dot_dimension_numbers<[1], [1], [0], [0], [0, 0, 1, 0], [], []>} : vector<7x16xf32>, vector<8x16xf32>, vector<7x8xf32> -> vector<7x8xf32>
    %cst_239 = arith.constant 2.500000e-01 : f32
    %396 = vector.broadcast %cst_239 : f32 to vector<7x8xf32>
    %397 = arith.mulf %395, %396 : vector<7x8xf32>
    %cst_240 = arith.constant -1.000000e+09 : f32
    %398 = vector.broadcast %cst_240 : f32 to vector<7x8xf32>
    %399 = arith.select %192, %397, %398 : vector<7x8xi1>, vector<7x8xf32>
    %cst_241 = arith.constant dense<0xFF800000> : vector<7xf32>
    %400 = vector.multi_reduction <maximumf>, %399, %cst_241 [1] : vector<7x8xf32> to vector<7xf32>
    %401 = vector.shape_cast %400 : vector<7xf32> to vector<7x1xf32>
    %402 = vector.broadcast %401 : vector<7x1xf32> to vector<7x8xf32>
    %403 = arith.subf %399, %402 : vector<7x8xf32>
    %404 = math.exp %403 : vector<7x8xf32>
    %cst_242 = arith.constant dense<0.000000e+00> : vector<7xf32>
    %405 = vector.multi_reduction <add>, %404, %cst_242 [1] : vector<7x8xf32> to vector<7xf32>
    %406 = vector.shape_cast %405 : vector<7xf32> to vector<7x1xf32>
    %407 = tpu.reciprocal %406 {approx = true} : vector<7x1xf32> -> vector<7x1xf32>
    %408 = vector.broadcast %407 : vector<7x1xf32> to vector<7x8xf32>
    %409 = arith.mulf %404, %408 : vector<7x8xf32>
    %cst_243 = arith.constant dense<0.000000e+00> : vector<7x16xf32>
    %410 = tpu.matmul %409, %373, %cst_243 {dimension_numbers = #tpu.dot_dimension_numbers<[1], [0], [0], [1], [0, 0, 1, 1], [], []>} : vector<7x8xf32>, vector<8x16xf32>, vector<7x16xf32> -> vector<7x16xf32>
    %c1_244 = arith.constant 1 : index
    %c0_245 = arith.constant 0 : index
    %c0_246 = arith.constant 0 : index
    %411 = vector.load %arg30[%c1_244, %c0_245, %c0_246] : memref<2x16x32xf32, #tpu.memory_space<vmem>>, vector<1x16x32xf32>
    %412 = vector.shape_cast %411 : vector<1x16x32xf32> to vector<16x32xf32>
    %cst_247 = arith.constant dense<0.000000e+00> : vector<7x32xf32>
    %413 = tpu.matmul %410, %412, %cst_247 {dimension_numbers = #tpu.dot_dimension_numbers<[1], [0], [0], [1], [0, 0, 1, 1], [], []>} : vector<7x16xf32>, vector<16x32xf32>, vector<7x32xf32> -> vector<7x32xf32>
    %414 = arith.addf %394, %413 : vector<7x32xf32>
    %c0_248 = arith.constant 0 : index
    %c0_249 = arith.constant 0 : index
    %415 = vector.load %arg31[%c0_248, %c0_249] : memref<1x32xf32, #tpu.memory_space<vmem>>, vector<1x32xf32>
    %416 = vector.broadcast %415 : vector<1x32xf32> to vector<7x32xf32>
    %417 = arith.addf %414, %416 : vector<7x32xf32>
    %418 = arith.addf %305, %417 : vector<7x32xf32>
    %cst_250 = arith.constant dense<0.000000e+00> : vector<7xf32>
    %419 = vector.multi_reduction <add>, %418, %cst_250 [1] : vector<7x32xf32> to vector<7xf32>
    %420 = vector.shape_cast %419 : vector<7xf32> to vector<7x1xf32>
    %cst_251 = arith.constant 3.200000e+01 : f32
    %421 = vector.broadcast %cst_251 : f32 to vector<7x1xf32>
    %422 = arith.divf %420, %421 : vector<7x1xf32>
    %423 = vector.broadcast %422 : vector<7x1xf32> to vector<7x32xf32>
    %424 = arith.subf %418, %423 : vector<7x32xf32>
    %425 = vector.broadcast %422 : vector<7x1xf32> to vector<7x32xf32>
    %426 = arith.subf %418, %425 : vector<7x32xf32>
    %427 = arith.mulf %424, %426 : vector<7x32xf32>
    %cst_252 = arith.constant dense<0.000000e+00> : vector<7xf32>
    %428 = vector.multi_reduction <add>, %427, %cst_252 [1] : vector<7x32xf32> to vector<7xf32>
    %429 = vector.shape_cast %428 : vector<7xf32> to vector<7x1xf32>
    %cst_253 = arith.constant 3.200000e+01 : f32
    %430 = vector.broadcast %cst_253 : f32 to vector<7x1xf32>
    %431 = arith.divf %429, %430 : vector<7x1xf32>
    %432 = vector.broadcast %422 : vector<7x1xf32> to vector<7x32xf32>
    %433 = arith.subf %418, %432 : vector<7x32xf32>
    %cst_254 = arith.constant 9.99999997E-7 : f32
    %434 = vector.broadcast %cst_254 : f32 to vector<7x1xf32>
    %435 = arith.addf %431, %434 : vector<7x1xf32>
    %436 = math.rsqrt %435 : vector<7x1xf32>
    %437 = vector.broadcast %436 : vector<7x1xf32> to vector<7x32xf32>
    %438 = arith.mulf %433, %437 : vector<7x32xf32>
    %c0_255 = arith.constant 0 : index
    %c0_256 = arith.constant 0 : index
    %439 = vector.load %arg32[%c0_255, %c0_256] : memref<1x32xf32, #tpu.memory_space<vmem>>, vector<1x32xf32>
    %440 = vector.broadcast %439 : vector<1x32xf32> to vector<7x32xf32>
    %441 = arith.mulf %438, %440 : vector<7x32xf32>
    %c0_257 = arith.constant 0 : index
    %c0_258 = arith.constant 0 : index
    %442 = vector.load %arg33[%c0_257, %c0_258] : memref<1x32xf32, #tpu.memory_space<vmem>>, vector<1x32xf32>
    %443 = vector.broadcast %442 : vector<1x32xf32> to vector<7x32xf32>
    %444 = arith.addf %441, %443 : vector<7x32xf32>
    %c0_259 = arith.constant 0 : index
    %c0_260 = arith.constant 0 : index
    %445 = vector.load %arg34[%c0_259, %c0_260] : memref<32x64xf32, #tpu.memory_space<vmem>>, vector<32x64xf32>
    %cst_261 = arith.constant dense<0.000000e+00> : vector<7x64xf32>
    %446 = tpu.matmul %444, %445, %cst_261 {dimension_numbers = #tpu.dot_dimension_numbers<[1], [0], [0], [1], [0, 0, 1, 1], [], []>} : vector<7x32xf32>, vector<32x64xf32>, vector<7x64xf32> -> vector<7x64xf32>
    %c0_262 = arith.constant 0 : index
    %c0_263 = arith.constant 0 : index
    %447 = vector.load %arg35[%c0_262, %c0_263] : memref<1x64xf32, #tpu.memory_space<vmem>>, vector<1x64xf32>
    %448 = vector.broadcast %447 : vector<1x64xf32> to vector<7x64xf32>
    %449 = arith.addf %446, %448 : vector<7x64xf32>
    %cst_264 = arith.constant 0.000000e+00 : f32
    %450 = vector.broadcast %cst_264 : f32 to vector<7x64xf32>
    %451 = arith.maximumf %449, %450 : vector<7x64xf32>
    %c0_265 = arith.constant 0 : index
    %c0_266 = arith.constant 0 : index
    %452 = vector.load %arg36[%c0_265, %c0_266] : memref<64x32xf32, #tpu.memory_space<vmem>>, vector<64x32xf32>
    %cst_267 = arith.constant dense<0.000000e+00> : vector<7x32xf32>
    %453 = tpu.matmul %451, %452, %cst_267 {dimension_numbers = #tpu.dot_dimension_numbers<[1], [0], [0], [1], [0, 0, 1, 1], [], []>} : vector<7x64xf32>, vector<64x32xf32>, vector<7x32xf32> -> vector<7x32xf32>
    %c0_268 = arith.constant 0 : index
    %c0_269 = arith.constant 0 : index
    %454 = vector.load %arg37[%c0_268, %c0_269] : memref<1x32xf32, #tpu.memory_space<vmem>>, vector<1x32xf32>
    %455 = vector.broadcast %454 : vector<1x32xf32> to vector<7x32xf32>
    %456 = arith.addf %453, %455 : vector<7x32xf32>
    %457 = arith.addf %418, %456 : vector<7x32xf32>
    %cst_270 = arith.constant dense<0.000000e+00> : vector<7xf32>
    %458 = vector.multi_reduction <add>, %457, %cst_270 [1] : vector<7x32xf32> to vector<7xf32>
    %459 = vector.shape_cast %458 : vector<7xf32> to vector<7x1xf32>
    %cst_271 = arith.constant 3.200000e+01 : f32
    %460 = vector.broadcast %cst_271 : f32 to vector<7x1xf32>
    %461 = arith.divf %459, %460 : vector<7x1xf32>
    %462 = vector.broadcast %461 : vector<7x1xf32> to vector<7x32xf32>
    %463 = arith.subf %457, %462 : vector<7x32xf32>
    %464 = vector.broadcast %461 : vector<7x1xf32> to vector<7x32xf32>
    %465 = arith.subf %457, %464 : vector<7x32xf32>
    %466 = arith.mulf %463, %465 : vector<7x32xf32>
    %cst_272 = arith.constant dense<0.000000e+00> : vector<7xf32>
    %467 = vector.multi_reduction <add>, %466, %cst_272 [1] : vector<7x32xf32> to vector<7xf32>
    %468 = vector.shape_cast %467 : vector<7xf32> to vector<7x1xf32>
    %cst_273 = arith.constant 3.200000e+01 : f32
    %469 = vector.broadcast %cst_273 : f32 to vector<7x1xf32>
    %470 = arith.divf %468, %469 : vector<7x1xf32>
    %471 = vector.broadcast %461 : vector<7x1xf32> to vector<7x32xf32>
    %472 = arith.subf %457, %471 : vector<7x32xf32>
    %cst_274 = arith.constant 9.99999997E-7 : f32
    %473 = vector.broadcast %cst_274 : f32 to vector<7x1xf32>
    %474 = arith.addf %470, %473 : vector<7x1xf32>
    %475 = math.rsqrt %474 : vector<7x1xf32>
    %476 = vector.broadcast %475 : vector<7x1xf32> to vector<7x32xf32>
    %477 = arith.mulf %472, %476 : vector<7x32xf32>
    %c0_275 = arith.constant 0 : index
    %c0_276 = arith.constant 0 : index
    %478 = vector.load %arg38[%c0_275, %c0_276] : memref<1x32xf32, #tpu.memory_space<vmem>>, vector<1x32xf32>
    %479 = vector.broadcast %478 : vector<1x32xf32> to vector<7x32xf32>
    %480 = arith.mulf %477, %479 : vector<7x32xf32>
    %c0_277 = arith.constant 0 : index
    %c0_278 = arith.constant 0 : index
    %481 = vector.load %arg39[%c0_277, %c0_278] : memref<1x32xf32, #tpu.memory_space<vmem>>, vector<1x32xf32>
    %482 = vector.broadcast %481 : vector<1x32xf32> to vector<7x32xf32>
    %483 = arith.addf %480, %482 : vector<7x32xf32>
    %c0_279 = arith.constant 0 : index
    %c0_280 = arith.constant 0 : index
    %c0_281 = arith.constant 0 : index
    %484 = vector.load %arg40[%c0_279, %c0_280, %c0_281] : memref<1x7x32xf32, #tpu.memory_space<vmem>>, vector<1x7x32xf32>
    %485 = vector.shape_cast %484 : vector<1x7x32xf32> to vector<7x32xf32>
    %486 = vector.shape_cast %483 : vector<7x32xf32> to vector<1x7x32xf32>
    tpu.vector_store %arg40[%c0_279, %c0_280, %c0_281], %486 {strides = array<i32>} : memref<1x7x32xf32, #tpu.memory_space<vmem>>, vector<1x7x32xf32>,
    %c0_282 = arith.constant 0 : index
    %c0_283 = arith.constant 0 : index
    %c0_284 = arith.constant 0 : index
    %487 = vector.load %arg41[%c0_282, %c0_283, %c0_284] : memref<1x7x8xf32, #tpu.memory_space<vmem>>, vector<1x7x8xf32>
    %488 = vector.shape_cast %487 : vector<1x7x8xf32> to vector<7x8xf32>
    %489 = vector.shape_cast %389 : vector<7x8xf32> to vector<1x7x8xf32>
    tpu.vector_store %arg41[%c0_282, %c0_283, %c0_284], %489 {strides = array<i32>} : memref<1x7x8xf32, #tpu.memory_space<vmem>>, vector<1x7x8xf32>,
    return
  }
  func.func @transform_0(%arg0: i32, %arg1: memref<2xi32, #tpu.memory_space<smem>>) -> (i32, i32, i32) {
    %c0_i32 = arith.constant 0 : i32
    %c0_i32_0 = arith.constant 0 : i32
    %c0_i32_1 = arith.constant 0 : i32
    return %arg0, %c0_i32, %c0_i32_0 : i32, i32, i32
  }
  func.func @transform_1(%arg0: i32, %arg1: memref<2xi32, #tpu.memory_space<smem>>) -> (i32, i32, i32) {
    %c0_i32 = arith.constant 0 : i32
    %c0_i32_0 = arith.constant 0 : i32
    %c0_i32_1 = arith.constant 0 : i32
    return %arg0, %c0_i32, %c0_i32_0 : i32, i32, i32
  }
  func.func @transform_2(%arg0: i32, %arg1: memref<2xi32, #tpu.memory_space<smem>>) -> (i32, i32) {
    %c0_i32 = arith.constant 0 : i32
    %c0_i32_0 = arith.constant 0 : i32
    %c0_i32_1 = arith.constant 0 : i32
    return %c0_i32, %c0_i32_0 : i32, i32
  }
  func.func @transform_3(%arg0: i32, %arg1: memref<2xi32, #tpu.memory_space<smem>>) -> (i32, i32) {
    %c0_i32 = arith.constant 0 : i32
    %c0_i32_0 = arith.constant 0 : i32
    %c0_i32_1 = arith.constant 0 : i32
    return %c0_i32, %c0_i32_0 : i32, i32
  }
  func.func @transform_4(%arg0: i32, %arg1: memref<2xi32, #tpu.memory_space<smem>>) -> (i32, i32, i32) {
    %c0_i32 = arith.constant 0 : i32
    %c0_i32_0 = arith.constant 0 : i32
    %c0_i32_1 = arith.constant 0 : i32
    %c0_i32_2 = arith.constant 0 : i32
    return %c0_i32, %c0_i32_0, %c0_i32_1 : i32, i32, i32
  }
  func.func @transform_5(%arg0: i32, %arg1: memref<2xi32, #tpu.memory_space<smem>>) -> (i32, i32, i32) {
    %c0_i32 = arith.constant 0 : i32
    %c0_i32_0 = arith.constant 0 : i32
    %c0_i32_1 = arith.constant 0 : i32
    %c0_i32_2 = arith.constant 0 : i32
    return %c0_i32, %c0_i32_0, %c0_i32_1 : i32, i32, i32
  }
  func.func @transform_6(%arg0: i32, %arg1: memref<2xi32, #tpu.memory_space<smem>>) -> (i32, i32, i32) {
    %c0_i32 = arith.constant 0 : i32
    %c0_i32_0 = arith.constant 0 : i32
    %c0_i32_1 = arith.constant 0 : i32
    %c0_i32_2 = arith.constant 0 : i32
    return %c0_i32, %c0_i32_0, %c0_i32_1 : i32, i32, i32
  }
  func.func @transform_7(%arg0: i32, %arg1: memref<2xi32, #tpu.memory_space<smem>>) -> (i32, i32) {
    %c0_i32 = arith.constant 0 : i32
    %c0_i32_0 = arith.constant 0 : i32
    %c0_i32_1 = arith.constant 0 : i32
    return %c0_i32, %c0_i32_0 : i32, i32
  }
  func.func @transform_8(%arg0: i32, %arg1: memref<2xi32, #tpu.memory_space<smem>>) -> (i32, i32) {
    %c0_i32 = arith.constant 0 : i32
    %c0_i32_0 = arith.constant 0 : i32
    %c0_i32_1 = arith.constant 0 : i32
    return %c0_i32, %c0_i32_0 : i32, i32
  }
  func.func @transform_9(%arg0: i32, %arg1: memref<2xi32, #tpu.memory_space<smem>>) -> (i32, i32) {
    %c0_i32 = arith.constant 0 : i32
    %c0_i32_0 = arith.constant 0 : i32
    %c0_i32_1 = arith.constant 0 : i32
    return %c0_i32, %c0_i32_0 : i32, i32
  }
  func.func @transform_10(%arg0: i32, %arg1: memref<2xi32, #tpu.memory_space<smem>>) -> (i32, i32) {
    %c0_i32 = arith.constant 0 : i32
    %c0_i32_0 = arith.constant 0 : i32
    %c0_i32_1 = arith.constant 0 : i32
    return %c0_i32, %c0_i32_0 : i32, i32
  }
  func.func @transform_11(%arg0: i32, %arg1: memref<2xi32, #tpu.memory_space<smem>>) -> (i32, i32) {
    %c0_i32 = arith.constant 0 : i32
    %c0_i32_0 = arith.constant 0 : i32
    %c0_i32_1 = arith.constant 0 : i32
    return %c0_i32, %c0_i32_0 : i32, i32
  }
  func.func @transform_12(%arg0: i32, %arg1: memref<2xi32, #tpu.memory_space<smem>>) -> (i32, i32) {
    %c0_i32 = arith.constant 0 : i32
    %c0_i32_0 = arith.constant 0 : i32
    %c0_i32_1 = arith.constant 0 : i32
    return %c0_i32, %c0_i32_0 : i32, i32
  }
  func.func @transform_13(%arg0: i32, %arg1: memref<2xi32, #tpu.memory_space<smem>>) -> (i32, i32) {
    %c0_i32 = arith.constant 0 : i32
    %c0_i32_0 = arith.constant 0 : i32
    %c0_i32_1 = arith.constant 0 : i32
    return %c0_i32, %c0_i32_0 : i32, i32
  }
  func.func @transform_14(%arg0: i32, %arg1: memref<2xi32, #tpu.memory_space<smem>>) -> (i32, i32) {
    %c0_i32 = arith.constant 0 : i32
    %c0_i32_0 = arith.constant 0 : i32
    %c0_i32_1 = arith.constant 0 : i32
    return %c0_i32, %c0_i32_0 : i32, i32
  }
  func.func @transform_15(%arg0: i32, %arg1: memref<2xi32, #tpu.memory_space<smem>>) -> (i32, i32) {
    %c0_i32 = arith.constant 0 : i32
    %c0_i32_0 = arith.constant 0 : i32
    %c0_i32_1 = arith.constant 0 : i32
    return %c0_i32, %c0_i32_0 : i32, i32
  }
  func.func @transform_16(%arg0: i32, %arg1: memref<2xi32, #tpu.memory_space<smem>>) -> (i32, i32) {
    %c0_i32 = arith.constant 0 : i32
    %c0_i32_0 = arith.constant 0 : i32
    %c0_i32_1 = arith.constant 0 : i32
    return %c0_i32, %c0_i32_0 : i32, i32
  }
  func.func @transform_17(%arg0: i32, %arg1: memref<2xi32, #tpu.memory_space<smem>>) -> (i32, i32) {
    %c0_i32 = arith.constant 0 : i32
    %c0_i32_0 = arith.constant 0 : i32
    %c0_i32_1 = arith.constant 0 : i32
    return %c0_i32, %c0_i32_0 : i32, i32
  }
  func.func @transform_18(%arg0: i32, %arg1: memref<2xi32, #tpu.memory_space<smem>>) -> (i32, i32, i32) {
    %c0_i32 = arith.constant 0 : i32
    %c0_i32_0 = arith.constant 0 : i32
    %c0_i32_1 = arith.constant 0 : i32
    %c0_i32_2 = arith.constant 0 : i32
    return %c0_i32, %c0_i32_0, %c0_i32_1 : i32, i32, i32
  }
  func.func @transform_19(%arg0: i32, %arg1: memref<2xi32, #tpu.memory_space<smem>>) -> (i32, i32, i32) {
    %c0_i32 = arith.constant 0 : i32
    %c0_i32_0 = arith.constant 0 : i32
    %c0_i32_1 = arith.constant 0 : i32
    %c0_i32_2 = arith.constant 0 : i32
    return %c0_i32, %c0_i32_0, %c0_i32_1 : i32, i32, i32
  }
  func.func @transform_20(%arg0: i32, %arg1: memref<2xi32, #tpu.memory_space<smem>>) -> (i32, i32, i32) {
    %c0_i32 = arith.constant 0 : i32
    %c0_i32_0 = arith.constant 0 : i32
    %c0_i32_1 = arith.constant 0 : i32
    %c0_i32_2 = arith.constant 0 : i32
    return %c0_i32, %c0_i32_0, %c0_i32_1 : i32, i32, i32
  }
  func.func @transform_21(%arg0: i32, %arg1: memref<2xi32, #tpu.memory_space<smem>>) -> (i32, i32) {
    %c0_i32 = arith.constant 0 : i32
    %c0_i32_0 = arith.constant 0 : i32
    %c0_i32_1 = arith.constant 0 : i32
    return %c0_i32, %c0_i32_0 : i32, i32
  }
  func.func @transform_22(%arg0: i32, %arg1: memref<2xi32, #tpu.memory_space<smem>>) -> (i32, i32) {
    %c0_i32 = arith.constant 0 : i32
    %c0_i32_0 = arith.constant 0 : i32
    %c0_i32_1 = arith.constant 0 : i32
    return %c0_i32, %c0_i32_0 : i32, i32
  }
  func.func @transform_23(%arg0: i32, %arg1: memref<2xi32, #tpu.memory_space<smem>>) -> (i32, i32) {
    %c0_i32 = arith.constant 0 : i32
    %c0_i32_0 = arith.constant 0 : i32
    %c0_i32_1 = arith.constant 0 : i32
    return %c0_i32, %c0_i32_0 : i32, i32
  }
  func.func @transform_24(%arg0: i32, %arg1: memref<2xi32, #tpu.memory_space<smem>>) -> (i32, i32, i32) {
    %c0_i32 = arith.constant 0 : i32
    %c0_i32_0 = arith.constant 0 : i32
    %c0_i32_1 = arith.constant 0 : i32
    %c0_i32_2 = arith.constant 0 : i32
    return %c0_i32, %c0_i32_0, %c0_i32_1 : i32, i32, i32
  }
  func.func @transform_25(%arg0: i32, %arg1: memref<2xi32, #tpu.memory_space<smem>>) -> (i32, i32, i32) {
    %c0_i32 = arith.constant 0 : i32
    %c0_i32_0 = arith.constant 0 : i32
    %c0_i32_1 = arith.constant 0 : i32
    %c0_i32_2 = arith.constant 0 : i32
    return %c0_i32, %c0_i32_0, %c0_i32_1 : i32, i32, i32
  }
  func.func @transform_26(%arg0: i32, %arg1: memref<2xi32, #tpu.memory_space<smem>>) -> (i32, i32, i32) {
    %c0_i32 = arith.constant 0 : i32
    %c0_i32_0 = arith.constant 0 : i32
    %c0_i32_1 = arith.constant 0 : i32
    %c0_i32_2 = arith.constant 0 : i32
    return %c0_i32, %c0_i32_0, %c0_i32_1 : i32, i32, i32
  }
  func.func @transform_27(%arg0: i32, %arg1: memref<2xi32, #tpu.memory_space<smem>>) -> (i32, i32, i32) {
    %c0_i32 = arith.constant 0 : i32
    %c0_i32_0 = arith.constant 0 : i32
    %c0_i32_1 = arith.constant 0 : i32
    %c0_i32_2 = arith.constant 0 : i32
    return %c0_i32, %c0_i32_0, %c0_i32_1 : i32, i32, i32
  }
  func.func @transform_28(%arg0: i32, %arg1: memref<2xi32, #tpu.memory_space<smem>>) -> (i32, i32, i32) {
    %c0_i32 = arith.constant 0 : i32
    %c0_i32_0 = arith.constant 0 : i32
    %c0_i32_1 = arith.constant 0 : i32
    %c0_i32_2 = arith.constant 0 : i32
    return %c0_i32, %c0_i32_0, %c0_i32_1 : i32, i32, i32
  }
  func.func @transform_29(%arg0: i32, %arg1: memref<2xi32, #tpu.memory_space<smem>>) -> (i32, i32) {
    %c0_i32 = arith.constant 0 : i32
    %c0_i32_0 = arith.constant 0 : i32
    %c0_i32_1 = arith.constant 0 : i32
    return %c0_i32, %c0_i32_0 : i32, i32
  }
  func.func @transform_30(%arg0: i32, %arg1: memref<2xi32, #tpu.memory_space<smem>>) -> (i32, i32) {
    %c0_i32 = arith.constant 0 : i32
    %c0_i32_0 = arith.constant 0 : i32
    %c0_i32_1 = arith.constant 0 : i32
    return %c0_i32, %c0_i32_0 : i32, i32
  }
  func.func @transform_31(%arg0: i32, %arg1: memref<2xi32, #tpu.memory_space<smem>>) -> (i32, i32) {
    %c0_i32 = arith.constant 0 : i32
    %c0_i32_0 = arith.constant 0 : i32
    %c0_i32_1 = arith.constant 0 : i32
    return %c0_i32, %c0_i32_0 : i32, i32
  }
  func.func @transform_32(%arg0: i32, %arg1: memref<2xi32, #tpu.memory_space<smem>>) -> (i32, i32) {
    %c0_i32 = arith.constant 0 : i32
    %c0_i32_0 = arith.constant 0 : i32
    %c0_i32_1 = arith.constant 0 : i32
    return %c0_i32, %c0_i32_0 : i32, i32
  }
  func.func @transform_33(%arg0: i32, %arg1: memref<2xi32, #tpu.memory_space<smem>>) -> (i32, i32) {
    %c0_i32 = arith.constant 0 : i32
    %c0_i32_0 = arith.constant 0 : i32
    %c0_i32_1 = arith.constant 0 : i32
    return %c0_i32, %c0_i32_0 : i32, i32
  }
  func.func @transform_34(%arg0: i32, %arg1: memref<2xi32, #tpu.memory_space<smem>>) -> (i32, i32) {
    %c0_i32 = arith.constant 0 : i32
    %c0_i32_0 = arith.constant 0 : i32
    %c0_i32_1 = arith.constant 0 : i32
    return %c0_i32, %c0_i32_0 : i32, i32
  }
  func.func @transform_35(%arg0: i32, %arg1: memref<2xi32, #tpu.memory_space<smem>>) -> (i32, i32) {
    %c0_i32 = arith.constant 0 : i32
    %c0_i32_0 = arith.constant 0 : i32
    %c0_i32_1 = arith.constant 0 : i32
    return %c0_i32, %c0_i32_0 : i32, i32
  }
  func.func @transform_36(%arg0: i32, %arg1: memref<2xi32, #tpu.memory_space<smem>>) -> (i32, i32) {
    %c0_i32 = arith.constant 0 : i32
    %c0_i32_0 = arith.constant 0 : i32
    %c0_i32_1 = arith.constant 0 : i32
    return %c0_i32, %c0_i32_0 : i32, i32
  }
  func.func @transform_37(%arg0: i32, %arg1: memref<2xi32, #tpu.memory_space<smem>>) -> (i32, i32) {
    %c0_i32 = arith.constant 0 : i32
    %c0_i32_0 = arith.constant 0 : i32
    %c0_i32_1 = arith.constant 0 : i32
    return %c0_i32, %c0_i32_0 : i32, i32
  }
  func.func @transform_38(%arg0: i32, %arg1: memref<2xi32, #tpu.memory_space<smem>>) -> (i32, i32, i32) {
    %c0_i32 = arith.constant 0 : i32
    %c0_i32_0 = arith.constant 0 : i32
    %c0_i32_1 = arith.constant 0 : i32
    return %arg0, %c0_i32, %c0_i32_0 : i32, i32, i32
  }
  func.func @transform_39(%arg0: i32, %arg1: memref<2xi32, #tpu.memory_space<smem>>) -> (i32, i32, i32) {
    %c0_i32 = arith.constant 0 : i32
    %c0_i32_0 = arith.constant 0 : i32
    %c0_i32_1 = arith.constant 0 : i32
    return %arg0, %c0_i32, %c0_i32_0 : i32, i32, i32
  }
}

</mosaic_0001>

<bundles_post_ra>
// kernel: nmt_forward.1
= control target key start
LH: loop header
LB: loop body
LE: loop exit
PB: predicated region body
PF: predicated region fallthrough
CT: control target
= control target key end

     0   :  { %s5684_s6 = smov 1   ;;  %s5685_s10 = smov 2   ;;  %s6448_s0 = inlined_call_operand.smem [shape: u32[41], index: -1, kind: input, shape index: {}] }
   0x1   :  { %s5735_s5 = sld [smem:[%s6448_s0]]   ;;  %s5686_s14 = smov 3  }
   0x2   :  { %s5740_s9 = sld [smem:[%s6448_s0 + %s5684_s6]]   ;;  %s5687_s18 = smov 4  }
   0x3   :  { %s5745_s13 = sld [smem:[%s6448_s0 + %s5685_s10]]   ;;  %s5688_s22 = smov 5  }
   0x4   :  { %s5750_s17 = sld [smem:[%s6448_s0 + %s5686_s14]]   ;;  %s5689_s26 = smov 6  }
   0x5   :  { %s5755_s21 = sld [smem:[%s6448_s0 + %s5687_s18]]   ;;  %s5690_s30 = smov 7  }
   0x6   :  { %s5760_s25 = sld [smem:[%s6448_s0 + %s5688_s22]]   ;;  %s5691_s4 = smov 8  }
   0x7   :  { %s5765_s29 = sld [smem:[%s6448_s0 + %s5689_s26]]   ;;  %s5692_s10 = smov 9  }
   0x8   :  { %s5770_s3 = sld [smem:[%s6448_s0 + %s5690_s30]]   ;;  %s5693_s15 = smov 10  }
   0x9   :  { %s5775_s8 = sld [smem:[%s6448_s0 + %s5691_s4]]   ;;  %s5694_s20 = smov 11  }
   0xa   :  { %s5780_s14 = sld [smem:[%s6448_s0 + %s5692_s10]]   ;;  %s5695_s26 = smov 12  }
   0xb   :  { %s5785_s19 = sld [smem:[%s6448_s0 + %s5693_s15]]   ;;  %s5696_s1 = smov 13  }
   0xc   :  { %s5790_s24 = sld [smem:[%s6448_s0 + %s5694_s20]]   ;;  %s5697_s7 = smov 14  }
   0xd   :  { %s5795_s30 = sld [smem:[%s6448_s0 + %s5695_s26]]   ;;  %s5698_s15 = smov 15  }
   0xe   :  { %6461 = sst [smem:[#allocation5_spill]] %s5770_s3  ;;  %s5699_s22 = smov 16  }
   0xf   :  { %s5800_s6 = sld [smem:[%s6448_s0 + %s5696_s1]]   ;;  %s5700_s28 = smov 17  }
  0x10   :  { %s5805_s12 = sld [smem:[%s6448_s0 + %s5697_s7]]   ;;  %s5701_s7 = smov 18  }
  0x11   :  { %s5810_s20 = sld [smem:[%s6448_s0 + %s5698_s15]]   ;;  %s5702_s15 = smov 19  }
  0x12   :  { %s5815_s27 = sld [smem:[%s6448_s0 + %s5699_s22]]   ;;  %s5703_s22 = smov 20  }
  0x13   :  { %6462 = sst [smem:[#allocation6_spill]] %s5795_s30 }
  0x14   :  { %s5820_s4 = sld [smem:[%s6448_s0 + %s5700_s28]]   ;;  %s5704_s28 = smov 21  }
  0x15   :  { %s5840_s30 = sld [smem:[%s6448_s0 + %s5704_s28]]   ;;  %s5708_s28 = smov 25  }
  0x16   :  { %6463 = sst [smem:[#allocation7_spill]] %s5805_s12 }
  0x17   :  { %6464 = sst [smem:[#allocation8_spill]] %s5810_s20 }
  0x18   :  { %6465 = sst [smem:[#allocation9_spill]] %s5815_s27 }
  0x19   :  { %s5825_s12 = sld [smem:[%s6448_s0 + %s5701_s7]]   ;;  %s5705_s7 = smov 22  }
  0x1a   :  { %s5830_s20 = sld [smem:[%s6448_s0 + %s5702_s15]]   ;;  %s5706_s15 = smov 23  }
  0x1b   :  { %s5835_s27 = sld [smem:[%s6448_s0 + %s5703_s22]]   ;;  %s5707_s22 = smov 24  }
  0x1c   :  { %6469 = sst [smem:[#allocation13_spill]] %s5840_s30 }
  0x1d   :  { %s5860_s30 = sld [smem:[%s6448_s0 + %s5708_s28]]   ;;  %s5712_s28 = smov 29  }
  0x1f   :  { %6466 = sst [smem:[#allocation10_spill]] %s5825_s12 }
  0x20   :  { %6467 = sst [smem:[#allocation11_spill]] %s5830_s20 }
  0x21   :  { %6468 = sst [smem:[#allocation12_spill]] %s5835_s27 }
  0x22   :  { %s5845_s12 = sld [smem:[%s6448_s0 + %s5705_s7]]   ;;  %s5709_s7 = smov 26  }
  0x23   :  { %s5850_s20 = sld [smem:[%s6448_s0 + %s5706_s15]]   ;;  %s5710_s15 = smov 27  }
  0x24   :  { %s5855_s27 = sld [smem:[%s6448_s0 + %s5707_s22]]   ;;  %s5711_s22 = smov 28  }
  0x25   :  { %6473 = sst [smem:[#allocation17_spill]] %s5860_s30 }
  0x26   :  { %s5880_s30 = sld [smem:[%s6448_s0 + %s5712_s28]]   ;;  %s5716_s28 = smov 33  }
  0x27   :  { %s5900_s10 = sld [smem:[%s6448_s0 + %s5716_s28]]  }
  0x28   :  { %6470 = sst [smem:[#allocation14_spill]] %s5845_s12 }
  0x29   :  { %6471 = sst [smem:[#allocation15_spill]] %s5850_s20 }
  0x2a   :  { %6472 = sst [smem:[#allocation16_spill]] %s5855_s27 }
  0x2b   :  { %s5865_s12 = sld [smem:[%s6448_s0 + %s5709_s7]]   ;;  %s5713_s7 = smov 30  }
  0x2c   :  { %s5870_s20 = sld [smem:[%s6448_s0 + %s5710_s15]]   ;;  %s5714_s15 = smov 31  }
  0x2d   :  { %s5875_s27 = sld [smem:[%s6448_s0 + %s5711_s22]]   ;;  %s5715_s22 = smov 32  }
  0x2e   :  { %6477 = sst [smem:[#allocation21_spill]] %s5880_s30  ;;  %s5720_s30 = smov 37  }
  0x2f   :  { %s5890_s23 = sld [smem:[%s6448_s0 + %s5714_s15]]   ;;  %s5718_s15 = smov 35  }
  0x30   :  { %s5895_s1 = sld [smem:[%s6448_s0 + %s5715_s22]]  }
  0x31   :  { %6474 = sst [smem:[#allocation18_spill]] %s5865_s12 }
  0x32   :  { %6475 = sst [smem:[#allocation19_spill]] %s5870_s20 }
  0x33   :  { %6476 = sst [smem:[#allocation20_spill]] %s5875_s27  ;;  %s5719_s27 = smov 36  }
  0x34   :  { %s5885_s12 = sld [smem:[%s6448_s0 + %s5713_s7]]   ;;  %s5717_s7 = smov 34  }
  0x35   :  { %6479 = sst [smem:[#allocation23_spill]] %s5890_s23  ;;  %s87_s23 = sshll.u32 %s5735_s5, 4  ;;  %s88_s23 = int_to_ptr.vmem [resolvable:$true] %s87_s23 }
  0x36   :  { %6480 = sst [smem:[#allocation24_spill]] %s5895_s1  ;;  %s5662_s28 = scalar_lea.vmem %s88_s23, 16 }
  0x37   :  { %6481 = sst [smem:[#allocation25_spill]] %s5900_s10  ;;  %p5663_p0 = scmp.ne.s32.totalorder %s88_s23, %s5662_s28 }
  0x38   :  { %s5905_s16 = sld [smem:[%s6448_s0 + %s5717_s7]]   ;;  %p5667_p1 = scmp.lt.s32.totalorder %s88_s23, %s88_s23 }
  0x39   :  { %s5910_s20 = sld [smem:[%s6448_s0 + %s5718_s15]]   ;;  %s5722_s15 = smov 39  }
  0x3a   :  { %6478 = sst [smem:[#allocation22_spill]] %s5885_s12  ;;  %s5721_s12 = smov 38  }
  0x3b   :  { %s5915_s1 = sld [smem:[%s6448_s0 + %s5719_s27]]   ;;  %s5723_s27 = smov 40  }
  0x3c   :  { %s5920_s10 = sld [smem:[%s6448_s0 + %s5720_s30]]   ;;  %p5668_p2 = scmp.lt.s32.totalorder %s5662_s28, %s5662_s28 }
  0x3d   :  { %s5931_s22 = sld [smem:[%s6448_s0 + %s5722_s15]]  }
  0x3e   :  { %6482 = sst [smem:[#allocation26_spill]] %s5905_s16  ;;  %p5669_p3 = por %p5668_p2, %p5667_p1 }
  0x3f   :  { %6483 = sst [smem:[#allocation27_spill]] %s5910_s20 }
  0x40   :  { %s5925_s16 = sld [smem:[%s6448_s0 + %s5721_s12]]   ;;  %p5670_p4 = pnand %p5669_p3, %p5663_p0 }
  0x41   :  { %6484 = sst [smem:[#allocation28_spill]] %s5915_s1 }
  0x42   :  { %s5936_s30 = sld [smem:[%s6448_s0 + %s5723_s27]]  }
  0x43   :  { %5673 = shalt.err (!%p5670_p4)  }
  0x44   :  { %s5724_s5 = smov [#allocation3]  }
  0x45   :  { %90 = dma.vmem_to_smem %s88_s23, 16, %s5724_s5, [#allocation2] }
  0x46   :  { %5678 = dma.done.wait [#allocation2], 16 }
  0x47   :  { %5679 = vsyncadd [#allocation2], 4294967280 }
  0x48   :  { %92 = sfence }
  0x49   :  { %s5938_s20 = smov 0  }
  0x4a LB: > { %s6485_s3 = sld [smem:[#allocation5_spill]]  ;;  %s5944_s0 = sadd.s32 4294967295, %s5682_s20   ;;  %s5682_s20 = sphi %s5938_s20, %s98_s20  }
  0x4b   : > { %p4883_p5 = scmp.ge.s32.totalorder %s5682_s20, 1  ;;  %p1096_p6 = scmp.lt.s32.totalorder %s5682_s20, 3 }
  0x4d   : > { %p1097_p7 = pnand %p4883_p5, %p1096_p6 }
  0x4e   : > { %p1198_p8 = scmp.lt.s32.totalorder (!%p1097_p7), %s5944_s0, 1  ;;  %s1214_s7 = sld [smem:[#allocation3 + %s5944_s0]] (!%p1097_p7) }
  0x4f   : > { %1100 = sbr.rel (%p1097_p7) target bundleno = 6061 (0x17ad), region = 172  ;;  %s6488_s23 = sld [smem:[#allocation11_spill]] (!%p1097_p7) }
  0x50   : > { %s6489_s15 = sld [smem:[#allocation10_spill]] (!%p1097_p7) }
  0x51   : > { %s6490_s18 = sld [smem:[#allocation6_spill]] (!%p1097_p7) }
  0x52   : > { %s6491_s27 = sld [smem:[#allocation12_spill]] (!%p1097_p7) }
  0x53   : > { %s6492_s26 = sld [smem:[#allocation7_spill]] (!%p1097_p7) }
  0x54   : > { %s1199_s1 = scalar_select %p1198_p8, %s5944_s0, 1  ;;  %vm1221_vm0 = vcmask 261120   ;;  %v5725_v7 = vmov 0.0   ;;  %v1255_v8 = vld [vmem:[%s5760_s25 + $0x18] sm:$0xff]  ;;  %v1254_v10 = vld [vmem:[%s5760_s25 + $0x10] sm:$0xff]  ;;  %v1253_v12 = vld [vmem:[%s5760_s25 + $0x8] sm:$0xff]  ;;  %v1217_v61 = vlaneseq  ;;  %v1219_v63 = vstv %s1214_s7 }
  0x55   : > { %5213 = vmatprep.subr.mxu0 %v5725_v7  ;;  %5224 = vmatprep.subr.mxu1 %v5725_v7  ;;  %v4895_v9 = vld [vmem:[%s5760_s25 + $0x38] sm:$0xff]  ;;  %v4894_v11 = vld [vmem:[%s5760_s25 + $0x30] sm:$0xff]  ;;  %v4893_v13 = vld [vmem:[%s5760_s25 + $0x28] sm:$0xff]  ;;  %vm5726_vm1 = vmmov 0   ;;  %vm1751_vm2 = vcmask 130048   ;;  %vm1830_vm4 = vcmask 64512  }
  0x56   : > { %s5950_s2 = sshll.u32 %s1199_s1, 3  ;;  %5214 = vmatpush3.msra.mxu0 %v1255_v8  ;;  %5225 = vmatpush3.msra.mxu1 %v4895_v9  ;;  %v1252_v14 = vld [vmem:[%s5760_s25] sm:$0xff]  ;;  %v4902_v25 = vld [vmem:[%s5760_s25 + $0x58] sm:$0xff]  ;;  %v4901_v27 = vld [vmem:[%s5760_s25 + $0x50] sm:$0xff]  ;;  %v6047_v62 = vand.u32 127, %v1217_v61  ;;  %vm2473_vm5 = vcmask 260096  }
  0x57   : > { %s1201_s12 = scalar_lea.vmem %s5740_s9, %s5950_s2  ;;  %5215 = vmatprep.subr.mxu0 %v5725_v7  ;;  %5226 = vmatprep.subr.mxu1 %v5725_v7  ;;  %v4892_v15 = vld [vmem:[%s5760_s25 + $0x20] sm:$0xff]  ;;  %v4909_v26 = vld [vmem:[%s5760_s25 + $0x78] sm:$0xff]  ;;  %v4908_v28 = vld [vmem:[%s5760_s25 + $0x70] sm:$0xff]  ;;  %s1205_s11 = scalar_lea.vmem %s5745_s13, %s5950_s2  ;;  %vm2366_vm6 = vcmask 523264   ;;  %vm3096_vm7 = vcmask 1046528   ;;  %vm3080_vm9 = vcmask 55296  }
  0x58   : > { %v5954_v0 = vld [vmem:[%s1201_s12] sm:$0xff]  ;;  %5216 = vmatpush3.msra.mxu0 %v1254_v10  ;;  %5227 = vmatpush3.msra.mxu1 %v4894_v11  ;;  %v4900_v29 = vld [vmem:[%s5760_s25 + $0x48] sm:$0xff]  ;;  %v4916_v33 = vld [vmem:[%s5760_s25 + $0x98] sm:$0xff]  ;;  %vm6050_vm3 = vcmp.lt.s32.totalorder %v6047_v62, %v1219_v63  ;;  %s6493_s28 = sld [smem:[#allocation13_spill]]  ;;  %vm3092_vm10 = vcmask 56320   ;;  %vm4102_vm11 = vcmask 63488  }
  0x59   : > { %v1222_v1 = vsel %vm1221_vm0, %v5954_v0, 0.0  ;;  %5217 = vmatprep.subr.mxu0 %v5725_v7  ;;  %5228 = vmatprep.subr.mxu1 %v5725_v7  ;;  %v4888_v20 = vld [vmem:[%s5750_s17] ss:$0 sm:$0xff]  ;;  %v4907_v30 = vld [vmem:[%s5760_s25 + $0x68] sm:$0xff]  ;;  %v4923_v34 = vld [vmem:[%s5760_s25 + $0xb8] sm:$0xff]  ;;  %s6494_s5 = sld [smem:[#allocation14_spill]] }
  0x5a   : > { %1223 = vadd.xlane.f32.xlu0 %v1222_v1  ;;  %5218 = vmatpush3.msra.mxu0 %v1253_v12  ;;  %v4889_v22 = vld [vmem:[%s5755_s21] ss:$0 sm:$0xff]  ;;  %v4915_v35 = vld [vmem:[%s5760_s25 + $0x90] sm:$0xff]  ;;  %v4914_v37 = vld [vmem:[%s5760_s25 + $0x88] sm:$0xff]  ;;  %s6495_s0 = sld [smem:[#allocation17_spill]] }
  0x5b   : > { %5229 = vmatpush3.msra.mxu1 %v4893_v13  ;;  %5219 = vmatprep.subr.mxu0 %v5725_v7  ;;  %v4899_v31 = vld [vmem:[%s5760_s25 + $0x40] sm:$0xff]  ;;  %v4922_v36 = vld [vmem:[%s5760_s25 + $0xb0] sm:$0xff]  ;;  %v4921_v38 = vld [vmem:[%s5760_s25 + $0xa8] sm:$0xff]  ;;  %s6496_s1 = sld [smem:[#allocation15_spill]] }
  0x5c   : > { %5230 = vmatprep.subr.mxu1 %v5725_v7  ;;  %5220 = vmatpush3.msra.mxu0 %v1252_v14  ;;  %v4906_v32 = vld [vmem:[%s5760_s25 + $0x60] sm:$0xff]  ;;  %v2269_v63 = vld [vmem:[%s5790_s24 + $0x18] sm:$0xff]  ;;  %s6497_s12 = sld [smem:[#allocation16_spill]] }
  0x5d   : > { %5231 = vmatpush3.msra.mxu1 %v4892_v15  ;;  %5221 = vmatprep.mubr.msk.f32.mxu0 %vm5726_vm1, %v5725_v7  ;;  %v4913_v39 = vld [vmem:[%s5760_s25 + $0x80] sm:$0xff]  ;;  %s6498_s7 = sld [smem:[#allocation19_spill]] }
  0x5e   : > { %5232 = vmatprep.mubr.msk.f32.mxu1 %vm5726_vm1, %v5725_v7  ;;  %5235 = vmatprep.subr.mxu0 %v5725_v7  ;;  %v4920_v40 = vld [vmem:[%s5760_s25 + $0xa0] sm:$0xff] }
  0x5f   : > { %5246 = vmatprep.subr.mxu1 %v5725_v7  ;;  %v4904_v45 = vld [vmem:[%s5765_s29 + $0x2] ss:$0 sm:$0xff]  ;;  %v4890_v48 = vld [vmem:[%s5765_s29] ss:$0 sm:$0xff]  ;;  %v4918_v53 = vld [vmem:[%s5765_s29 + $0x4] ss:$0 sm:$0xff] }
  0x60   : > { %v4925_v54 = vld [vmem:[%s5765_s29 + $0x5] ss:$0 sm:$0xff]  ;;  %v4911_v14 = vld [vmem:[%s5765_s29 + $0x3] ss:$0 sm:$0xff] }
  0xe3   : > { %v1224_v2 = vpop.xlane.xlu0 %1223 }
  0xe4   : > { %v1226_v3 = vmul.f32 0.03125, %v1224_v2 }
  0xe6   : > { %v1227_v4 = vsub.f32 %v5954_v0, %v1226_v3 }
  0xe8   : > { %v1228_v5 = vmul.f32 %v1227_v4, %v1227_v4 }
  0xea   : > { %v1229_v6 = vsel %vm1221_vm0, %v1228_v5, 0.0 }
  0xeb   : > { %1230 = vadd.xlane.f32.xlu0 %v1229_v6 }
 0x174   : > { %v1231_v16 = vpop.xlane.xlu0 %1230 }
 0x175   : > { %v1232_v17 = vmul.f32 0.03125, %v1231_v16 }
 0x177   : > { %v1233_v18 = vadd.f32 1e-06, %v1232_v17  ;;  %v4897_v17 = vld [vmem:[%s5765_s29 + $0x1] ss:$0 sm:$0xff] }
 0x179   : > { %5624 = vrsqrt.f32 %v1233_v18 }
 0x186   : > { %v5625_v19 = vpop.eup %5624 }
 0x187   : > { %v1235_v21 = vmul.f32 %v5625_v19, %v1227_v4 }
 0x189   : > { %v1243_v23 = vmul.f32 %v4888_v20, %v1235_v21 }
 0x18b   : > { %v1251_v24 = vadd.f32 %v4889_v22, %v1243_v23 }
 0x18d   : > { %5222 = vmatmul.mubr.msk.f32.vlgmr.msra.gmra.mxu0 %vm1221_vm0, %v1251_v24  ;;  %5233 = vmatmul.mubr.msk.f32.vlgmr.msra.gmra.mxu1 %vm1221_vm0, %v1251_v24 }
 0x18e   : > { %5236 = vmatpush3.msra.mxu0 %v4902_v25  ;;  %5247 = vmatpush3.msra.mxu1 %v4909_v26 }
 0x18f   : > { %5237 = vmatprep.subr.mxu0 %v5725_v7  ;;  %5248 = vmatprep.subr.mxu1 %v5725_v7 }
 0x190   : > { %5238 = vmatpush3.msra.mxu0 %v4901_v27  ;;  %5249 = vmatpush3.msra.mxu1 %v4908_v28 }
 0x191   : > { %5239 = vmatprep.subr.mxu0 %v5725_v7  ;;  %5250 = vmatprep.subr.mxu1 %v5725_v7 }
 0x192   : > { %5240 = vmatpush3.msra.mxu0 %v4900_v29  ;;  %5251 = vmatpush3.msra.mxu1 %v4907_v30 }
 0x193   : > { %5241 = vmatprep.subr.mxu0 %v5725_v7  ;;  %5252 = vmatprep.subr.mxu1 %v5725_v7 }
 0x194   : > { %5242 = vmatpush3.msra.mxu0 %v4899_v31  ;;  %5243 = vmatprep.mubr.msk.f32.mxu0 %vm5726_vm1, %v5725_v7 }
 0x195   : > { %5253 = vmatpush3.msra.mxu1 %v4906_v32  ;;  %5254 = vmatprep.mubr.msk.f32.mxu1 %vm5726_vm1, %v5725_v7  ;;  %v4934_v32 = vld [vmem:[%s6485_s3 + $0x18] sm:$0xff] }
 0x196   : > { %5244 = vmatmul.mubr.msk.f32.vlgmr.msra.gmra.mxu0 %vm1221_vm0, %v1251_v24  ;;  %5255 = vmatmul.mubr.msk.f32.vlgmr.msra.gmra.mxu1 %vm1221_vm0, %v1251_v24 }
 0x197   : > { %5257 = vmatprep.subr.mxu0 %v5725_v7  ;;  %5268 = vmatprep.subr.mxu1 %v5725_v7 }
 0x198   : > { %5258 = vmatpush3.msra.mxu0 %v4916_v33  ;;  %5269 = vmatpush3.msra.mxu1 %v4923_v34 }
 0x199   : > { %5259 = vmatprep.subr.mxu0 %v5725_v7  ;;  %5270 = vmatprep.subr.mxu1 %v5725_v7 }
 0x19a   : > { %5260 = vmatpush3.msra.mxu0 %v4915_v35  ;;  %5271 = vmatpush3.msra.mxu1 %v4922_v36  ;;  %v1916_v36 = vld [vmem:[%s6485_s3 + $0x8] sm:$0xff] }
 0x19b   : > { %5261 = vmatprep.subr.mxu0 %v5725_v7  ;;  %5272 = vmatprep.subr.mxu1 %v5725_v7 }
 0x19c   : > { %5262 = vmatpush3.msra.mxu0 %v4914_v37  ;;  %5273 = vmatpush3.msra.mxu1 %v4921_v38  ;;  %v1915_v37 = vld [vmem:[%s6485_s3] sm:$0xff]  ;;  %v4933_v38 = vld [vmem:[%s6485_s3 + $0x10] sm:$0xff]  ;;  %s6510_s3 = sld [smem:[#allocation28_spill]] }
 0x19d   : > { %5263 = vmatprep.subr.mxu0 %v5725_v7  ;;  %5274 = vmatprep.subr.mxu1 %v5725_v7 }
 0x19e   : > { %5264 = vmatpush3.msra.mxu0 %v4913_v39  ;;  %5265 = vmatprep.mubr.msk.f32.mxu0 %vm5726_vm1, %v5725_v7 }
 0x19f   : > { %5275 = vmatpush3.msra.mxu1 %v4920_v40  ;;  %5276 = vmatprep.mubr.msk.f32.mxu1 %vm5726_vm1, %v5725_v7 }
 0x1a0   : > { %5266 = vmatmul.mubr.msk.f32.vlgmr.msra.gmra.mxu0 %vm1221_vm0, %v1251_v24  ;;  %5277 = vmatmul.mubr.msk.f32.vlgmr.msra.gmra.mxu1 %vm1221_vm0, %v1251_v24 }
 0x1a1   : > { %5279 = vmatprep.subr.mxu0 %v5725_v7  ;;  %5281 = vmatprep.mubr.msk.f32.mxu0 %vm5726_vm1, %v5725_v7 }
 0x1a2   : > { %5294 = vmatprep.subr.mxu1 %v5725_v7  ;;  %5296 = vmatprep.mubr.msk.f32.mxu1 %vm5726_vm1, %v5725_v7 }
 0x24d   : > { %v1332_v41 = vpop.f32.mrf.mxu0  ;;  %v1415_v42 = vpop.f32.mrf.mxu1 }
 0x24e   : > { %v1333_v52 = vadd.f32 %v4890_v48, %v1332_v41  ;;  %v1416_v19 = vadd.f32 %v4897_v17, %v1415_v42 }
 0x24f   : > { %v5223_v43 = vpop.f32.mrf.mxu0  ;;  %v5234_v44 = vpop.f32.mrf.mxu1 }
 0x250   : > { %v4937_v44 = vld [vmem:[%s5775_s8] ss:$0 sm:$0xff] }
 0x256   : > { %v1498_v46 = vpop.f32.mrf.mxu0  ;;  %v1581_v47 = vpop.f32.mrf.mxu1 }
 0x257   : > { %v1499_v49 = vadd.f32 %v4904_v45, %v1498_v46  ;;  %v1582_v18 = vadd.f32 %v4911_v14, %v1581_v47 }
 0x258   : > { %v5245_v50 = vpop.f32.mrf.mxu0  ;;  %v5256_v51 = vpop.f32.mrf.mxu1 }
 0x259   : > { %5280 = vmatpush3.xpose.msk.msra.mxu0 %vm1751_vm2, %v1499_v49  ;;  %v6095_v49 = vld [vmem:[%s1205_s11] sm:$0x7f]  ;;  %s6499_s11 = sld [smem:[#allocation8_spill]] }
 0x25a   : > { %5284 = vmatprep.subr.mxu0 %v5725_v7  ;;  %v2474_v51 = vsel %vm2473_vm5, %v6095_v49, 0.0 }
 0x25c   : > { %5282 = vmatmul.mubr.msk.f32.vlgmr.msra.gmra.mxu0 %vm1751_vm2, %v1333_v52 }
 0x25d   : > { %5286 = vmatprep.mubr.msk.f32.mxu0 %vm5726_vm1, %v5725_v7 }
 0x260   : > { %v1664_v55 = vpop.f32.mrf.mxu0  ;;  %v1747_v56 = vpop.f32.mrf.mxu1 }
 0x261   : > { %v1665_v57 = vadd.f32 %v4918_v53, %v1664_v55  ;;  %v1748_v58 = vadd.f32 %v4925_v54, %v1747_v56 }
 0x262   : > { %v5267_v59 = vpop.f32.mrf.mxu0  ;;  %v5278_v60 = vpop.f32.mrf.mxu1 }
 0x263   : > { %5285 = vmatpush3.msra.mxu0 %v1665_v57  ;;  %5295 = vmatpush3.msra.mxu1 %v1748_v58 }
 0x264   : > { %5289 = vmatprep.subr.mxu0 %v5725_v7  ;;  %5306 = vmatprep.subr.mxu1 %v5725_v7 }
 0x31c   : > { %v1824_v1 = vpop.f32.mrf.mxu0 }
 0x31d   : > { %v1828_v3 = vmul.f32 0.25, %v1824_v1  ;;  %v2268_v1 = vld [vmem:[%s5790_s24 + $0x10] sm:$0xff] }
 0x31e   : > { %v5283_v4 = vpop.f32.mrf.mxu0 }
 0x31f   : > { %v1829_v5 = vsel %vm6050_vm3, %v1828_v3, -1e+09  ;;  %v2267_v3 = vld [vmem:[%s5790_s24 + $0x8] sm:$0xff]  ;;  %v2266_v4 = vld [vmem:[%s5790_s24] sm:$0xff] }
 0x320   : > { %v1831_v6 = vsel %vm1830_vm4, %v1829_v5, -inf }
 0x321   : > { %1832 = vmax.xlane.f32.xlu1 %v1831_v6  ;;  %v2357_v6 = vld [vmem:[%s5800_s6 + $0x30] sm:$0xff] }
 0x3aa   : > { %v1833_v8 = vpop.xlane.xlu1 %1832 }
 0x3ab   : > { %v1834_v9 = vsub.f32 %v1829_v5, %v1833_v8  ;;  %v2358_v5 = vld [vmem:[%s5800_s6 + $0x38] sm:$0xff]  ;;  %v2356_v8 = vld [vmem:[%s5800_s6 + $0x28] sm:$0xff] }
 0x3ad   : > { %v1835_v10 = vmul.f32 1.442695, %v1834_v9  ;;  %v2355_v9 = vld [vmem:[%s5800_s6 + $0x20] sm:$0xff] }
 0x3af   : > { %5626 = vpow2.f32 %v1835_v10  ;;  %v2354_v10 = vld [vmem:[%s5800_s6 + $0x18] sm:$0xff] }
 0x3bc   : > { %v5627_v11 = vpop.eup %5626 }
 0x3bd   : > { %v1837_v12 = vsel %vm1830_vm4, %v5627_v11, 0.0 }
 0x3be   : > { %1838 = vadd.xlane.f32.xlu1 %v1837_v12 }
 0x447   : > { %v1839_v13 = vpop.xlane.xlu1 %1838 }
 0x448   : > { %5628 = vrcp.f32 %v1839_v13 }
 0x455   : > { %v5629_v15 = vpop.eup %5628 }
 0x456   : > { %v1841_v16 = vmul.f32 %v5629_v15, %v5627_v11  ;;  %v2353_v11 = vld [vmem:[%s5800_s6 + $0x10] sm:$0xff] }
 0x458   : > { %5287 = vmatmul.mubr.msk.f32.vlgmr.msra.gmra.mxu0 %vm1830_vm4, %v1841_v16 }
 0x459   : > { %5290 = vmatpush3.xpose.msk.msra.mxu0 %vm1751_vm2, %v1582_v18  ;;  %5291 = vmatprep.mubr.msk.f32.mxu0 %vm5726_vm1, %v5725_v7 }
 0x45a   : > { %5299 = vmatprep.subr.mxu0 %v5725_v7 }
 0x45c   : > { %5292 = vmatmul.mubr.msk.f32.vlgmr.msra.gmra.mxu0 %vm1751_vm2, %v1416_v19  ;;  %v4938_v19 = vld [vmem:[%s5780_s14] ss:$0 sm:$0xff] }
 0x45d   : > { %5303 = vmatprep.mubr.msk.f32.mxu0 %vm5726_vm1, %v5725_v7  ;;  %5300 = vmatpush3.msra.mxu0 %v4934_v32  ;;  %v2503_v32 = vld [vmem:[%s6488_s23] sm:$0xff] }
 0x45e   : > { %5301 = vmatprep.subr.mxu0 %v5725_v7 }
 0x45f   : > { %5302 = vmatpush3.msra.mxu0 %v4933_v38  ;;  %v4967_v38 = vld [vmem:[%s6488_s23 + $0x78] sm:$0xff] }
 0x460   : > { %5313 = vmatprep.subr.mxu0 %v5725_v7 }
 0x518   : > { %v1911_v20 = vpop.f32.mrf.mxu0 }
 0x51a   : > { %v5288_v21 = vpop.f32.mrf.mxu0 }
 0x51b   : > { %v4939_v21 = vld [vmem:[%s5785_s19] ss:$0 sm:$0xff] }
 0x51c   : > { %v1989_v22 = vpop.f32.mrf.mxu0 }
 0x51d   : > { %v1993_v23 = vmul.f32 0.25, %v1989_v22 }
 0x51e   : > { %v5293_v24 = vpop.f32.mrf.mxu0 }
 0x51f   : > { %v1994_v25 = vsel %vm6050_vm3, %v1993_v23, -1e+09  ;;  %v4946_v24 = vld [vmem:[%s5820_s4] ss:$0 sm:$0xff] }
 0x520   : > { %v1995_v26 = vsel %vm1830_vm4, %v1994_v25, -inf }
 0x521   : > { %1996 = vmax.xlane.f32.xlu0 %v1995_v26 }
 0x5aa   : > { %v1997_v27 = vpop.xlane.xlu0 %1996 }
 0x5ab   : > { %v1998_v28 = vsub.f32 %v1994_v25, %v1997_v27  ;;  %v2506_v27 = vld [vmem:[%s6488_s23 + $0x18] sm:$0xff] }
 0x5ad   : > { %v1999_v29 = vmul.f32 1.442695, %v1998_v28 }
 0x5af   : > { %5630 = vpow2.f32 %v1999_v29  ;;  %v2505_v29 = vld [vmem:[%s6488_s23 + $0x10] sm:$0xff] }
 0x5bc   : > { %v5631_v30 = vpop.eup %5630 }
 0x5bd   : > { %v2001_v31 = vsel %vm1830_vm4, %v5631_v30, 0.0 }
 0x5be   : > { %2002 = vadd.xlane.f32.xlu1 %v2001_v31  ;;  %v2504_v31 = vld [vmem:[%s6488_s23 + $0x8] sm:$0xff] }
 0x647   : > { %v2003_v33 = vpop.xlane.xlu1 %2002 }
 0x648   : > { %5632 = vrcp.f32 %v2003_v33 }
 0x655   : > { %v5633_v34 = vpop.eup %5632 }
 0x656   : > { %v2005_v35 = vmul.f32 %v5633_v34, %v5631_v30  ;;  %v4947_v30 = vld [vmem:[%s6489_s15] ss:$0 sm:$0xff]  ;;  %v4953_v34 = vld [vmem:[%s6488_s23 + $0x38] sm:$0xff]  ;;  %s6500_s15 = sld [smem:[#allocation9_spill]] }
 0x658   : > { %5297 = vmatmul.mubr.msk.f32.vlgmr.msra.gmra.mxu1 %vm1830_vm4, %v2005_v35  ;;  %v4952_v35 = vld [vmem:[%s6488_s23 + $0x30] sm:$0xff] }
 0x659   : > { %5307 = vmatpush3.msra.mxu1 %v1916_v36  ;;  %5310 = vmatprep.mubr.msk.f32.mxu1 %vm5726_vm1, %v5725_v7  ;;  %v4951_v36 = vld [vmem:[%s6488_s23 + $0x28] sm:$0xff] }
 0x65a   : > { %5308 = vmatprep.subr.mxu1 %v5725_v7 }
 0x65b   : > { %5309 = vmatpush3.msra.mxu1 %v1915_v37  ;;  %v4950_v37 = vld [vmem:[%s6488_s23 + $0x20] sm:$0xff] }
 0x65c   : > { %5311 = vmatmul.mubr.msk.f32.vlgmr.msra.gmra.mxu1 %vm1751_vm2, %v1911_v20  ;;  %5324 = vmatprep.subr.mxu1 %v5725_v7 }
 0x65d   : > { %5340 = vmatprep.mubr.msk.f32.mxu1 %vm5726_vm1, %v5725_v7  ;;  %5325 = vmatpush3.msra.mxu1 %v2358_v5 }
 0x65e   : > { %5326 = vmatprep.subr.mxu1 %v5725_v7 }
 0x65f   : > { %5327 = vmatpush3.msra.mxu1 %v2357_v6  ;;  %v4969_v6 = vld [vmem:[%s6491_s27 + $0x3] ss:$0 sm:$0xff] }
 0x660   : > { %5328 = vmatprep.subr.mxu1 %v5725_v7 }
 0x661   : > { %5329 = vmatpush3.msra.mxu1 %v2356_v8  ;;  %v4955_v8 = vld [vmem:[%s6491_s27 + $0x1] ss:$0 sm:$0xff] }
 0x662   : > { %5330 = vmatprep.subr.mxu1 %v5725_v7 }
 0x663   : > { %5331 = vmatpush3.msra.mxu1 %v2355_v9 }
 0x664   : > { %5332 = vmatprep.subr.mxu1 %v5725_v7 }
 0x665   : > { %5333 = vmatpush3.msra.mxu1 %v2354_v10 }
 0x666   : > { %5334 = vmatprep.subr.mxu1 %v5725_v7 }
 0x667   : > { %5335 = vmatpush3.msra.mxu1 %v2353_v11 }
 0x668   : > { %5336 = vmatprep.subr.mxu1 %v5725_v7 }
 0x718   : > { %v2075_v39 = vpop.f32.mrf.mxu1 }
 0x719   : > { %5304 = vmatmul.mubr.msk.f32.vlgmr.msra.gmra.mxu0 %vm1751_vm2, %v2075_v39  ;;  %v4966_v39 = vld [vmem:[%s6488_s23 + $0x70] sm:$0xff] }
 0x71a   : > { %v5298_v40 = vpop.f32.mrf.mxu1  ;;  %5321 = vmatprep.mubr.msk.f32.mxu0 %vm5726_vm1, %v5725_v7  ;;  %5314 = vmatpush3.msra.mxu0 %v2269_v63  ;;  %v4973_v63 = vld [vmem:[%s6488_s23 + $0x90] sm:$0xff] }
 0x71b   : > { %5315 = vmatprep.subr.mxu0 %v5725_v7  ;;  %v4965_v40 = vld [vmem:[%s6488_s23 + $0x68] sm:$0xff] }
 0x71c   : > { %v2224_v41 = vpop.f32.mrf.mxu1  ;;  %5316 = vmatpush3.msra.mxu0 %v2268_v1  ;;  %v4972_v1 = vld [vmem:[%s6488_s23 + $0x88] sm:$0xff] }
 0x71d   : > { %5317 = vmatprep.subr.mxu0 %v5725_v7 }
 0x71e   : > { %v5312_v42 = vpop.f32.mrf.mxu1  ;;  %5318 = vmatpush3.msra.mxu0 %v2267_v3 }
 0x71f   : > { %5319 = vmatprep.subr.mxu0 %v5725_v7  ;;  %v4981_v42 = vld [vmem:[%s6488_s23 + $0xb8] sm:$0xff] }
 0x720   : > { %5320 = vmatpush3.msra.mxu0 %v2266_v4  ;;  %v4971_v4 = vld [vmem:[%s6488_s23 + $0x80] sm:$0xff] }
 0x721   : > { %5343 = vmatprep.subr.mxu0 %v5725_v7 }
 0x7d9   : > { %v2151_v43 = vpop.f32.mrf.mxu0 }
 0x7da   : > { %v2225_v45 = vadd.f32 %v2224_v41, %v2151_v43  ;;  %v4964_v41 = vld [vmem:[%s6488_s23 + $0x60] sm:$0xff]  ;;  %v4980_v43 = vld [vmem:[%s6488_s23 + $0xb0] sm:$0xff] }
 0x7db   : > { %v5305_v46 = vpop.f32.mrf.mxu0 }
 0x7dc   : > { %v2235_v47 = vadd.f32 %v4937_v44, %v2225_v45  ;;  %v4979_v44 = vld [vmem:[%s6488_s23 + $0xa8] sm:$0xff]  ;;  %v4978_v45 = vld [vmem:[%s6488_s23 + $0xa0] sm:$0xff] }
 0x7dd   : > { %v2352_v46 = vld [vmem:[%s5800_s6 + $0x8] sm:$0xff] }
 0x7de   : > { %v6093_v48 = vadd.f32 %v2235_v47, %v5954_v0  ;;  %5337 = vmatpush3.msra.mxu1 %v2352_v46  ;;  %v2351_v47 = vld [vmem:[%s5800_s6] sm:$0xff] }
 0x7df   : > { %5338 = vmatprep.subr.mxu1 %v5725_v7 }
 0x7e0   : > { %v2237_v50 = vsel %vm1221_vm0, %v6093_v48, 0.0  ;;  %5339 = vmatpush3.msra.mxu1 %v2351_v47 }
 0x7e1   : > { %2238 = vadd.xlane.f32.xlu0 %v2237_v50  ;;  %5365 = vmatprep.subr.mxu1 %v5725_v7  ;;  %v4940_v50 = vld [vmem:[%s6490_s18] ss:$0 sm:$0xff]  ;;  %s6501_s18 = sld [smem:[#allocation20_spill]] }
 0x7e5   : > { %2475 = vadd.xlane.f32.xlu0 %v2474_v51 }
 0x86a   : > { %v2239_v52 = vpop.xlane.xlu0 %2238 }
 0x86b   : > { %v2240_v53 = vmul.f32 0.03125, %v2239_v52 }
 0x86d   : > { %v2241_v54 = vsub.f32 %v6093_v48, %v2240_v53 }
 0x86e   : > { %v2476_v0 = vpop.xlane.xlu0 %2475 }
 0x86f   : > { %v2242_v55 = vmul.f32 %v2241_v54, %v2241_v54  ;;  %v2477_v56 = vmul.f32 0.03125, %v2476_v0  ;;  %v4960_v0 = vld [vmem:[%s6488_s23 + $0x58] sm:$0xff] }
 0x871   : > { %v2243_v57 = vsel %vm1221_vm0, %v2242_v55, 0.0  ;;  %v2478_v58 = vsub.f32 %v6095_v49, %v2477_v56  ;;  %v4959_v55 = vld [vmem:[%s6488_s23 + $0x50] sm:$0xff]  ;;  %v4958_v56 = vld [vmem:[%s6488_s23 + $0x48] sm:$0xff] }
 0x872   : > { %2244 = vadd.xlane.f32.xlu1 %v2243_v57 }
 0x873   : > { %v2479_v59 = vmul.f32 %v2478_v58, %v2478_v58 }
 0x875   : > { %v2480_v60 = vsel %vm2473_vm5, %v2479_v59, 0.0 }
 0x876   : > { %2481 = vadd.xlane.f32.xlu1 %v2480_v60  ;;  %v4974_v60 = vld [vmem:[%s6488_s23 + $0x98] sm:$0xff] }
 0x8fb   : > { %v2245_v12 = vpop.xlane.xlu1 %2244 }
 0x8fc   : > { %v2246_v13 = vmul.f32 0.03125, %v2245_v12 }
 0x8fe   : > { %v2247_v14 = vadd.f32 1e-06, %v2246_v13 }
 0x8ff   : > { %v2482_v15 = vpop.xlane.xlu1 %2481 }
 0x900   : > { %5634 = vrsqrt.f32 %v2247_v14  ;;  %v2483_v16 = vmul.f32 0.03125, %v2482_v15 }
 0x902   : > { %v2484_v17 = vadd.f32 1e-06, %v2483_v16 }
 0x904   : > { %5636 = vrsqrt.f32 %v2484_v17  ;;  %v4962_v17 = vld [vmem:[%s6491_s27 + $0x2] ss:$0 sm:$0xff] }
 0x90d   : > { %v5635_v18 = vpop.eup %5634 }
 0x90e   : > { %v2249_v20 = vmul.f32 %v5635_v18, %v2241_v54 }
 0x910   : > { %v2257_v22 = vmul.f32 %v4938_v19, %v2249_v20  ;;  %v4948_v19 = vld [vmem:[%s6491_s27] ss:$0 sm:$0xff] }
 0x911   : > { %v5637_v23 = vpop.eup %5636 }
 0x912   : > { %v2486_v25 = vmul.f32 %v5637_v23, %v2478_v58  ;;  %v2265_v26 = vadd.f32 %v4939_v21, %v2257_v22  ;;  %v4957_v58 = vld [vmem:[%s6488_s23 + $0x40] sm:$0xff] }
 0x913   : > { %v4976_v23 = vld [vmem:[%s6491_s27 + $0x4] ss:$0 sm:$0xff] }
 0x914   : > { %v2494_v28 = vmul.f32 %v4946_v24, %v2486_v25  ;;  %5322 = vmatmul.mubr.msk.f32.vlgmr.msra.gmra.mxu0 %vm1221_vm0, %v2265_v26 }
 0x915   : > { %5344 = vmatpush3.msra.mxu0 %v2506_v27  ;;  %5351 = vmatprep.mubr.msk.f32.mxu0 %vm5726_vm1, %v5725_v7  ;;  %v2471_v27 = vshrl.u32 %v1217_v61, 7 }
 0x916   : > { %5345 = vmatprep.subr.mxu0 %v5725_v7  ;;  %v6138_v33 = vadd.f32 %v4947_v30, %v2494_v28 }
 0x917   : > { %5346 = vmatpush3.msra.mxu0 %v2505_v29  ;;  %vm2472_vm8 = vcmp.le.s32.totalorder %v6047_v62, %v2471_v27  ;;  %v3526_v27 = vld [vmem:[%s6495_s0 + $0x10] sm:$0xff] }
 0x918   : > { %5347 = vmatprep.subr.mxu0 %v5725_v7 }
 0x919   : > { %5348 = vmatpush3.msra.mxu0 %v2504_v31 }
 0x91a   : > { %5349 = vmatprep.subr.mxu0 %v5725_v7 }
 0x91b   : > { %5350 = vmatpush3.msra.mxu0 %v2503_v32 }
 0x91c   : > { %5354 = vmatprep.subr.mxu0 %v5725_v7  ;;  %5352 = vmatmul.mubr.msk.f32.vlgmr.msra.gmra.mxu0 %vm1221_vm0, %v6138_v33 }
 0x91d   : > { %5355 = vmatpush3.msra.mxu0 %v4953_v34  ;;  %5362 = vmatprep.mubr.msk.f32.mxu0 %vm5726_vm1, %v5725_v7 }
 0x91e   : > { %5356 = vmatprep.subr.mxu0 %v5725_v7 }
 0x91f   : > { %5357 = vmatpush3.msra.mxu0 %v4952_v35 }
 0x920   : > { %5358 = vmatprep.subr.mxu0 %v5725_v7 }
 0x921   : > { %5359 = vmatpush3.msra.mxu0 %v4951_v36  ;;  %v4942_v36 = vld [vmem:[%s6492_s26] ss:$0 sm:$0xff]  ;;  %s6502_s26 = sld [smem:[#allocation18_spill]] }
 0x922   : > { %5360 = vmatprep.subr.mxu0 %v5725_v7 }
 0x923   : > { %5361 = vmatpush3.msra.mxu0 %v4950_v37 }
 0x924   : > { %5376 = vmatprep.subr.mxu0 %v5725_v7  ;;  %5363 = vmatmul.mubr.msk.f32.vlgmr.msra.gmra.mxu0 %vm1221_vm0, %v6138_v33 }
 0x925   : > { %5377 = vmatpush3.msra.mxu0 %v4967_v38  ;;  %5384 = vmatprep.mubr.msk.f32.mxu0 %vm5726_vm1, %v5725_v7 }
 0x926   : > { %5378 = vmatprep.subr.mxu0 %v5725_v7 }
 0x927   : > { %5379 = vmatpush3.msra.mxu0 %v4966_v39 }
 0x928   : > { %5380 = vmatprep.subr.mxu0 %v5725_v7 }
 0x929   : > { %5381 = vmatpush3.msra.mxu0 %v4965_v40 }
 0x92a   : > { %5382 = vmatprep.subr.mxu0 %v5725_v7 }
 0x92b   : > { %5383 = vmatpush3.msra.mxu0 %v4964_v41 }
 0x92c   : > { %5385 = vmatmul.mubr.msk.f32.vlgmr.msra.gmra.mxu0 %vm1221_vm0, %v6138_v33  ;;  %5398 = vmatprep.subr.mxu0 %v5725_v7 }
 0x92d   : > { %5399 = vmatpush3.msra.mxu0 %v4981_v42  ;;  %5406 = vmatprep.mubr.msk.f32.mxu0 %vm5726_vm1, %v5725_v7 }
 0x92e   : > { %5400 = vmatprep.subr.mxu0 %v5725_v7 }
 0x92f   : > { %5401 = vmatpush3.msra.mxu0 %v4980_v43 }
 0x930   : > { %5402 = vmatprep.subr.mxu0 %v5725_v7 }
 0x931   : > { %5403 = vmatpush3.msra.mxu0 %v4979_v44 }
 0x932   : > { %5404 = vmatprep.subr.mxu0 %v5725_v7 }
 0x933   : > { %5405 = vmatpush3.msra.mxu0 %v4978_v45 }
 0x934   : > { %5407 = vmatmul.mubr.msk.f32.vlgmr.msra.gmra.mxu0 %vm1221_vm0, %v6138_v33  ;;  %5419 = vmatprep.subr.mxu0 %v5725_v7 }
 0x935   : > { %5421 = vmatprep.mubr.msk.f32.mxu0 %vm5726_vm1, %v5725_v7 }
 0x9d4   : > { %v2346_v51 = vpop.f32.mrf.mxu0 }
 0x9d5   : > { %v2347_v52 = vadd.f32 %v4940_v50, %v2346_v51 }
 0x9d6   : > { %v5323_v53 = vpop.f32.mrf.mxu0 }
 0x9d7   : > { %v2350_v54 = vmax.f32 %v2347_v52, 0.0 }
 0x9d9   : > { %5341 = vmatmul.mubr.msk.f32.vlgmr.msra.gmra.mxu1 %vm2366_vm6, %v2350_v54 }
 0x9da   : > { %5366 = vmatpush3.msra.mxu1 %v4960_v0  ;;  %5373 = vmatprep.mubr.msk.f32.mxu1 %vm5726_vm1, %v5725_v7 }
 0x9db   : > { %5367 = vmatprep.subr.mxu1 %v5725_v7 }
 0x9dc   : > { %5368 = vmatpush3.msra.mxu1 %v4959_v55  ;;  %v2583_v57 = vpop.f32.mrf.mxu0 }
 0x9dd   : > { %5369 = vmatprep.subr.mxu1 %v5725_v7  ;;  %v2584_v22 = vadd.f32 %v4948_v19, %v2583_v57  ;;  %v4983_v57 = vld [vmem:[%s6491_s27 + $0x5] ss:$0 sm:$0xff] }
 0x9de   : > { %5370 = vmatpush3.msra.mxu1 %v4958_v56  ;;  %v5353_v59 = vpop.f32.mrf.mxu0 }
 0x9df   : > { %5371 = vmatprep.subr.mxu1 %v5725_v7 }
 0x9e0   : > { %5372 = vmatpush3.msra.mxu1 %v4957_v58 }
 0x9e1   : > { %5374 = vmatmul.mubr.msk.f32.vlgmr.msra.gmra.mxu1 %vm1221_vm0, %v6138_v33  ;;  %5387 = vmatprep.subr.mxu1 %v5725_v7 }
 0x9e2   : > { %5388 = vmatpush3.msra.mxu1 %v4974_v60  ;;  %5395 = vmatprep.mubr.msk.f32.mxu1 %vm5726_vm1, %v5725_v7 }
 0x9e3   : > { %5389 = vmatprep.subr.mxu1 %v5725_v7 }
 0x9e4   : > { %5390 = vmatpush3.msra.mxu1 %v4973_v63  ;;  %v2666_v3 = vpop.f32.mrf.mxu0 }
 0x9e5   : > { %5391 = vmatprep.subr.mxu1 %v5725_v7  ;;  %v2667_v11 = vadd.f32 %v4955_v8, %v2666_v3  ;;  %v3171_v3 = vld [vmem:[%s6493_s28 + $0x8] sm:$0xff] }
 0x9e6   : > { %5392 = vmatpush3.msra.mxu1 %v4972_v1  ;;  %v5364_v5 = vpop.f32.mrf.mxu0 }
 0x9e7   : > { %5393 = vmatprep.subr.mxu1 %v5725_v7  ;;  %v4994_v5 = vld [vmem:[%s6493_s28 + $0x18] sm:$0xff] }
 0x9e8   : > { %5394 = vmatpush3.msra.mxu1 %v4971_v4  ;;  %v3170_v4 = vld [vmem:[%s6493_s28] sm:$0xff] }
 0x9e9   : > { %5396 = vmatmul.mubr.msk.f32.vlgmr.msra.gmra.mxu1 %vm1221_vm0, %v6138_v33  ;;  %5409 = vmatprep.subr.mxu1 %v5725_v7 }
 0x9ea   : > { %5411 = vmatprep.mubr.msk.f32.mxu1 %vm5726_vm1, %v5725_v7 }
 0x9ec   : > { %v2832_v9 = vpop.f32.mrf.mxu0 }
 0x9ed   : > { %v2833_v10 = vadd.f32 %v4969_v6, %v2832_v9  ;;  %v4993_v6 = vld [vmem:[%s6493_s28 + $0x10] sm:$0xff] }
 0x9ee   : > { %v5386_v12 = vpop.f32.mrf.mxu0 }
 0x9ef   : > { %5420 = vmatpush3.xpose.msk.msra.mxu0 %vm1751_vm2, %v2833_v10 }
 0x9f0   : > { %5429 = vmatprep.subr.mxu0 %v5725_v7 }
 0x9f2   : > { %5422 = vmatmul.mubr.msk.f32.vlgmr.msra.gmra.mxu0 %vm1751_vm2, %v2667_v11 }
 0x9f3   : > { %5433 = vmatprep.mubr.msk.f32.mxu0 %vm5726_vm1, %v5725_v7  ;;  %5430 = vmatpush3.msra.mxu0 %v4994_v5 }
 0x9f4   : > { %v6221_v13 = vpop.f32.mrf.mxu0  ;;  %5431 = vmatprep.subr.mxu0 %v5725_v7 }
 0x9f5   : > { %v2999_v63 = vadd.f32 %v4983_v57, %v6221_v13  ;;  %5432 = vmatpush3.msra.mxu0 %v4993_v6  ;;  %v5021_v57 = vld [vmem:[%s6498_s7 + $0x58] sm:$0xff] }
 0x9f6   : > { %v5408_v14 = vpop.f32.mrf.mxu0  ;;  %5443 = vmatprep.subr.mxu0 %v5725_v7 }
 0xa99   : > { %v2436_v15 = vpop.f32.mrf.mxu1 }
 0xa9a   : > { %v2437_v37 = vadd.f32 %v4942_v36, %v2436_v15  ;;  %v4997_v15 = vld [vmem:[%s6494_s5] ss:$0 sm:$0xff]  ;;  %s6503_s5 = sld [smem:[#allocation21_spill]] }
 0xa9b   : > { %v5342_v16 = vpop.f32.mrf.mxu1 }
 0xa9c   : > { %v2440_v39 = vadd.f32 %v2437_v37, %v6093_v48 }
 0xa9e   : > { %v2441_v40 = vsel %vm1221_vm0, %v2440_v39, 0.0 }
 0xaa1   : > { %v2749_v18 = vpop.f32.mrf.mxu1 }
 0xaa2   : > { %v2750_v20 = vadd.f32 %v4962_v17, %v2749_v18 }
 0xaa3   : > { %v5375_v21 = vpop.f32.mrf.mxu1 }
 0xaa4   : > { %5410 = vmatpush3.xpose.msk.msra.mxu1 %vm1751_vm2, %v2750_v20 }
 0xaa5   : > { %5414 = vmatprep.subr.mxu1 %v5725_v7 }
 0xaa7   : > { %5412 = vmatmul.mubr.msk.f32.vlgmr.msra.gmra.mxu1 %vm1751_vm2, %v2584_v22 }
 0xaa8   : > { %5416 = vmatprep.mubr.msk.f32.mxu1 %vm5726_vm1, %v5725_v7 }
 0xaa9   : > { %v2915_v24 = vpop.f32.mrf.mxu1 }
 0xaaa   : > { %v2916_v25 = vadd.f32 %v4976_v23, %v2915_v24 }
 0xaab   : > { %v5397_v26 = vpop.f32.mrf.mxu1 }
 0xaac   : > { %5415 = vmatpush3.msk.msra.mxu1 %vm3096_vm7, %v2916_v25  ;;  %v3527_v26 = vld [vmem:[%s6495_s0 + $0x18] sm:$0xff] }
 0xaad   : > { %5424 = vmatprep.subr.mxu1 %v5725_v7 }
 0xab2   : > { %v3244_v28 = vpop.f32.mrf.mxu0 }
 0xab3   : > { %v3248_v29 = vmul.f32 0.25, %v3244_v28  ;;  %v5004_v28 = vld [vmem:[%s6495_s0 + $0x30] sm:$0xff] }
 0xab4   : > { %v5423_v30 = vpop.f32.mrf.mxu0 }
 0xab5   : > { %v3249_v31 = vsel %vm2472_vm8, %v3248_v29, -1e+09  ;;  %v3525_v29 = vld [vmem:[%s6495_s0 + $0x8] sm:$0xff] }
 0xab6   : > { %v3250_v32 = vsel %vm3080_vm9, %v3249_v31, -inf  ;;  %v5003_v30 = vld [vmem:[%s6495_s0 + $0x28] sm:$0xff] }
 0xab7   : > { %3251 = vmax.xlane.f32.xlu1 %v3250_v32  ;;  %v5002_v32 = vld [vmem:[%s6495_s0 + $0x20] sm:$0xff] }
 0xb40   : > { %v3252_v33 = vpop.xlane.xlu1 %3251 }
 0xb41   : > { %v3253_v34 = vsub.f32 %v3249_v31, %v3252_v33  ;;  %v3524_v31 = vld [vmem:[%s6495_s0] sm:$0xff] }
 0xb43   : > { %v3254_v35 = vmul.f32 1.442695, %v3253_v34 }
 0xb45   : > { %5638 = vpow2.f32 %v3254_v35 }
 0xb52   : > { %v5639_v38 = vpop.eup %5638 }
 0xb53   : > { %v3256_v61 = vsel %vm3080_vm9, %v5639_v38, 0.0 }
 0xb54   : > { %3257 = vadd.xlane.f32.xlu1 %v3256_v61 }
 0xb58   : > { %2442 = vadd.xlane.f32.xlu1 %v2441_v40 }
 0xb67   : > { %v3074_v41 = vpop.f32.mrf.mxu1 }
 0xb68   : > { %v3078_v42 = vmul.f32 0.25, %v3074_v41  ;;  %v4999_v41 = vld [vmem:[%s6497_s12] ss:$0 sm:$0xff]  ;;  %s6504_s12 = sld [smem:[#allocation22_spill]] }
 0xb69   : > { %v5413_v43 = vpop.f32.mrf.mxu1 }
 0xb6a   : > { %v3079_v44 = vsel %vm2472_vm8, %v3078_v42, -1e+09 }
 0xb6b   : > { %v3081_v45 = vsel %vm3080_vm9, %v3079_v44, -inf }
 0xb6c   : > { %3082 = vmax.xlane.f32.xlu0 %v3081_v45  ;;  %v3694_v45 = vld [vmem:[%s6498_s7 + $0x18] sm:$0xff] }
 0xbdd   : > { %v3258_v46 = vpop.xlane.xlu1 %3257 }
 0xbe1   : > { %v2443_v47 = vpop.xlane.xlu1 %2442 }
 0xbe2   : > { %v2444_v50 = vmul.f32 0.03125, %v2443_v47 }
 0xbe4   : > { %v6245_v51 = vsub.f32 %v2440_v39, %v2444_v50  ;;  %v4998_v39 = vld [vmem:[%s6496_s1] ss:$0 sm:$0xff]  ;;  %v3693_v50 = vld [vmem:[%s6498_s7 + $0x10] sm:$0xff]  ;;  %s1213_s1 = scalar_lea.vmem %s5936_s30, %s5950_s2 }
 0xbe6   : > { %v2446_v48 = vmul.f32 %v6245_v51, %v6245_v51 }
 0xbe8   : > { %v2447_v52 = vsel %vm1221_vm0, %v2446_v48, 0.0  ;;  %v5013_v48 = vld [vmem:[%s6498_s7 + $0x30] sm:$0xff] }
 0xbe9   : > { %2448 = vadd.xlane.f32.xlu1 %v2447_v52  ;;  %v4944_v52 = vld [vmem:[%s6499_s11] ss:$0 sm:$0xff]  ;;  %s6505_s11 = sld [smem:[#allocation25_spill]] }
 0xbf5   : > { %v3083_v53 = vpop.xlane.xlu0 %3082 }
 0xbf6   : > { %v3084_v54 = vsub.f32 %v3079_v44, %v3083_v53  ;;  %v3692_v53 = vld [vmem:[%s6498_s7 + $0x8] sm:$0xff] }
 0xbf8   : > { %v3085_v0 = vmul.f32 1.442695, %v3084_v54  ;;  %v5012_v54 = vld [vmem:[%s6498_s7 + $0x28] sm:$0xff] }
 0xbfa   : > { %5640 = vpow2.f32 %v3085_v0  ;;  %v3691_v0 = vld [vmem:[%s6498_s7] sm:$0xff] }
 0xc07   : > { %v5641_v62 = vpop.eup %5640 }
 0xc08   : > { %v3087_v55 = vsel %vm3080_vm9, %v5641_v62, 0.0 }
 0xc09   : > { %3088 = vadd.xlane.f32.xlu0 %v3087_v55  ;;  %v5011_v55 = vld [vmem:[%s6498_s7 + $0x20] sm:$0xff] }
 0xc72   : > { %v2449_v33 = vpop.xlane.xlu1 %2448 }
 0xc73   : > { %v2450_v34 = vmul.f32 0.03125, %v2449_v33 }
 0xc92   : > { %v3089_v56 = vpop.xlane.xlu0 %3088 }
 0xc93   : > { %5642 = vrcp.f32 %v3089_v56 }
 0xc94   : > { %5644 = vrcp.f32 %v3258_v46  ;;  %v5014_v46 = vld [vmem:[%s6498_s7 + $0x38] sm:$0xff] }
 0xca0   : > { %v5643_v58 = vpop.eup %5642 }
 0xca1   : > { %v3091_v59 = vmul.f32 %v5643_v58, %v5641_v62  ;;  %v5645_v60 = vpop.eup %5644  ;;  %v4945_v62 = vld [vmem:[%s6500_s15] ss:$0 sm:$0xff]  ;;  %v5028_v58 = vld [vmem:[%s6498_s7 + $0x78] sm:$0xff]  ;;  %s6506_s15 = sld [smem:[#allocation27_spill]] }
 0xca2   : > { %v3260_v1 = vmul.f32 %v5645_v60, %v5639_v38  ;;  %v2451_v38 = vadd.f32 1e-06, %v2450_v34  ;;  %v5027_v60 = vld [vmem:[%s6498_s7 + $0x70] sm:$0xff] }
 0xca3   : > { %5417 = vmatmul.mubr.msk.f32.vlgmr.msra.gmra.mxu1 %vm3092_vm10, %v3091_v59  ;;  %v5020_v59 = vld [vmem:[%s6498_s7 + $0x50] sm:$0xff] }
 0xca4   : > { %5425 = vmatpush3.msk.msra.mxu1 %vm3096_vm7, %v2999_v63  ;;  %5426 = vmatprep.mubr.msk.f32.mxu1 %vm5726_vm1, %v5725_v7  ;;  %v5019_v63 = vld [vmem:[%s6498_s7 + $0x48] sm:$0xff] }
 0xca5   : > { %5436 = vmatprep.subr.mxu1 %v5725_v7 }
 0xca7   : > { %5427 = vmatmul.mubr.msk.f32.vlgmr.msra.gmra.mxu1 %vm3092_vm10, %v3260_v1  ;;  %v5026_v1 = vld [vmem:[%s6498_s7 + $0x68] sm:$0xff] }
 0xca8   : > { %5437 = vmatpush3.msra.mxu1 %v3171_v3  ;;  %5440 = vmatprep.mubr.msk.f32.mxu1 %vm5726_vm1, %v5725_v7  ;;  %v5018_v3 = vld [vmem:[%s6498_s7 + $0x40] sm:$0xff] }
 0xca9   : > { %5438 = vmatprep.subr.mxu1 %v5725_v7 }
 0xcaa   : > { %5439 = vmatpush3.msra.mxu1 %v3170_v4  ;;  %v5025_v4 = vld [vmem:[%s6498_s7 + $0x60] sm:$0xff] }
 0xcab   : > { %5454 = vmatprep.subr.mxu1 %v5725_v7 }
 0xd63   : > { %v3166_v8 = vpop.f32.mrf.mxu1 }
 0xd64   : > { %5441 = vmatmul.mubr.msk.f32.vlgmr.msra.gmra.mxu1 %vm1751_vm2, %v3166_v8 }
 0xd65   : > { %v5418_v9 = vpop.f32.mrf.mxu1  ;;  %5462 = vmatprep.mubr.msk.f32.mxu1 %vm5726_vm1, %v5725_v7 }
 0xd67   : > { %v3333_v10 = vpop.f32.mrf.mxu1 }
 0xd68   : > { %5434 = vmatmul.mubr.msk.f32.vlgmr.msra.gmra.mxu0 %vm1751_vm2, %v3333_v10  ;;  %v5009_v10 = vld [vmem:[%s6501_s18] ss:$0 sm:$0xff] }
 0xd69   : > { %v5428_v11 = vpop.f32.mrf.mxu1  ;;  %5451 = vmatprep.mubr.msk.f32.mxu0 %vm5726_vm1, %v5725_v7  ;;  %5444 = vmatpush3.msra.mxu0 %v3527_v26 }
 0xd6a   : > { %5445 = vmatprep.subr.mxu0 %v5725_v7 }
 0xd6b   : > { %5446 = vmatpush3.msra.mxu0 %v3526_v27 }
 0xd6c   : > { %5447 = vmatprep.subr.mxu0 %v5725_v7 }
 0xd6d   : > { %5448 = vmatpush3.msra.mxu0 %v3525_v29 }
 0xd6e   : > { %5449 = vmatprep.subr.mxu0 %v5725_v7 }
 0xd6f   : > { %5450 = vmatpush3.msra.mxu0 %v3524_v31 }
 0xd70   : > { %5465 = vmatprep.subr.mxu0 %v5725_v7 }
 0xe24   : > { %v3482_v12 = vpop.f32.mrf.mxu1 }
 0xe26   : > { %v5442_v13 = vpop.f32.mrf.mxu1 }
 0xe27   : > { %v5000_v13 = vld [vmem:[%s6502_s26] ss:$0 sm:$0xff] }
 0xe28   : > { %v3409_v14 = vpop.f32.mrf.mxu0 }
 0xe29   : > { %v3483_v16 = vadd.f32 %v3482_v12, %v3409_v14 }
 0xe2a   : > { %v5435_v17 = vpop.f32.mrf.mxu0 }
 0xe2b   : > { %v3493_v18 = vadd.f32 %v4997_v15, %v3483_v16  ;;  %v5016_v15 = vld [vmem:[%s6501_s18 + $0x1] ss:$0 sm:$0xff] }
 0xe2d   : > { %v6275_v19 = vadd.f32 %v3493_v18, %v6095_v49  ;;  %v5005_v49 = vld [vmem:[%s6495_s0 + $0x38] sm:$0xff]  ;;  %s6509_s0 = sld [smem:[#allocation26_spill]] }
 0xe2e   : > { %5455 = vmatpush3.msra.mxu1 %v5005_v49 }
 0xe2f   : > { %v3495_v20 = vsel %vm2473_vm5, %v6275_v19, 0.0  ;;  %5456 = vmatprep.subr.mxu1 %v5725_v7 }
 0xe30   : > { %3496 = vadd.xlane.f32.xlu0 %v3495_v20  ;;  %5457 = vmatpush3.msra.mxu1 %v5004_v28  ;;  %v5007_v20 = vld [vmem:[%s6502_s26 + $0x1] ss:$0 sm:$0xff] }
 0xe31   : > { %5458 = vmatprep.subr.mxu1 %v5725_v7 }
 0xe32   : > { %5459 = vmatpush3.msra.mxu1 %v5003_v30 }
 0xe33   : > { %5460 = vmatprep.subr.mxu1 %v5725_v7 }
 0xe34   : > { %5461 = vmatpush3.msra.mxu1 %v5002_v32 }
 0xe35   : > { %5476 = vmatprep.subr.mxu1 %v5725_v7 }
 0xeb9   : > { %v3497_v21 = vpop.xlane.xlu0 %3496 }
 0xeba   : > { %v3498_v22 = vmul.f32 0.03125, %v3497_v21 }
 0xebc   : > { %v3499_v23 = vsub.f32 %v6275_v19, %v3498_v22 }
 0xebe   : > { %v3500_v24 = vmul.f32 %v3499_v23, %v3499_v23 }
 0xec0   : > { %v3501_v25 = vsel %vm2473_vm5, %v3500_v24, 0.0 }
 0xec1   : > { %3502 = vadd.xlane.f32.xlu0 %v3501_v25 }
 0xf4a   : > { %v3503_v35 = vpop.xlane.xlu0 %3502 }
 0xf4b   : > { %v3504_v36 = vmul.f32 0.03125, %v3503_v35 }
 0xf4d   : > { %v3505_v37 = vadd.f32 1e-06, %v3504_v36 }
 0xf4f   : > { %5646 = vrsqrt.f32 %v3505_v37 }
 0xf50   : > { %5648 = vrsqrt.f32 %v2451_v38 }
 0xf5c   : > { %v5647_v61 = vpop.eup %5646 }
 0xf5d   : > { %v3507_v40 = vmul.f32 %v5647_v61, %v3499_v23  ;;  %v5649_v42 = vpop.eup %5648  ;;  %v5023_v23 = vld [vmem:[%s6501_s18 + $0x2] ss:$0 sm:$0xff] }
 0xf5e   : > { %v2453_v47 = vmul.f32 %v5649_v42, %v6245_v51 }
 0xf5f   : > { %v3515_v43 = vmul.f32 %v4998_v39, %v3507_v40 }
 0xf60   : > { %v2461_v51 = vmul.f32 %v4944_v52, %v2453_v47 }
 0xf61   : > { %v3523_v44 = vadd.f32 %v4999_v41, %v3515_v43 }
 0xf62   : > { %v2469_v56 = vadd.f32 %v4945_v62, %v2461_v51  ;;  %v4187_v62 = vld [vmem:[%s6503_s5] sm:$0xff] }
 0xf63   : > { %5452 = vmatmul.mubr.msk.f32.vlgmr.msra.gmra.mxu0 %vm1221_vm0, %v3523_v44  ;;  %5463 = vmatmul.mubr.msk.f32.vlgmr.msra.gmra.mxu1 %vm1221_vm0, %v3523_v44 }
 0xf64   : > { %5466 = vmatpush3.msra.mxu0 %v3694_v45  ;;  %5477 = vmatpush3.msra.mxu1 %v5014_v46 }
 0xf65   : > { %5467 = vmatprep.subr.mxu0 %v5725_v7  ;;  %5478 = vmatprep.subr.mxu1 %v5725_v7 }
 0xf66   : > { %5468 = vmatpush3.msra.mxu0 %v3693_v50  ;;  %5479 = vmatpush3.msra.mxu1 %v5013_v48  ;;  %v5030_v50 = vld [vmem:[%s6501_s18 + $0x3] ss:$0 sm:$0xff] }
 0xf67   : > { %5469 = vmatprep.subr.mxu0 %v5725_v7  ;;  %5480 = vmatprep.subr.mxu1 %v5725_v7 }
 0xf68   : > { %5470 = vmatpush3.msra.mxu0 %v3692_v53  ;;  %5481 = vmatpush3.msra.mxu1 %v5012_v54 }
 0xf69   : > { %5471 = vmatprep.subr.mxu0 %v5725_v7  ;;  %5482 = vmatprep.subr.mxu1 %v5725_v7 }
 0xf6a   : > { %5472 = vmatpush3.msra.mxu0 %v3691_v0  ;;  %5473 = vmatprep.mubr.msk.f32.mxu0 %vm5726_vm1, %v5725_v7  ;;  %v4188_v0 = vld [vmem:[%s6503_s5 + $0x8] sm:$0xff] }
 0xf6b   : > { %5483 = vmatpush3.msra.mxu1 %v5011_v55  ;;  %5484 = vmatprep.mubr.msk.f32.mxu1 %vm5726_vm1, %v5725_v7  ;;  %v5039_v55 = vld [vmem:[%s6503_s5 + $0x18] sm:$0xff] }
 0xf6c   : > { %5474 = vmatmul.mubr.msk.f32.vlgmr.msra.gmra.mxu0 %vm1221_vm0, %v2469_v56  ;;  %5485 = vmatmul.mubr.msk.f32.vlgmr.msra.gmra.mxu1 %vm1221_vm0, %v2469_v56 }
 0xf6d   : > { %5487 = vmatprep.subr.mxu0 %v5725_v7  ;;  %5498 = vmatprep.subr.mxu1 %v5725_v7 }
 0xf6e   : > { %5488 = vmatpush3.msra.mxu0 %v5021_v57  ;;  %5499 = vmatpush3.msra.mxu1 %v5028_v58 }
 0xf6f   : > { %5489 = vmatprep.subr.mxu0 %v5725_v7  ;;  %5500 = vmatprep.subr.mxu1 %v5725_v7 }
 0xf70   : > { %5490 = vmatpush3.msra.mxu0 %v5020_v59  ;;  %5501 = vmatpush3.msra.mxu1 %v5027_v60 }
 0xf71   : > { %5491 = vmatprep.subr.mxu0 %v5725_v7  ;;  %5502 = vmatprep.subr.mxu1 %v5725_v7 }
 0xf72   : > { %5492 = vmatpush3.msra.mxu0 %v5019_v63  ;;  %5503 = vmatpush3.msra.mxu1 %v5026_v1 }
 0xf73   : > { %5493 = vmatprep.subr.mxu0 %v5725_v7  ;;  %5504 = vmatprep.subr.mxu1 %v5725_v7 }
 0xf74   : > { %5494 = vmatpush3.msra.mxu0 %v5018_v3  ;;  %5495 = vmatprep.mubr.msk.f32.mxu0 %vm5726_vm1, %v5725_v7 }
 0xf75   : > { %5505 = vmatpush3.msra.mxu1 %v5025_v4  ;;  %5506 = vmatprep.mubr.msk.f32.mxu1 %vm5726_vm1, %v5725_v7  ;;  %v5042_v4 = vld [vmem:[%s6504_s12] ss:$0 sm:$0xff]  ;;  %s6508_s12 = sld [smem:[#allocation24_spill]] }
 0xf76   : > { %5496 = vmatmul.mubr.msk.f32.vlgmr.msra.gmra.mxu0 %vm1221_vm0, %v2469_v56  ;;  %5507 = vmatmul.mubr.msk.f32.vlgmr.msra.gmra.mxu1 %vm1221_vm0, %v2469_v56  ;;  %v5038_v56 = vld [vmem:[%s6503_s5 + $0x10] sm:$0xff] }
 0xf77   : > { %5509 = vmatprep.subr.mxu0 %v5725_v7  ;;  %5511 = vmatprep.mubr.msk.f32.mxu0 %vm5726_vm1, %v5725_v7 }
 0xf78   : > { %5514 = vmatprep.subr.mxu1 %v5725_v7  ;;  %5516 = vmatprep.mubr.msk.f32.mxu1 %vm5726_vm1, %v5725_v7 }
0x1023   : > { %v3604_v5 = vpop.f32.mrf.mxu0  ;;  %v3687_v6 = vpop.f32.mrf.mxu1 }
0x1024   : > { %v3605_v18 = vadd.f32 %v5000_v13, %v3604_v5  ;;  %v3688_v22 = vadd.f32 %v5007_v20, %v3687_v6  ;;  %v4630_v20 = vld [vmem:[%s6506_s15 + $0x38] sm:$0xff] }
0x1025   : > { %v5453_v8 = vpop.f32.mrf.mxu0  ;;  %v5464_v9 = vpop.f32.mrf.mxu1 }
0x102c   : > { %v3771_v11 = vpop.f32.mrf.mxu0  ;;  %v3854_v12 = vpop.f32.mrf.mxu1 }
0x102d   : > { %v3772_v14 = vadd.f32 %v5009_v10, %v3771_v11  ;;  %v3855_v21 = vadd.f32 %v5016_v15, %v3854_v12 }
0x102e   : > { %v5475_v16 = vpop.f32.mrf.mxu0  ;;  %v5486_v17 = vpop.f32.mrf.mxu1 }
0x102f   : > { %5510 = vmatpush3.xpose.msk.msra.mxu0 %vm1751_vm2, %v3772_v14  ;;  %v4541_v16 = vld [vmem:[%s6505_s11 + $0x18] sm:$0xff]  ;;  %v4540_v17 = vld [vmem:[%s6505_s11 + $0x10] sm:$0xff] }
0x1030   : > { %5519 = vmatprep.subr.mxu0 %v5725_v7 }
0x1032   : > { %5512 = vmatmul.mubr.msk.f32.vlgmr.msra.gmra.mxu0 %vm1751_vm2, %v3605_v18  ;;  %v4538_v18 = vld [vmem:[%s6505_s11] sm:$0xff] }
0x1033   : > { %5520 = vmatpush3.xpose.msk.msra.mxu0 %vm1751_vm2, %v3855_v21  ;;  %5521 = vmatprep.mubr.msk.f32.mxu0 %vm5726_vm1, %v5725_v7  ;;  %v4629_v21 = vld [vmem:[%s6506_s15 + $0x30] sm:$0xff] }
0x1034   : > { %5529 = vmatprep.subr.mxu0 %v5725_v7 }
0x1036   : > { %v3937_v24 = vpop.f32.mrf.mxu0  ;;  %v4020_v25 = vpop.f32.mrf.mxu1  ;;  %5522 = vmatmul.mubr.msk.f32.vlgmr.msra.gmra.mxu0 %vm1751_vm2, %v3688_v22  ;;  %v4628_v22 = vld [vmem:[%s6506_s15 + $0x28] sm:$0xff] }
0x1037   : > { %v3938_v26 = vadd.f32 %v5023_v23, %v3937_v24  ;;  %5533 = vmatprep.mubr.msk.f32.mxu0 %vm5726_vm1, %v5725_v7  ;;  %v4021_v53 = vadd.f32 %v5030_v50, %v4020_v25  ;;  %5530 = vmatpush3.msra.mxu0 %v5039_v55  ;;  %v4627_v23 = vld [vmem:[%s6506_s15 + $0x20] sm:$0xff]  ;;  %v4626_v24 = vld [vmem:[%s6506_s15 + $0x18] sm:$0xff] }
0x1038   : > { %v5497_v49 = vpop.f32.mrf.mxu0  ;;  %v5508_v27 = vpop.f32.mrf.mxu1  ;;  %5531 = vmatprep.subr.mxu0 %v5725_v7 }
0x1039   : > { %5515 = vmatpush3.msra.mxu1 %v3938_v26  ;;  %5532 = vmatpush3.msra.mxu0 %v5038_v56 }
0x103a   : > { %5524 = vmatprep.subr.mxu1 %v5725_v7  ;;  %5543 = vmatprep.subr.mxu0 %v5725_v7 }
0x10f2   : > { %v4096_v28 = vpop.f32.mrf.mxu0 }
0x10f3   : > { %v4100_v29 = vmul.f32 0.25, %v4096_v28 }
0x10f4   : > { %v5513_v30 = vpop.f32.mrf.mxu0 }
0x10f5   : > { %v4101_v31 = vsel %vm6050_vm3, %v4100_v29, -1e+09  ;;  %v5044_v30 = vld [vmem:[%s6508_s12] ss:$0 sm:$0xff] }
0x10f6   : > { %v4261_v32 = vpop.f32.mrf.mxu0  ;;  %v4103_v33 = vsel %vm4102_vm11, %v4101_v31, -inf }
0x10f7   : > { %v4265_v34 = vmul.f32 0.25, %v4261_v32  ;;  %4104 = vmax.xlane.f32.xlu0 %v4103_v33  ;;  %v4625_v33 = vld [vmem:[%s6506_s15 + $0x10] sm:$0xff] }
0x10f8   : > { %v5523_v35 = vpop.f32.mrf.mxu0 }
0x10f9   : > { %v4266_v36 = vsel %vm6050_vm3, %v4265_v34, -1e+09  ;;  %v4624_v34 = vld [vmem:[%s6506_s15 + $0x8] sm:$0xff]  ;;  %v4623_v35 = vld [vmem:[%s6506_s15] sm:$0xff] }
0x10fa   : > { %v4267_v37 = vsel %vm4102_vm11, %v4266_v36, -inf }
0x10fb   : > { %4268 = vmax.xlane.f32.xlu1 %v4267_v37 }
0x1180   : > { %v4105_v38 = vpop.xlane.xlu0 %4104 }
0x1181   : > { %v4106_v61 = vsub.f32 %v4101_v31, %v4105_v38 }
0x1183   : > { %v4107_v39 = vmul.f32 1.442695, %v4106_v61 }
0x1184   : > { %v4269_v40 = vpop.xlane.xlu1 %4268 }
0x1185   : > { %5650 = vpow2.f32 %v4107_v39  ;;  %v4270_v41 = vsub.f32 %v4266_v36, %v4269_v40  ;;  %v5045_v36 = vld [vmem:[%s6509_s0] ss:$0 sm:$0xff] }
0x1186   : > { %v5047_v40 = vld [vmem:[%s6510_s3] ss:$0 sm:$0xff]  ;;  %s1209_s3 = scalar_lea.vmem %s5931_s22, %s5950_s2 }
0x1187   : > { %v4271_v42 = vmul.f32 1.442695, %v4270_v41 }
0x1189   : > { %5652 = vpow2.f32 %v4271_v42 }
0x1192   : > { %v5651_v43 = vpop.eup %5650 }
0x1193   : > { %v4109_v44 = vsel %vm4102_vm11, %v5651_v43, 0.0 }
0x1194   : > { %4110 = vadd.xlane.f32.xlu0 %v4109_v44 }
0x1196   : > { %v5653_v2 = vpop.eup %5652 }
0x1197   : > { %v4273_v45 = vsel %vm4102_vm11, %v5653_v2, 0.0 }
0x1198   : > { %4274 = vadd.xlane.f32.xlu1 %v4273_v45 }
0x121d   : > { %v4111_v46 = vpop.xlane.xlu0 %4110 }
0x121e   : > { %5654 = vrcp.f32 %v4111_v46 }
0x1221   : > { %v4275_v47 = vpop.xlane.xlu1 %4274 }
0x1222   : > { %5656 = vrcp.f32 %v4275_v47 }
0x122b   : > { %v5655_v48 = vpop.eup %5654 }
0x122c   : > { %v4113_v52 = vmul.f32 %v5655_v48, %v5651_v43 }
0x122e   : > { %5517 = vmatmul.mubr.msk.f32.vlgmr.msra.gmra.mxu1 %vm1830_vm4, %v4113_v52  ;;  %4742 = vst.msk [vmem:[%s1213_s1] sm:$0x7f] %vm4102_vm11, %v4113_v52  ;;  %s6507_s1 = sld [smem:[#allocation23_spill]] }
0x122f   : > { %v5657_v54 = vpop.eup %5656  ;;  %5525 = vmatpush3.msra.mxu1 %v4021_v53  ;;  %5526 = vmatprep.mubr.msk.f32.mxu1 %vm5726_vm1, %v5725_v7 }
0x1230   : > { %v4277_v51 = vmul.f32 %v5657_v54, %v5653_v2  ;;  %5536 = vmatprep.subr.mxu1 %v5725_v7 }
0x1232   : > { %5527 = vmatmul.mubr.msk.f32.vlgmr.msra.gmra.mxu1 %vm1830_vm4, %v4277_v51  ;;  %v5049_v51 = vld [vmem:[%s5920_s10] ss:$0 sm:$0xff] }
0x1233   : > { %5537 = vmatpush3.msra.mxu1 %v4188_v0  ;;  %5540 = vmatprep.mubr.msk.f32.mxu1 %vm5726_vm1, %v5725_v7 }
0x1234   : > { %5538 = vmatprep.subr.mxu1 %v5725_v7  ;;  %v5043_v28 = vld [vmem:[%s6507_s1] ss:$0 sm:$0xff] }
0x1235   : > { %5539 = vmatpush3.msra.mxu1 %v4187_v62  ;;  %v5050_v62 = vld [vmem:[%s5925_s16] ss:$0 sm:$0xff] }
0x1236   : > { %5554 = vmatprep.subr.mxu1 %v5725_v7 }
0x12ee   : > { %v4183_v57 = vpop.f32.mrf.mxu1 }
0x12ef   : > { %5541 = vmatmul.mubr.msk.f32.vlgmr.msra.gmra.mxu1 %vm1751_vm2, %v4183_v57 }
0x12f0   : > { %v5518_v58 = vpop.f32.mrf.mxu1  ;;  %5570 = vmatprep.mubr.msk.f32.mxu1 %vm5726_vm1, %v5725_v7  ;;  %5555 = vmatpush3.msra.mxu1 %v4630_v20 }
0x12f1   : > { %5556 = vmatprep.subr.mxu1 %v5725_v7 }
0x12f2   : > { %v4347_v59 = vpop.f32.mrf.mxu1  ;;  %5557 = vmatpush3.msra.mxu1 %v4629_v21 }
0x12f3   : > { %5534 = vmatmul.mubr.msk.f32.vlgmr.msra.gmra.mxu0 %vm1751_vm2, %v4347_v59  ;;  %5558 = vmatprep.subr.mxu1 %v5725_v7 }
0x12f4   : > { %v5528_v60 = vpop.f32.mrf.mxu1  ;;  %5551 = vmatprep.mubr.msk.f32.mxu0 %vm5726_vm1, %v5725_v7  ;;  %5544 = vmatpush3.msra.mxu0 %v4541_v16 }
0x12f5   : > { %5545 = vmatprep.subr.mxu0 %v5725_v7  ;;  %5559 = vmatpush3.msra.mxu1 %v4628_v22 }
0x12f6   : > { %5546 = vmatpush3.msra.mxu0 %v4540_v17  ;;  %5560 = vmatprep.subr.mxu1 %v5725_v7 }
0x12f7   : > { %5547 = vmatprep.subr.mxu0 %v5725_v7  ;;  %5561 = vmatpush3.msra.mxu1 %v4627_v23 }
0x12f8   : > { %5562 = vmatprep.subr.mxu1 %v5725_v7 }
0x12f9   : > { %5563 = vmatpush3.msra.mxu1 %v4626_v24 }
0x12fa   : > { %5564 = vmatprep.subr.mxu1 %v5725_v7 }
0x12fb   : > { %5565 = vmatpush3.msra.mxu1 %v4625_v33 }
0x12fc   : > { %5566 = vmatprep.subr.mxu1 %v5725_v7 }
0x12fd   : > { %5567 = vmatpush3.msra.mxu1 %v4624_v34 }
0x12fe   : > { %5568 = vmatprep.subr.mxu1 %v5725_v7 }
0x12ff   : > { %5569 = vmatpush3.msra.mxu1 %v4623_v35 }
0x13af   : > { %v4496_v63 = vpop.f32.mrf.mxu1 }
0x13b1   : > { %v5542_v1 = vpop.f32.mrf.mxu1 }
0x13b3   : > { %v4423_v3 = vpop.f32.mrf.mxu0 }
0x13b4   : > { %v4497_v5 = vadd.f32 %v4496_v63, %v4423_v3 }
0x13b5   : > { %v5535_v6 = vpop.f32.mrf.mxu0 }
0x13b6   : > { %v4507_v8 = vadd.f32 %v5042_v4, %v4497_v5 }
0x13b8   : > { %v6403_v9 = vadd.f32 %v4507_v8, %v6275_v19  ;;  %v4539_v19 = vld [vmem:[%s6505_s11 + $0x8] sm:$0xff] }
0x13b9   : > { %5548 = vmatpush3.msra.mxu0 %v4539_v19 }
0x13ba   : > { %v4509_v10 = vsel %vm2473_vm5, %v6403_v9, 0.0  ;;  %5549 = vmatprep.subr.mxu0 %v5725_v7 }
0x13bb   : > { %4510 = vadd.xlane.f32.xlu0 %v4509_v10  ;;  %5550 = vmatpush3.msra.mxu0 %v4538_v18 }
0x1444   : > { %v4511_v11 = vpop.xlane.xlu0 %4510 }
0x1445   : > { %v4512_v12 = vmul.f32 0.03125, %v4511_v11 }
0x1447   : > { %v4513_v13 = vsub.f32 %v6403_v9, %v4512_v12 }
0x1449   : > { %v4514_v14 = vmul.f32 %v4513_v13, %v4513_v13 }
0x144b   : > { %v4515_v15 = vsel %vm2473_vm5, %v4514_v14, 0.0 }
0x144c   : > { %4516 = vadd.xlane.f32.xlu1 %v4515_v15 }
0x14d5   : > { %v4517_v25 = vpop.xlane.xlu1 %4516 }
0x14d6   : > { %v4518_v26 = vmul.f32 0.03125, %v4517_v25 }
0x14d8   : > { %v4519_v49 = vadd.f32 1e-06, %v4518_v26 }
0x14da   : > { %5658 = vrsqrt.f32 %v4519_v49 }
0x14e7   : > { %v5659_v27 = vpop.eup %5658 }
0x14e8   : > { %v4521_v29 = vmul.f32 %v5659_v27, %v4513_v13 }
0x14ea   : > { %v4529_v31 = vmul.f32 %v5043_v28, %v4521_v29 }
0x14ec   : > { %v4537_v32 = vadd.f32 %v5044_v30, %v4529_v31 }
0x14ee   : > { %5552 = vmatmul.mubr.msk.f32.vlgmr.msra.gmra.mxu0 %vm1221_vm0, %v4537_v32 }
0x15ae   : > { %v4618_v37 = vpop.f32.mrf.mxu0 }
0x15af   : > { %v4619_v38 = vadd.f32 %v5045_v36, %v4618_v37 }
0x15b0   : > { %v5553_v61 = vpop.f32.mrf.mxu0 }
0x15b1   : > { %v4622_v39 = vmax.f32 %v4619_v38, 0.0 }
0x15b3   : > { %5571 = vmatmul.mubr.msk.f32.vlgmr.msra.gmra.mxu1 %vm2366_vm6, %v4622_v39 }
0x1673   : > { %v4707_v41 = vpop.f32.mrf.mxu1 }
0x1674   : > { %v4708_v42 = vadd.f32 %v5047_v40, %v4707_v41 }
0x1675   : > { %v5572_v43 = vpop.f32.mrf.mxu1 }
0x1676   : > { %v4711_v44 = vadd.f32 %v4708_v42, %v6403_v9 }
0x1678   : > { %v4712_v2 = vsel %vm2473_vm5, %v4711_v44, 0.0 }
0x1679   : > { %4713 = vadd.xlane.f32.xlu0 %v4712_v2 }
0x1702   : > { %v4714_v7 = vpop.xlane.xlu0 %4713 }
0x1703   : > { %v4715_v45 = vmul.f32 0.03125, %v4714_v7 }
0x1705   : > { %v4716_v46 = vsub.f32 %v4711_v44, %v4715_v45 }
0x1707   : > { %v4717_v47 = vmul.f32 %v4716_v46, %v4716_v46 }
0x1709   : > { %v4718_v50 = vsel %vm2473_vm5, %v4717_v47, 0.0 }
0x170a   : > { %4719 = vadd.xlane.f32.xlu1 %v4718_v50 }
0x1793   : > { %v4720_v48 = vpop.xlane.xlu1 %4719 }
0x1794   : > { %v4721_v52 = vmul.f32 0.03125, %v4720_v48 }
0x1796   : > { %v4722_v53 = vadd.f32 1e-06, %v4721_v52 }
0x1798   : > { %5660 = vrsqrt.f32 %v4722_v53 }
0x17a5   : > { %v5661_v54 = vpop.eup %5660 }
0x17a6   : > { %v4724_v0 = vmul.f32 %v5661_v54, %v4716_v46 }
0x17a8   : > { %v4732_v55 = vmul.f32 %v5049_v51, %v4724_v0 }
0x17aa   : > { %v4740_v56 = vadd.f32 %v5050_v62, %v4732_v55 }
0x17ac   : > { %4741 = vst.msk [vmem:[%s1209_s3] sm:$0x7f] %vm2473_vm5, %v4740_v56 }
0x17ad PF: > { %s98_s20 = sadd.s32 1, %s5682_s20  }
0x17ae   : > { %p95_p9 = scmp.ge.s32.totalorder %s98_s20, 4  }
0x17b0   :  { %97 = sbr.rel (!%p95_p9) target bundleno = 74 (0x4a), region = 288 }

</bundles_post_ra>
